<compile_context>
chip_gen: v6e
topology: v6e:2x2x1
jax: 0.10.0
libtpu: 0.0.40
codegen_flags: <defaults>
</compile_context>

<pallas_src>
import functools

import jax
import jax.numpy as jnp
from jax.experimental import pallas as pl
from jax.experimental.pallas import tpu as pltpu

NEG_SLOPE = 0.2
BN_EPS = 1e-5
_MAX_FC1_CHUNK = 4  # SC: spatial positions folded into one fc1 grid step (K = SC*128)


def _fc1_chunking(s_pos):
    """Largest divisor of s_pos that is <= _MAX_FC1_CHUNK -> (SC, NC)."""
    sc = 1
    for d in range(1, _MAX_FC1_CHUNK + 1):
        if s_pos % d == 0:
            sc = d
    return sc, s_pos // sc


def _vmem_limit_bytes():
    # v5e/v6e have 128 MiB VMEM per core, v7x has 64 MiB: derive the scoped
    # limit instead of hard-coding so the kernel ports cleanly (review #7).
    try:
        cap = pltpu.get_tpu_info().vmem_capacity_bytes
    except Exception:
        cap = 64 * 1024 * 1024
    return int(min(cap // 2, 64 * 1024 * 1024))


# ---------------------------------------------------------------------------
# Wrapper-side im2col for conv1 (rows pre-permuted into parity order so the
# kernel can scatter conv1's output into the padded scratch with static stores)
# ---------------------------------------------------------------------------
def conv1_cols_parity(x_nhwc, kh=4, kw=4, stride=2, pad=1):
    """im2col of the raw input with rows ordered (1-hpar, 1-wpar, a, aw, n).

    Output row ((1-hpar)*2 + (1-wpar))*hh*wh*N + a*wh*N + aw*N + n holds the
    patch for conv1 output pixel (h = 2*a + hpar, w = 2*aw + wpar) of sample n.
    """
    N, H, W, C = x_nhwc.shape
    Ho = (H + 2 * pad - kh) // stride + 1
    Wo = (W + 2 * pad - kw) // stride + 1
    assert Ho % 2 == 0 and Wo % 2 == 0
    xp = jnp.pad(x_nhwc, ((0, 0), (pad, pad), (pad, pad), (0, 0)))
    taps = [xp[:, i:i + Ho * stride:stride, j:j + Wo * stride:stride, :]
            for i in range(kh) for j in range(kw)]
    patches = jnp.stack(taps, axis=3).reshape(N, Ho, Wo, kh * kw * C)
    p = patches.reshape(N, Ho // 2, 2, Wo // 2, 2, kh * kw * C)  # h=2a+b, w=2aw+bw
    q = jnp.transpose(p, (2, 4, 1, 3, 0, 5))                     # (b, bw, a, aw, n, K)
    q = q[::-1, ::-1]                                            # leading = 1-b, 1-bw
    return q.reshape(4 * (Ho // 2) * (Wo // 2) * N, kh * kw * C), Ho, Wo


# ---------------------------------------------------------------------------
# Fused forward kernel (grid over the fc1 reduction axis)
# ---------------------------------------------------------------------------
def _fused_kernel(cols1_ref, w1_ref, b1_ref,
                  w2_ref, b2_ref, g2_ref, be2_ref,
                  w3_ref, b3_ref, g1_ref, be1_ref,
                  w4_ref, b4_ref,
                  out_ref, h1p_ref, h2c_ref, acc_ref,
                  *, n, hh, wh, sc, neg_slope, eps):
    f32, bf16 = jnp.float32, jnp.bfloat16
    s_pos = hh * wh
    wn = wh * n                         # (w-position x batch) columns per scratch line
    step = pl.program_id(0)
    last = pl.num_programs(0) - 1

    def lrelu(v):                       # max(x, a*x): cheaper than cmp+mul+select
        return jnp.maximum(v, neg_slope * v)

    # ------------- step 0: conv1 -> conv2 -> BN2, build the fc1 LHS ------------
    @pl.when(step == 0)
    def _prologue():
        # conv1: rows are parity-ordered (see conv1_cols_parity)
        h1 = jnp.dot(cols1_ref[...], w1_ref[...], preferred_element_type=f32)
        h1 = lrelu(h1 + b1_ref[...])                       # (4*hh*wh*n, 64) f32

        # zero ONLY the halo row / halo column block of the parity scratch
        wrn = (wh + 1) * n
        for ph in range(2):
            hz = 0 if ph == 0 else hh                      # padded row -1 / Ho1
            for pw in range(2):
                wz = 0 if pw == 0 else wh * n              # padded col -1 / Wo1
                h1p_ref[ph, pw, hz, :, :] = jnp.zeros((wrn, 64), f32)
                h1p_ref[ph, pw, :, wz:wz + n, :] = jnp.zeros((hh + 1, n, 64), f32)

        # scatter conv1 output: one strided (hh, wn, 64) store per parity block
        blk = hh * wn
        for ph in range(2):
            hr0 = 1 - ph
            for pw in range(2):
                w0 = (1 - pw) * n
                base = (ph * 2 + pw) * blk
                h1p_ref[ph, pw, hr0:hr0 + hh, w0:w0 + wn, :] = (
                    h1[base:base + blk, :].reshape(hh, wn, 64))

        # conv2: 16 per-tap (hh*wn, 64) @ (64, 128) matmuls into one accumulator
        acc2 = jnp.zeros((hh * wn, 128), f32)
        for i in range(4):
            for j in range(4):
                ph, pw = i % 2, j % 2
                hoff, woff = i // 2, (j // 2) * n
                lhs = h1p_ref[ph, pw, hoff:hoff + hh, woff:woff + wn, :]
                acc2 = acc2 + jnp.dot(
                    lhs.reshape(hh * wn, 64).astype(bf16), w2_ref[i * 4 + j],
                    preferred_element_type=f32)
        h2 = acc2 + b2_ref[...]                            # rows = s*n + b, s = oh*wh + ow

        # BatchNorm2d(128) over all (n, h, w) rows (batch stats) + LeakyReLU
        mu2 = jnp.mean(h2, axis=0, keepdims=True)
        var2 = jnp.mean(jnp.square(h2 - mu2), axis=0, keepdims=True)
        h2 = lrelu((h2 - mu2) * jax.lax.rsqrt(var2 + eps) * g2_ref[...]
                   + be2_ref[...])

        # repack into the fc1 LHS layout: h2c[chunk, b, s_loc*128 + c]
        for s_idx in range(s_pos):
            c_idx, s_loc = s_idx // sc, s_idx % sc
            h2c_ref[c_idx, :, s_loc * 128:(s_loc + 1) * 128] = (
                h2[s_idx * n:(s_idx + 1) * n, :].astype(bf16))

        # fc1 accumulator starts at the bias
        acc_ref[...] = jnp.zeros((n, b3_ref.shape[1]), f32) + b3_ref[...]

    # ------------- every step: one fc1 chunk (pipelined weight DMA) ------------
    acc_ref[...] += jnp.dot(h2c_ref[step], w3_ref[...],
                            preferred_element_type=f32)

    # ------------- last step: BN1 -> LReLU -> fc2 ------------------------------
    @pl.when(step == last)
    def _epilogue():
        a = acc_ref[...]
        mu1 = jnp.mean(a, axis=0, keepdims=True)
        var1 = jnp.mean(jnp.square(a - mu1), axis=0, keepdims=True)
        h3 = lrelu((a - mu1) * jax.lax.rsqrt(var1 + eps) * g1_ref[...]
                   + be1_ref[...])
        out = jnp.dot(h3.astype(bf16), w4_ref[...], preferred_element_type=f32)
        out_ref[...] = out + b4_ref[...]


# ---------------------------------------------------------------------------
# Parameters: raw (PyTorch layout) + packed (kernel-ready, built once at init)
# ---------------------------------------------------------------------------
def init_raw_params(key, input_dim, output_dim, input_size):
    s_pos = (input_size // 4) ** 2
    feat = 128 * s_pos
    ks = jax.random.split(key, 6)
    return {
        "conv1_w": 0.02 * jax.random.normal(ks[0], (64, input_dim, 4, 4), jnp.float32),
        "conv1_b": jnp.zeros((64,), jnp.float32),
        "conv2_w": 0.02 * jax.random.normal(ks[1], (128, 64, 4, 4), jnp.float32),
        "conv2_b": jnp.zeros((128,), jnp.float32),
        "bn2_gamma": 1.0 + 0.02 * jax.random.normal(ks[2], (128,), jnp.float32),
        "bn2_beta": jnp.zeros((128,), jnp.float32),
        "fc1_w": 0.02 * jax.random.normal(ks[3], (1024, feat), jnp.float32),
        "fc1_b": jnp.zeros((1024,), jnp.float32),
        "bn1_gamma": 1.0 + 0.02 * jax.random.normal(ks[4], (1024,), jnp.float32),
        "bn1_beta": jnp.zeros((1024,), jnp.float32),
        "fc2_w": 0.02 * jax.random.normal(ks[5], (output_dim, 1024), jnp.float32),
        "fc2_b": jnp.zeros((output_dim,), jnp.float32),
    }


def pack_params(raw, input_dim, output_dim, input_size):
    s_pos = (input_size // 4) ** 2
    sc, nc = _fc1_chunking(s_pos)
    k1 = 16 * input_dim
    k1p = max(128, ((k1 + 127) // 128) * 128)
    outp = max(128, ((output_dim + 127) // 128) * 128)

    # conv weights -> (kh*kw*cin, cout) / (tap, cin, cout), bf16
    w1 = jnp.transpose(raw["conv1_w"], (2, 3, 1, 0)).reshape(k1, 64)
    w1 = jnp.pad(w1, ((0, k1p - k1), (0, 0))).astype(jnp.bfloat16)
    w2 = jnp.transpose(raw["conv2_w"], (2, 3, 1, 0)).reshape(16, 64, 128).astype(jnp.bfloat16)
    # fc1 -> (chunk, s_loc*128 + c, o) with value fc1_w[o, c*S + chunk*SC + s_loc]
    w3 = jnp.transpose(raw["fc1_w"].reshape(1024, 128, s_pos), (2, 1, 0))   # (S,128,1024)
    w3 = w3.reshape(nc, sc, 128, 1024).reshape(nc, sc * 128, 1024).astype(jnp.bfloat16)
    # fc2 -> (1024, out) padded to a lane-dense 128-wide block
    w4 = jnp.pad(raw["fc2_w"].T, ((0, 0), (0, outp - output_dim))).astype(jnp.bfloat16)

    return {
        "conv1_w": w1, "conv1_b": raw["conv1_b"].reshape(1, 64),
        "conv2_w": w2, "conv2_b": raw["conv2_b"].reshape(1, 128),
        "bn2_gamma": raw["bn2_gamma"].reshape(1, 128),
        "bn2_beta": raw["bn2_beta"].reshape(1, 128),
        "fc1_w": w3, "fc1_b": raw["fc1_b"].reshape(1, 1024),
        "bn1_gamma": raw["bn1_gamma"].reshape(1, 1024),
        "bn1_beta": raw["bn1_beta"].reshape(1, 1024),
        "fc2_w": w4,
        "fc2_b": jnp.pad(raw["fc2_b"], (0, outp - output_dim)).reshape(1, outp),
    }


# ---------------------------------------------------------------------------
# Forward
# ---------------------------------------------------------------------------
def infogan_discriminator_classifier_forward(params, x_nchw, *, output_dim):
    n = x_nchw.shape[0]
    x = jnp.transpose(x_nchw, (0, 2, 3, 1)).astype(jnp.float32)        # NHWC

    cols1, ho1, wo1 = conv1_cols_parity(x)
    k1p = params["conv1_w"].shape[0]
    cols1 = jnp.pad(cols1, ((0, 0), (0, k1p - cols1.shape[1]))).astype(jnp.bfloat16)

    hh, wh = ho1 // 2, wo1 // 2
    s_pos = hh * wh
    nc = params["fc1_w"].shape[0]
    sck = params["fc1_w"].shape[1] // 128
    fc1_out = params["fc1_w"].shape[2]
    assert nc * sck == s_pos, "input_size mismatch with packed params"
    outp = params["fc2_w"].shape[1]

    kern = functools.partial(_fused_kernel, n=n, hh=hh, wh=wh, sc=sck,
                             neg_slope=NEG_SLOPE, eps=BN_EPS)

    def fixed(shape):              # full-block input, resident across the grid
        return pl.BlockSpec(shape, lambda s, _nd=len(shape): (0,) * _nd)

    grid_spec = pltpu.PrefetchScalarGridSpec(
        num_scalar_prefetch=0,
        grid=(nc,),
        in_specs=[
            fixed(cols1.shape),                        # cols1
            fixed(params["conv1_w"].shape),            # w1
            fixed(params["conv1_b"].shape),            # b1
            fixed(params["conv2_w"].shape),            # w2
            fixed(params["conv2_b"].shape),            # b2
            fixed(params["bn2_gamma"].shape),          # g2
            fixed(params["bn2_beta"].shape),           # be2
            pl.BlockSpec((None, sck * 128, fc1_out),   # fc1_w: one chunk per step
                         lambda s: (s, 0, 0)),
            fixed(params["fc1_b"].shape),              # b3
            fixed(params["bn1_gamma"].shape),          # g1
            fixed(params["bn1_beta"].shape),           # be1
            fixed(params["fc2_w"].shape),              # w4
            fixed(params["fc2_b"].shape),              # b4
        ],
        out_specs=pl.BlockSpec((n, outp), lambda s: (0, 0)),
        scratch_shapes=[
            pltpu.VMEM((2, 2, hh + 1, (wh + 1) * n, 64), jnp.float32),  # parity h1
            pltpu.VMEM((nc, n, sck * 128), jnp.bfloat16),               # fc1 LHS
            pltpu.VMEM((n, fc1_out), jnp.float32),                      # fc1 acc
        ],
    )

    out = pl.pallas_call(
        kern,
        out_shape=jax.ShapeDtypeStruct((n, outp), jnp.float32),
        grid_spec=grid_spec,
        compiler_params=pltpu.CompilerParams(
            dimension_semantics=("arbitrary",),        # fc1 reduction axis
            vmem_limit_bytes=_vmem_limit_bytes()),
    )(cols1,
      params["conv1_w"], params["conv1_b"],
      params["conv2_w"], params["conv2_b"], params["bn2_gamma"], params["bn2_beta"],
      params["fc1_w"], params["fc1_b"], params["bn1_gamma"], params["bn1_beta"],
      params["fc2_w"], params["fc2_b"])
    return out[:, :output_dim]


# ---------------------------------------------------------------------------
# Pure-JAX reference (same bf16 cast points as the kernel) for the diff test
# ---------------------------------------------------------------------------
def reference_forward(raw, x_nchw):
    f32, bf16 = jnp.float32, jnp.bfloat16
    lrelu = lambda v: jnp.maximum(v, NEG_SLOPE * v)
    dn = ("NCHW", "OIHW", "NCHW")

    x = x_nchw.astype(bf16)
    h1 = jax.lax.conv_general_dilated(x, raw["conv1_w"].astype(bf16), (2, 2),
                                      ((1, 1), (1, 1)), dimension_numbers=dn,
                                      preferred_element_type=f32)
    h1 = lrelu(h1 + raw["conv1_b"].reshape(1, -1, 1, 1)).astype(bf16)

    h2 = jax.lax.conv_general_dilated(h1, raw["conv2_w"].astype(bf16), (2, 2),
                                      ((1, 1), (1, 1)), dimension_numbers=dn,
                                      preferred_element_type=f32)
    h2 = h2 + raw["conv2_b"].reshape(1, -1, 1, 1)
    mu2 = jnp.mean(h2, axis=(0, 2, 3), keepdims=True)
    var2 = jnp.mean(jnp.square(h2 - mu2), axis=(0, 2, 3), keepdims=True)
    h2 = lrelu((h2 - mu2) * jax.lax.rsqrt(var2 + BN_EPS)
               * raw["bn2_gamma"].reshape(1, -1, 1, 1)
               + raw["bn2_beta"].reshape(1, -1, 1, 1)).astype(bf16)

    flat = h2.reshape(h2.shape[0], -1)                    # NCHW flatten (c*S + s)
    h3 = jnp.dot(flat, raw["fc1_w"].astype(bf16).T,
                 preferred_element_type=f32) + raw["fc1_b"]
    mu1 = jnp.mean(h3, axis=0, keepdims=True)
    var1 = jnp.mean(jnp.square(h3 - mu1), axis=0, keepdims=True)
    h3 = lrelu((h3 - mu1) * jax.lax.rsqrt(var1 + BN_EPS)
               * raw["bn1_gamma"] + raw["bn1_beta"]).astype(bf16)
    return jnp.dot(h3, raw["fc2_w"].astype(bf16).T,
                   preferred_element_type=f32) + raw["fc2_b"]


if __name__ == "__main__":
    INPUT_DIM, OUTPUT_DIM, INPUT_SIZE, BATCH = 1, 8, 16, 8

    key = jax.random.PRNGKey(0)
    k_params, k_x = jax.random.split(key)
    raw = init_raw_params(k_params, INPUT_DIM, OUTPUT_DIM, INPUT_SIZE)
    params = pack_params(raw, INPUT_DIM, OUTPUT_DIM, INPUT_SIZE)
    x = jax.random.normal(k_x, (BATCH, INPUT_DIM, INPUT_SIZE, INPUT_SIZE), jnp.float32)

    fwd = jax.jit(functools.partial(infogan_discriminator_classifier_forward,
                                    output_dim=OUTPUT_DIM))
    out = jax.block_until_ready(fwd(params, x))

    ref = jax.block_until_ready(jax.jit(reference_forward)(raw, x))

    assert out.shape == (BATCH, OUTPUT_DIM) and out.dtype == jnp.float32
    assert bool(jnp.all(jnp.isfinite(out)))
    assert bool(jnp.allclose(out, ref, rtol=3e-2, atol=3e-2)), (
        "max |diff| = %f" % float(jnp.max(jnp.abs(out - ref))))
    print("KERNEL_OK")
</pallas_src>

<mosaic_0001>
module attributes {stable_mosaic.version = 11 : i64} {
  func.func @_fused_kernel(%arg0: i32, %arg1: memref<512x128xbf16, #tpu.memory_space<vmem>>, %arg2: memref<128x64xbf16, #tpu.memory_space<vmem>>, %arg3: memref<1x64xf32, #tpu.memory_space<vmem>>, %arg4: memref<16x64x128xbf16, #tpu.memory_space<vmem>>, %arg5: memref<1x128xf32, #tpu.memory_space<vmem>>, %arg6: memref<1x128xf32, #tpu.memory_space<vmem>>, %arg7: memref<1x128xf32, #tpu.memory_space<vmem>>, %arg8: memref<1x512x1024xbf16, #tpu.memory_space<vmem>>, %arg9: memref<1x1024xf32, #tpu.memory_space<vmem>>, %arg10: memref<1x1024xf32, #tpu.memory_space<vmem>>, %arg11: memref<1x1024xf32, #tpu.memory_space<vmem>>, %arg12: memref<1024x128xbf16, #tpu.memory_space<vmem>>, %arg13: memref<1x128xf32, #tpu.memory_space<vmem>>, %arg14: memref<8x128xf32, #tpu.memory_space<vmem>>, %arg15: memref<2x2x5x40x64xf32, #tpu.memory_space<vmem>>, %arg16: memref<4x8x512xbf16, #tpu.memory_space<vmem>>, %arg17: memref<8x1024xf32, #tpu.memory_space<vmem>>) attributes {dimension_semantics = [#tpu.dimension_semantics<arbitrary>], iteration_bounds = array<i64: 4>, scalar_prefetch = 0 : i64, scratch_operands = 3 : i64, tpu.core_type = #tpu.core_type<tc>, window_params = [{pipeline_mode = #tpu.pipeline_mode<synchronous>, transform_indices = @transform_0, window_bounds = array<i64: 512, 128>}, {pipeline_mode = #tpu.pipeline_mode<synchronous>, transform_indices = @transform_1, window_bounds = array<i64: 128, 64>}, {pipeline_mode = #tpu.pipeline_mode<synchronous>, transform_indices = @transform_2, window_bounds = array<i64: 1, 64>}, {pipeline_mode = #tpu.pipeline_mode<synchronous>, transform_indices = @transform_3, window_bounds = array<i64: 16, 64, 128>}, {pipeline_mode = #tpu.pipeline_mode<synchronous>, transform_indices = @transform_4, window_bounds = array<i64: 1, 128>}, {pipeline_mode = #tpu.pipeline_mode<synchronous>, transform_indices = @transform_5, window_bounds = array<i64: 1, 128>}, {pipeline_mode = #tpu.pipeline_mode<synchronous>, transform_indices = @transform_6, window_bounds = array<i64: 1, 128>}, {transform_indices = @transform_7, window_bounds = array<i64: 1, 512, 1024>}, {pipeline_mode = #tpu.pipeline_mode<synchronous>, transform_indices = @transform_8, window_bounds = array<i64: 1, 1024>}, {pipeline_mode = #tpu.pipeline_mode<synchronous>, transform_indices = @transform_9, window_bounds = array<i64: 1, 1024>}, {pipeline_mode = #tpu.pipeline_mode<synchronous>, transform_indices = @transform_10, window_bounds = array<i64: 1, 1024>}, {pipeline_mode = #tpu.pipeline_mode<synchronous>, transform_indices = @transform_11, window_bounds = array<i64: 1024, 128>}, {pipeline_mode = #tpu.pipeline_mode<synchronous>, transform_indices = @transform_12, window_bounds = array<i64: 1, 128>}, {pipeline_mode = #tpu.pipeline_mode<synchronous>, transform_indices = @transform_13, window_bounds = array<i64: 8, 128>}]} {
    %c0_i32 = arith.constant 0 : i32
    %0 = arith.cmpi eq, %arg0, %c0_i32 : i32
    %1 = arith.extui %0 : i1 to i32
    %c0_i32_0 = arith.constant 0 : i32
    %2 = arith.cmpi ne, %1, %c0_i32_0 : i32
    scf.if %2 {
      %c0_10 = arith.constant 0 : index
      %c0_11 = arith.constant 0 : index
      %15 = vector.load %arg1[%c0_10, %c0_11] : memref<512x128xbf16, #tpu.memory_space<vmem>>, vector<512x128xbf16>
      %c0_12 = arith.constant 0 : index
      %c0_13 = arith.constant 0 : index
      %16 = vector.load %arg2[%c0_12, %c0_13] : memref<128x64xbf16, #tpu.memory_space<vmem>>, vector<128x64xbf16>
      %cst_14 = arith.constant dense<0.000000e+00> : vector<512x64xf32>
      %17 = tpu.matmul %15, %16, %cst_14 {dimension_numbers = #tpu.dot_dimension_numbers<[1], [0], [0], [1], [0, 0, 1, 1], [], []>} : vector<512x128xbf16>, vector<128x64xbf16>, vector<512x64xf32> -> vector<512x64xf32>
      %c0_15 = arith.constant 0 : index
      %c0_16 = arith.constant 0 : index
      %18 = vector.load %arg3[%c0_15, %c0_16] : memref<1x64xf32, #tpu.memory_space<vmem>>, vector<1x64xf32>
      %19 = vector.broadcast %18 : vector<1x64xf32> to vector<512x64xf32>
      %20 = arith.addf %17, %19 : vector<512x64xf32>
      %cst_17 = arith.constant 2.000000e-01 : f32
      %21 = vector.broadcast %cst_17 : f32 to vector<512x64xf32>
      %22 = arith.mulf %21, %20 : vector<512x64xf32>
      %23 = arith.maximumf %20, %22 : vector<512x64xf32>
      %cst_18 = arith.constant 0.000000e+00 : f32
      %24 = vector.broadcast %cst_18 : f32 to vector<40x64xf32>
      %c0_19 = arith.constant 0 : index
      %c0_20 = arith.constant 0 : index
      %c0_21 = arith.constant 0 : index
      %c0_22 = arith.constant 0 : index
      %c0_23 = arith.constant 0 : index
      %25 = vector.load %arg15[%c0_19, %c0_20, %c0_21, %c0_22, %c0_23] : memref<2x2x5x40x64xf32, #tpu.memory_space<vmem>>, vector<1x1x1x40x64xf32>
      %26 = vector.shape_cast %25 : vector<1x1x1x40x64xf32> to vector<40x64xf32>
      %27 = vector.shape_cast %24 : vector<40x64xf32> to vector<1x1x1x40x64xf32>
      tpu.vector_store %arg15[%c0_19, %c0_20, %c0_21, %c0_22, %c0_23], %27 {strides = array<i32>} : memref<2x2x5x40x64xf32, #tpu.memory_space<vmem>>, vector<1x1x1x40x64xf32>,
      %cst_24 = arith.constant 0.000000e+00 : f32
      %28 = vector.broadcast %cst_24 : f32 to vector<5x8x64xf32>
      %c0_25 = arith.constant 0 : index
      %c0_26 = arith.constant 0 : index
      %c0_27 = arith.constant 0 : index
      %c0_28 = arith.constant 0 : index
      %c0_29 = arith.constant 0 : index
      %29 = vector.load %arg15[%c0_25, %c0_26, %c0_27, %c0_28, %c0_29] : memref<2x2x5x40x64xf32, #tpu.memory_space<vmem>>, vector<1x1x5x8x64xf32>
      %30 = vector.shape_cast %29 : vector<1x1x5x8x64xf32> to vector<5x8x64xf32>
      %31 = vector.shape_cast %28 : vector<5x8x64xf32> to vector<1x1x5x8x64xf32>
      tpu.vector_store %arg15[%c0_25, %c0_26, %c0_27, %c0_28, %c0_29], %31 {strides = array<i32>} : memref<2x2x5x40x64xf32, #tpu.memory_space<vmem>>, vector<1x1x5x8x64xf32>,
      %cst_30 = arith.constant 0.000000e+00 : f32
      %32 = vector.broadcast %cst_30 : f32 to vector<40x64xf32>
      %c0_31 = arith.constant 0 : index
      %c1 = arith.constant 1 : index
      %c0_32 = arith.constant 0 : index
      %c0_33 = arith.constant 0 : index
      %c0_34 = arith.constant 0 : index
      %33 = vector.load %arg15[%c0_31, %c1, %c0_32, %c0_33, %c0_34] : memref<2x2x5x40x64xf32, #tpu.memory_space<vmem>>, vector<1x1x1x40x64xf32>
      %34 = vector.shape_cast %33 : vector<1x1x1x40x64xf32> to vector<40x64xf32>
      %35 = vector.shape_cast %32 : vector<40x64xf32> to vector<1x1x1x40x64xf32>
      tpu.vector_store %arg15[%c0_31, %c1, %c0_32, %c0_33, %c0_34], %35 {strides = array<i32>} : memref<2x2x5x40x64xf32, #tpu.memory_space<vmem>>, vector<1x1x1x40x64xf32>,
      %cst_35 = arith.constant 0.000000e+00 : f32
      %36 = vector.broadcast %cst_35 : f32 to vector<5x8x64xf32>
      %c0_36 = arith.constant 0 : index
      %c1_37 = arith.constant 1 : index
      %c0_38 = arith.constant 0 : index
      %c32 = arith.constant 32 : index
      %c0_39 = arith.constant 0 : index
      %37 = vector.load %arg15[%c0_36, %c1_37, %c0_38, %c32, %c0_39] : memref<2x2x5x40x64xf32, #tpu.memory_space<vmem>>, vector<1x1x5x8x64xf32>
      %38 = vector.shape_cast %37 : vector<1x1x5x8x64xf32> to vector<5x8x64xf32>
      %39 = vector.shape_cast %36 : vector<5x8x64xf32> to vector<1x1x5x8x64xf32>
      tpu.vector_store %arg15[%c0_36, %c1_37, %c0_38, %c32, %c0_39], %39 {strides = array<i32>} : memref<2x2x5x40x64xf32, #tpu.memory_space<vmem>>, vector<1x1x5x8x64xf32>,
      %cst_40 = arith.constant 0.000000e+00 : f32
      %40 = vector.broadcast %cst_40 : f32 to vector<40x64xf32>
      %c1_41 = arith.constant 1 : index
      %c0_42 = arith.constant 0 : index
      %c4 = arith.constant 4 : index
      %c0_43 = arith.constant 0 : index
      %c0_44 = arith.constant 0 : index
      %41 = vector.load %arg15[%c1_41, %c0_42, %c4, %c0_43, %c0_44] : memref<2x2x5x40x64xf32, #tpu.memory_space<vmem>>, vector<1x1x1x40x64xf32>
      %42 = vector.shape_cast %41 : vector<1x1x1x40x64xf32> to vector<40x64xf32>
      %43 = vector.shape_cast %40 : vector<40x64xf32> to vector<1x1x1x40x64xf32>
      tpu.vector_store %arg15[%c1_41, %c0_42, %c4, %c0_43, %c0_44], %43 {strides = array<i32>} : memref<2x2x5x40x64xf32, #tpu.memory_space<vmem>>, vector<1x1x1x40x64xf32>,
      %cst_45 = arith.constant 0.000000e+00 : f32
      %44 = vector.broadcast %cst_45 : f32 to vector<5x8x64xf32>
      %c1_46 = arith.constant 1 : index
      %c0_47 = arith.constant 0 : index
      %c0_48 = arith.constant 0 : index
      %c0_49 = arith.constant 0 : index
      %c0_50 = arith.constant 0 : index
      %45 = vector.load %arg15[%c1_46, %c0_47, %c0_48, %c0_49, %c0_50] : memref<2x2x5x40x64xf32, #tpu.memory_space<vmem>>, vector<1x1x5x8x64xf32>
      %46 = vector.shape_cast %45 : vector<1x1x5x8x64xf32> to vector<5x8x64xf32>
      %47 = vector.shape_cast %44 : vector<5x8x64xf32> to vector<1x1x5x8x64xf32>
      tpu.vector_store %arg15[%c1_46, %c0_47, %c0_48, %c0_49, %c0_50], %47 {strides = array<i32>} : memref<2x2x5x40x64xf32, #tpu.memory_space<vmem>>, vector<1x1x5x8x64xf32>,
      %cst_51 = arith.constant 0.000000e+00 : f32
      %48 = vector.broadcast %cst_51 : f32 to vector<40x64xf32>
      %c1_52 = arith.constant 1 : index
      %c1_53 = arith.constant 1 : index
      %c4_54 = arith.constant 4 : index
      %c0_55 = arith.constant 0 : index
      %c0_56 = arith.constant 0 : index
      %49 = vector.load %arg15[%c1_52, %c1_53, %c4_54, %c0_55, %c0_56] : memref<2x2x5x40x64xf32, #tpu.memory_space<vmem>>, vector<1x1x1x40x64xf32>
      %50 = vector.shape_cast %49 : vector<1x1x1x40x64xf32> to vector<40x64xf32>
      %51 = vector.shape_cast %48 : vector<40x64xf32> to vector<1x1x1x40x64xf32>
      tpu.vector_store %arg15[%c1_52, %c1_53, %c4_54, %c0_55, %c0_56], %51 {strides = array<i32>} : memref<2x2x5x40x64xf32, #tpu.memory_space<vmem>>, vector<1x1x1x40x64xf32>,
      %cst_57 = arith.constant 0.000000e+00 : f32
      %52 = vector.broadcast %cst_57 : f32 to vector<5x8x64xf32>
      %c1_58 = arith.constant 1 : index
      %c1_59 = arith.constant 1 : index
      %c0_60 = arith.constant 0 : index
      %c32_61 = arith.constant 32 : index
      %c0_62 = arith.constant 0 : index
      %53 = vector.load %arg15[%c1_58, %c1_59, %c0_60, %c32_61, %c0_62] : memref<2x2x5x40x64xf32, #tpu.memory_space<vmem>>, vector<1x1x5x8x64xf32>
      %54 = vector.shape_cast %53 : vector<1x1x5x8x64xf32> to vector<5x8x64xf32>
      %55 = vector.shape_cast %52 : vector<5x8x64xf32> to vector<1x1x5x8x64xf32>
      tpu.vector_store %arg15[%c1_58, %c1_59, %c0_60, %c32_61, %c0_62], %55 {strides = array<i32>} : memref<2x2x5x40x64xf32, #tpu.memory_space<vmem>>, vector<1x1x5x8x64xf32>,
      %56 = vector.extract_strided_slice %23 {offsets = [0, 0], sizes = [128, 64], strides = [1, 1]} : vector<512x64xf32> to vector<128x64xf32>
      %57 = vector.shape_cast %56 : vector<128x64xf32> to vector<4x32x64xf32>
      %c0_63 = arith.constant 0 : index
      %c0_64 = arith.constant 0 : index
      %c1_65 = arith.constant 1 : index
      %c8 = arith.constant 8 : index
      %c0_66 = arith.constant 0 : index
      %58 = vector.load %arg15[%c0_63, %c0_64, %c1_65, %c8, %c0_66] : memref<2x2x5x40x64xf32, #tpu.memory_space<vmem>>, vector<1x1x4x32x64xf32>
      %59 = vector.shape_cast %58 : vector<1x1x4x32x64xf32> to vector<4x32x64xf32>
      %60 = vector.shape_cast %57 : vector<4x32x64xf32> to vector<1x1x4x32x64xf32>
      tpu.vector_store %arg15[%c0_63, %c0_64, %c1_65, %c8, %c0_66], %60 {strides = array<i32>} : memref<2x2x5x40x64xf32, #tpu.memory_space<vmem>>, vector<1x1x4x32x64xf32>,
      %61 = vector.extract_strided_slice %23 {offsets = [128, 0], sizes = [128, 64], strides = [1, 1]} : vector<512x64xf32> to vector<128x64xf32>
      %62 = vector.shape_cast %61 : vector<128x64xf32> to vector<4x32x64xf32>
      %c0_67 = arith.constant 0 : index
      %c1_68 = arith.constant 1 : index
      %c1_69 = arith.constant 1 : index
      %c0_70 = arith.constant 0 : index
      %c0_71 = arith.constant 0 : index
      %63 = vector.load %arg15[%c0_67, %c1_68, %c1_69, %c0_70, %c0_71] : memref<2x2x5x40x64xf32, #tpu.memory_space<vmem>>, vector<1x1x4x32x64xf32>
      %64 = vector.shape_cast %63 : vector<1x1x4x32x64xf32> to vector<4x32x64xf32>
      %65 = vector.shape_cast %62 : vector<4x32x64xf32> to vector<1x1x4x32x64xf32>
      tpu.vector_store %arg15[%c0_67, %c1_68, %c1_69, %c0_70, %c0_71], %65 {strides = array<i32>} : memref<2x2x5x40x64xf32, #tpu.memory_space<vmem>>, vector<1x1x4x32x64xf32>,
      %66 = vector.extract_strided_slice %23 {offsets = [256, 0], sizes = [128, 64], strides = [1, 1]} : vector<512x64xf32> to vector<128x64xf32>
      %67 = vector.shape_cast %66 : vector<128x64xf32> to vector<4x32x64xf32>
      %c1_72 = arith.constant 1 : index
      %c0_73 = arith.constant 0 : index
      %c0_74 = arith.constant 0 : index
      %c8_75 = arith.constant 8 : index
      %c0_76 = arith.constant 0 : index
      %68 = vector.load %arg15[%c1_72, %c0_73, %c0_74, %c8_75, %c0_76] : memref<2x2x5x40x64xf32, #tpu.memory_space<vmem>>, vector<1x1x4x32x64xf32>
      %69 = vector.shape_cast %68 : vector<1x1x4x32x64xf32> to vector<4x32x64xf32>
      %70 = vector.shape_cast %67 : vector<4x32x64xf32> to vector<1x1x4x32x64xf32>
      tpu.vector_store %arg15[%c1_72, %c0_73, %c0_74, %c8_75, %c0_76], %70 {strides = array<i32>} : memref<2x2x5x40x64xf32, #tpu.memory_space<vmem>>, vector<1x1x4x32x64xf32>,
      %71 = vector.extract_strided_slice %23 {offsets = [384, 0], sizes = [128, 64], strides = [1, 1]} : vector<512x64xf32> to vector<128x64xf32>
      %72 = vector.shape_cast %71 : vector<128x64xf32> to vector<4x32x64xf32>
      %c1_77 = arith.constant 1 : index
      %c1_78 = arith.constant 1 : index
      %c0_79 = arith.constant 0 : index
      %c0_80 = arith.constant 0 : index
      %c0_81 = arith.constant 0 : index
      %73 = vector.load %arg15[%c1_77, %c1_78, %c0_79, %c0_80, %c0_81] : memref<2x2x5x40x64xf32, #tpu.memory_space<vmem>>, vector<1x1x4x32x64xf32>
      %74 = vector.shape_cast %73 : vector<1x1x4x32x64xf32> to vector<4x32x64xf32>
      %75 = vector.shape_cast %72 : vector<4x32x64xf32> to vector<1x1x4x32x64xf32>
      tpu.vector_store %arg15[%c1_77, %c1_78, %c0_79, %c0_80, %c0_81], %75 {strides = array<i32>} : memref<2x2x5x40x64xf32, #tpu.memory_space<vmem>>, vector<1x1x4x32x64xf32>,
      %cst_82 = arith.constant 0.000000e+00 : f32
      %76 = vector.broadcast %cst_82 : f32 to vector<128x128xf32>
      %c0_83 = arith.constant 0 : index
      %c0_84 = arith.constant 0 : index
      %c0_85 = arith.constant 0 : index
      %c0_86 = arith.constant 0 : index
      %c0_87 = arith.constant 0 : index
      %77 = vector.load %arg15[%c0_83, %c0_84, %c0_85, %c0_86, %c0_87] : memref<2x2x5x40x64xf32, #tpu.memory_space<vmem>>, vector<1x1x4x32x64xf32>
      %78 = vector.shape_cast %77 : vector<1x1x4x32x64xf32> to vector<4x32x64xf32>
      %79 = vector.shape_cast %78 : vector<4x32x64xf32> to vector<128x64xf32>
      %80 = arith.truncf %79 : vector<128x64xf32> to vector<128x64xbf16>
      %c0_88 = arith.constant 0 : index
      %c0_89 = arith.constant 0 : index
      %c0_90 = arith.constant 0 : index
      %81 = vector.load %arg4[%c0_88, %c0_89, %c0_90] : memref<16x64x128xbf16, #tpu.memory_space<vmem>>, vector<1x64x128xbf16>
      %82 = vector.shape_cast %81 : vector<1x64x128xbf16> to vector<64x128xbf16>
      %cst_91 = arith.constant dense<0.000000e+00> : vector<128x128xf32>
      %83 = tpu.matmul %80, %82, %cst_91 {dimension_numbers = #tpu.dot_dimension_numbers<[1], [0], [0], [1], [0, 0, 1, 1], [], []>} : vector<128x64xbf16>, vector<64x128xbf16>, vector<128x128xf32> -> vector<128x128xf32>
      %84 = arith.addf %76, %83 : vector<128x128xf32>
      %c0_92 = arith.constant 0 : index
      %c1_93 = arith.constant 1 : index
      %c0_94 = arith.constant 0 : index
      %c0_95 = arith.constant 0 : index
      %c0_96 = arith.constant 0 : index
      %85 = vector.load %arg15[%c0_92, %c1_93, %c0_94, %c0_95, %c0_96] : memref<2x2x5x40x64xf32, #tpu.memory_space<vmem>>, vector<1x1x4x32x64xf32>
      %86 = vector.shape_cast %85 : vector<1x1x4x32x64xf32> to vector<4x32x64xf32>
      %87 = vector.shape_cast %86 : vector<4x32x64xf32> to vector<128x64xf32>
      %88 = arith.truncf %87 : vector<128x64xf32> to vector<128x64xbf16>
      %c1_97 = arith.constant 1 : index
      %c0_98 = arith.constant 0 : index
      %c0_99 = arith.constant 0 : index
      %89 = vector.load %arg4[%c1_97, %c0_98, %c0_99] : memref<16x64x128xbf16, #tpu.memory_space<vmem>>, vector<1x64x128xbf16>
      %90 = vector.shape_cast %89 : vector<1x64x128xbf16> to vector<64x128xbf16>
      %cst_100 = arith.constant dense<0.000000e+00> : vector<128x128xf32>
      %91 = tpu.matmul %88, %90, %cst_100 {dimension_numbers = #tpu.dot_dimension_numbers<[1], [0], [0], [1], [0, 0, 1, 1], [], []>} : vector<128x64xbf16>, vector<64x128xbf16>, vector<128x128xf32> -> vector<128x128xf32>
      %92 = arith.addf %84, %91 : vector<128x128xf32>
      %c0_101 = arith.constant 0 : index
      %c0_102 = arith.constant 0 : index
      %c0_103 = arith.constant 0 : index
      %c8_104 = arith.constant 8 : index
      %c0_105 = arith.constant 0 : index
      %93 = vector.load %arg15[%c0_101, %c0_102, %c0_103, %c8_104, %c0_105] : memref<2x2x5x40x64xf32, #tpu.memory_space<vmem>>, vector<1x1x4x32x64xf32>
      %94 = vector.shape_cast %93 : vector<1x1x4x32x64xf32> to vector<4x32x64xf32>
      %95 = vector.shape_cast %94 : vector<4x32x64xf32> to vector<128x64xf32>
      %96 = arith.truncf %95 : vector<128x64xf32> to vector<128x64xbf16>
      %c2 = arith.constant 2 : index
      %c0_106 = arith.constant 0 : index
      %c0_107 = arith.constant 0 : index
      %97 = vector.load %arg4[%c2, %c0_106, %c0_107] : memref<16x64x128xbf16, #tpu.memory_space<vmem>>, vector<1x64x128xbf16>
      %98 = vector.shape_cast %97 : vector<1x64x128xbf16> to vector<64x128xbf16>
      %cst_108 = arith.constant dense<0.000000e+00> : vector<128x128xf32>
      %99 = tpu.matmul %96, %98, %cst_108 {dimension_numbers = #tpu.dot_dimension_numbers<[1], [0], [0], [1], [0, 0, 1, 1], [], []>} : vector<128x64xbf16>, vector<64x128xbf16>, vector<128x128xf32> -> vector<128x128xf32>
      %100 = arith.addf %92, %99 : vector<128x128xf32>
      %c0_109 = arith.constant 0 : index
      %c1_110 = arith.constant 1 : index
      %c0_111 = arith.constant 0 : index
      %c8_112 = arith.constant 8 : index
      %c0_113 = arith.constant 0 : index
      %101 = vector.load %arg15[%c0_109, %c1_110, %c0_111, %c8_112, %c0_113] : memref<2x2x5x40x64xf32, #tpu.memory_space<vmem>>, vector<1x1x4x32x64xf32>
      %102 = vector.shape_cast %101 : vector<1x1x4x32x64xf32> to vector<4x32x64xf32>
      %103 = vector.shape_cast %102 : vector<4x32x64xf32> to vector<128x64xf32>
      %104 = arith.truncf %103 : vector<128x64xf32> to vector<128x64xbf16>
      %c3 = arith.constant 3 : index
      %c0_114 = arith.constant 0 : index
      %c0_115 = arith.constant 0 : index
      %105 = vector.load %arg4[%c3, %c0_114, %c0_115] : memref<16x64x128xbf16, #tpu.memory_space<vmem>>, vector<1x64x128xbf16>
      %106 = vector.shape_cast %105 : vector<1x64x128xbf16> to vector<64x128xbf16>
      %cst_116 = arith.constant dense<0.000000e+00> : vector<128x128xf32>
      %107 = tpu.matmul %104, %106, %cst_116 {dimension_numbers = #tpu.dot_dimension_numbers<[1], [0], [0], [1], [0, 0, 1, 1], [], []>} : vector<128x64xbf16>, vector<64x128xbf16>, vector<128x128xf32> -> vector<128x128xf32>
      %108 = arith.addf %100, %107 : vector<128x128xf32>
      %c1_117 = arith.constant 1 : index
      %c0_118 = arith.constant 0 : index
      %c0_119 = arith.constant 0 : index
      %c0_120 = arith.constant 0 : index
      %c0_121 = arith.constant 0 : index
      %109 = vector.load %arg15[%c1_117, %c0_118, %c0_119, %c0_120, %c0_121] : memref<2x2x5x40x64xf32, #tpu.memory_space<vmem>>, vector<1x1x4x32x64xf32>
      %110 = vector.shape_cast %109 : vector<1x1x4x32x64xf32> to vector<4x32x64xf32>
      %111 = vector.shape_cast %110 : vector<4x32x64xf32> to vector<128x64xf32>
      %112 = arith.truncf %111 : vector<128x64xf32> to vector<128x64xbf16>
      %c4_122 = arith.constant 4 : index
      %c0_123 = arith.constant 0 : index
      %c0_124 = arith.constant 0 : index
      %113 = vector.load %arg4[%c4_122, %c0_123, %c0_124] : memref<16x64x128xbf16, #tpu.memory_space<vmem>>, vector<1x64x128xbf16>
      %114 = vector.shape_cast %113 : vector<1x64x128xbf16> to vector<64x128xbf16>
      %cst_125 = arith.constant dense<0.000000e+00> : vector<128x128xf32>
      %115 = tpu.matmul %112, %114, %cst_125 {dimension_numbers = #tpu.dot_dimension_numbers<[1], [0], [0], [1], [0, 0, 1, 1], [], []>} : vector<128x64xbf16>, vector<64x128xbf16>, vector<128x128xf32> -> vector<128x128xf32>
      %116 = arith.addf %108, %115 : vector<128x128xf32>
      %c1_126 = arith.constant 1 : index
      %c1_127 = arith.constant 1 : index
      %c0_128 = arith.constant 0 : index
      %c0_129 = arith.constant 0 : index
      %c0_130 = arith.constant 0 : index
      %117 = vector.load %arg15[%c1_126, %c1_127, %c0_128, %c0_129, %c0_130] : memref<2x2x5x40x64xf32, #tpu.memory_space<vmem>>, vector<1x1x4x32x64xf32>
      %118 = vector.shape_cast %117 : vector<1x1x4x32x64xf32> to vector<4x32x64xf32>
      %119 = vector.shape_cast %118 : vector<4x32x64xf32> to vector<128x64xf32>
      %120 = arith.truncf %119 : vector<128x64xf32> to vector<128x64xbf16>
      %c5 = arith.constant 5 : index
      %c0_131 = arith.constant 0 : index
      %c0_132 = arith.constant 0 : index
      %121 = vector.load %arg4[%c5, %c0_131, %c0_132] : memref<16x64x128xbf16, #tpu.memory_space<vmem>>, vector<1x64x128xbf16>
      %122 = vector.shape_cast %121 : vector<1x64x128xbf16> to vector<64x128xbf16>
      %cst_133 = arith.constant dense<0.000000e+00> : vector<128x128xf32>
      %123 = tpu.matmul %120, %122, %cst_133 {dimension_numbers = #tpu.dot_dimension_numbers<[1], [0], [0], [1], [0, 0, 1, 1], [], []>} : vector<128x64xbf16>, vector<64x128xbf16>, vector<128x128xf32> -> vector<128x128xf32>
      %124 = arith.addf %116, %123 : vector<128x128xf32>
      %c1_134 = arith.constant 1 : index
      %c0_135 = arith.constant 0 : index
      %c0_136 = arith.constant 0 : index
      %c8_137 = arith.constant 8 : index
      %c0_138 = arith.constant 0 : index
      %125 = vector.load %arg15[%c1_134, %c0_135, %c0_136, %c8_137, %c0_138] : memref<2x2x5x40x64xf32, #tpu.memory_space<vmem>>, vector<1x1x4x32x64xf32>
      %126 = vector.shape_cast %125 : vector<1x1x4x32x64xf32> to vector<4x32x64xf32>
      %127 = vector.shape_cast %126 : vector<4x32x64xf32> to vector<128x64xf32>
      %128 = arith.truncf %127 : vector<128x64xf32> to vector<128x64xbf16>
      %c6 = arith.constant 6 : index
      %c0_139 = arith.constant 0 : index
      %c0_140 = arith.constant 0 : index
      %129 = vector.load %arg4[%c6, %c0_139, %c0_140] : memref<16x64x128xbf16, #tpu.memory_space<vmem>>, vector<1x64x128xbf16>
      %130 = vector.shape_cast %129 : vector<1x64x128xbf16> to vector<64x128xbf16>
      %cst_141 = arith.constant dense<0.000000e+00> : vector<128x128xf32>
      %131 = tpu.matmul %128, %130, %cst_141 {dimension_numbers = #tpu.dot_dimension_numbers<[1], [0], [0], [1], [0, 0, 1, 1], [], []>} : vector<128x64xbf16>, vector<64x128xbf16>, vector<128x128xf32> -> vector<128x128xf32>
      %132 = arith.addf %124, %131 : vector<128x128xf32>
      %c1_142 = arith.constant 1 : index
      %c1_143 = arith.constant 1 : index
      %c0_144 = arith.constant 0 : index
      %c8_145 = arith.constant 8 : index
      %c0_146 = arith.constant 0 : index
      %133 = vector.load %arg15[%c1_142, %c1_143, %c0_144, %c8_145, %c0_146] : memref<2x2x5x40x64xf32, #tpu.memory_space<vmem>>, vector<1x1x4x32x64xf32>
      %134 = vector.shape_cast %133 : vector<1x1x4x32x64xf32> to vector<4x32x64xf32>
      %135 = vector.shape_cast %134 : vector<4x32x64xf32> to vector<128x64xf32>
      %136 = arith.truncf %135 : vector<128x64xf32> to vector<128x64xbf16>
      %c7 = arith.constant 7 : index
      %c0_147 = arith.constant 0 : index
      %c0_148 = arith.constant 0 : index
      %137 = vector.load %arg4[%c7, %c0_147, %c0_148] : memref<16x64x128xbf16, #tpu.memory_space<vmem>>, vector<1x64x128xbf16>
      %138 = vector.shape_cast %137 : vector<1x64x128xbf16> to vector<64x128xbf16>
      %cst_149 = arith.constant dense<0.000000e+00> : vector<128x128xf32>
      %139 = tpu.matmul %136, %138, %cst_149 {dimension_numbers = #tpu.dot_dimension_numbers<[1], [0], [0], [1], [0, 0, 1, 1], [], []>} : vector<128x64xbf16>, vector<64x128xbf16>, vector<128x128xf32> -> vector<128x128xf32>
      %140 = arith.addf %132, %139 : vector<128x128xf32>
      %c0_150 = arith.constant 0 : index
      %c0_151 = arith.constant 0 : index
      %c1_152 = arith.constant 1 : index
      %c0_153 = arith.constant 0 : index
      %c0_154 = arith.constant 0 : index
      %141 = vector.load %arg15[%c0_150, %c0_151, %c1_152, %c0_153, %c0_154] : memref<2x2x5x40x64xf32, #tpu.memory_space<vmem>>, vector<1x1x4x32x64xf32>
      %142 = vector.shape_cast %141 : vector<1x1x4x32x64xf32> to vector<4x32x64xf32>
      %143 = vector.shape_cast %142 : vector<4x32x64xf32> to vector<128x64xf32>
      %144 = arith.truncf %143 : vector<128x64xf32> to vector<128x64xbf16>
      %c8_155 = arith.constant 8 : index
      %c0_156 = arith.constant 0 : index
      %c0_157 = arith.constant 0 : index
      %145 = vector.load %arg4[%c8_155, %c0_156, %c0_157] : memref<16x64x128xbf16, #tpu.memory_space<vmem>>, vector<1x64x128xbf16>
      %146 = vector.shape_cast %145 : vector<1x64x128xbf16> to vector<64x128xbf16>
      %cst_158 = arith.constant dense<0.000000e+00> : vector<128x128xf32>
      %147 = tpu.matmul %144, %146, %cst_158 {dimension_numbers = #tpu.dot_dimension_numbers<[1], [0], [0], [1], [0, 0, 1, 1], [], []>} : vector<128x64xbf16>, vector<64x128xbf16>, vector<128x128xf32> -> vector<128x128xf32>
      %148 = arith.addf %140, %147 : vector<128x128xf32>
      %c0_159 = arith.constant 0 : index
      %c1_160 = arith.constant 1 : index
      %c1_161 = arith.constant 1 : index
      %c0_162 = arith.constant 0 : index
      %c0_163 = arith.constant 0 : index
      %149 = vector.load %arg15[%c0_159, %c1_160, %c1_161, %c0_162, %c0_163] : memref<2x2x5x40x64xf32, #tpu.memory_space<vmem>>, vector<1x1x4x32x64xf32>
      %150 = vector.shape_cast %149 : vector<1x1x4x32x64xf32> to vector<4x32x64xf32>
      %151 = vector.shape_cast %150 : vector<4x32x64xf32> to vector<128x64xf32>
      %152 = arith.truncf %151 : vector<128x64xf32> to vector<128x64xbf16>
      %c9 = arith.constant 9 : index
      %c0_164 = arith.constant 0 : index
      %c0_165 = arith.constant 0 : index
      %153 = vector.load %arg4[%c9, %c0_164, %c0_165] : memref<16x64x128xbf16, #tpu.memory_space<vmem>>, vector<1x64x128xbf16>
      %154 = vector.shape_cast %153 : vector<1x64x128xbf16> to vector<64x128xbf16>
      %cst_166 = arith.constant dense<0.000000e+00> : vector<128x128xf32>
      %155 = tpu.matmul %152, %154, %cst_166 {dimension_numbers = #tpu.dot_dimension_numbers<[1], [0], [0], [1], [0, 0, 1, 1], [], []>} : vector<128x64xbf16>, vector<64x128xbf16>, vector<128x128xf32> -> vector<128x128xf32>
      %156 = arith.addf %148, %155 : vector<128x128xf32>
      %c0_167 = arith.constant 0 : index
      %c0_168 = arith.constant 0 : index
      %c1_169 = arith.constant 1 : index
      %c8_170 = arith.constant 8 : index
      %c0_171 = arith.constant 0 : index
      %157 = vector.load %arg15[%c0_167, %c0_168, %c1_169, %c8_170, %c0_171] : memref<2x2x5x40x64xf32, #tpu.memory_space<vmem>>, vector<1x1x4x32x64xf32>
      %158 = vector.shape_cast %157 : vector<1x1x4x32x64xf32> to vector<4x32x64xf32>
      %159 = vector.shape_cast %158 : vector<4x32x64xf32> to vector<128x64xf32>
      %160 = arith.truncf %159 : vector<128x64xf32> to vector<128x64xbf16>
      %c10 = arith.constant 10 : index
      %c0_172 = arith.constant 0 : index
      %c0_173 = arith.constant 0 : index
      %161 = vector.load %arg4[%c10, %c0_172, %c0_173] : memref<16x64x128xbf16, #tpu.memory_space<vmem>>, vector<1x64x128xbf16>
      %162 = vector.shape_cast %161 : vector<1x64x128xbf16> to vector<64x128xbf16>
      %cst_174 = arith.constant dense<0.000000e+00> : vector<128x128xf32>
      %163 = tpu.matmul %160, %162, %cst_174 {dimension_numbers = #tpu.dot_dimension_numbers<[1], [0], [0], [1], [0, 0, 1, 1], [], []>} : vector<128x64xbf16>, vector<64x128xbf16>, vector<128x128xf32> -> vector<128x128xf32>
      %164 = arith.addf %156, %163 : vector<128x128xf32>
      %c0_175 = arith.constant 0 : index
      %c1_176 = arith.constant 1 : index
      %c1_177 = arith.constant 1 : index
      %c8_178 = arith.constant 8 : index
      %c0_179 = arith.constant 0 : index
      %165 = vector.load %arg15[%c0_175, %c1_176, %c1_177, %c8_178, %c0_179] : memref<2x2x5x40x64xf32, #tpu.memory_space<vmem>>, vector<1x1x4x32x64xf32>
      %166 = vector.shape_cast %165 : vector<1x1x4x32x64xf32> to vector<4x32x64xf32>
      %167 = vector.shape_cast %166 : vector<4x32x64xf32> to vector<128x64xf32>
      %168 = arith.truncf %167 : vector<128x64xf32> to vector<128x64xbf16>
      %c11 = arith.constant 11 : index
      %c0_180 = arith.constant 0 : index
      %c0_181 = arith.constant 0 : index
      %169 = vector.load %arg4[%c11, %c0_180, %c0_181] : memref<16x64x128xbf16, #tpu.memory_space<vmem>>, vector<1x64x128xbf16>
      %170 = vector.shape_cast %169 : vector<1x64x128xbf16> to vector<64x128xbf16>
      %cst_182 = arith.constant dense<0.000000e+00> : vector<128x128xf32>
      %171 = tpu.matmul %168, %170, %cst_182 {dimension_numbers = #tpu.dot_dimension_numbers<[1], [0], [0], [1], [0, 0, 1, 1], [], []>} : vector<128x64xbf16>, vector<64x128xbf16>, vector<128x128xf32> -> vector<128x128xf32>
      %172 = arith.addf %164, %171 : vector<128x128xf32>
      %c1_183 = arith.constant 1 : index
      %c0_184 = arith.constant 0 : index
      %c1_185 = arith.constant 1 : index
      %c0_186 = arith.constant 0 : index
      %c0_187 = arith.constant 0 : index
      %173 = vector.load %arg15[%c1_183, %c0_184, %c1_185, %c0_186, %c0_187] : memref<2x2x5x40x64xf32, #tpu.memory_space<vmem>>, vector<1x1x4x32x64xf32>
      %174 = vector.shape_cast %173 : vector<1x1x4x32x64xf32> to vector<4x32x64xf32>
      %175 = vector.shape_cast %174 : vector<4x32x64xf32> to vector<128x64xf32>
      %176 = arith.truncf %175 : vector<128x64xf32> to vector<128x64xbf16>
      %c12 = arith.constant 12 : index
      %c0_188 = arith.constant 0 : index
      %c0_189 = arith.constant 0 : index
      %177 = vector.load %arg4[%c12, %c0_188, %c0_189] : memref<16x64x128xbf16, #tpu.memory_space<vmem>>, vector<1x64x128xbf16>
      %178 = vector.shape_cast %177 : vector<1x64x128xbf16> to vector<64x128xbf16>
      %cst_190 = arith.constant dense<0.000000e+00> : vector<128x128xf32>
      %179 = tpu.matmul %176, %178, %cst_190 {dimension_numbers = #tpu.dot_dimension_numbers<[1], [0], [0], [1], [0, 0, 1, 1], [], []>} : vector<128x64xbf16>, vector<64x128xbf16>, vector<128x128xf32> -> vector<128x128xf32>
      %180 = arith.addf %172, %179 : vector<128x128xf32>
      %c1_191 = arith.constant 1 : index
      %c1_192 = arith.constant 1 : index
      %c1_193 = arith.constant 1 : index
      %c0_194 = arith.constant 0 : index
      %c0_195 = arith.constant 0 : index
      %181 = vector.load %arg15[%c1_191, %c1_192, %c1_193, %c0_194, %c0_195] : memref<2x2x5x40x64xf32, #tpu.memory_space<vmem>>, vector<1x1x4x32x64xf32>
      %182 = vector.shape_cast %181 : vector<1x1x4x32x64xf32> to vector<4x32x64xf32>
      %183 = vector.shape_cast %182 : vector<4x32x64xf32> to vector<128x64xf32>
      %184 = arith.truncf %183 : vector<128x64xf32> to vector<128x64xbf16>
      %c13 = arith.constant 13 : index
      %c0_196 = arith.constant 0 : index
      %c0_197 = arith.constant 0 : index
      %185 = vector.load %arg4[%c13, %c0_196, %c0_197] : memref<16x64x128xbf16, #tpu.memory_space<vmem>>, vector<1x64x128xbf16>
      %186 = vector.shape_cast %185 : vector<1x64x128xbf16> to vector<64x128xbf16>
      %cst_198 = arith.constant dense<0.000000e+00> : vector<128x128xf32>
      %187 = tpu.matmul %184, %186, %cst_198 {dimension_numbers = #tpu.dot_dimension_numbers<[1], [0], [0], [1], [0, 0, 1, 1], [], []>} : vector<128x64xbf16>, vector<64x128xbf16>, vector<128x128xf32> -> vector<128x128xf32>
      %188 = arith.addf %180, %187 : vector<128x128xf32>
      %c1_199 = arith.constant 1 : index
      %c0_200 = arith.constant 0 : index
      %c1_201 = arith.constant 1 : index
      %c8_202 = arith.constant 8 : index
      %c0_203 = arith.constant 0 : index
      %189 = vector.load %arg15[%c1_199, %c0_200, %c1_201, %c8_202, %c0_203] : memref<2x2x5x40x64xf32, #tpu.memory_space<vmem>>, vector<1x1x4x32x64xf32>
      %190 = vector.shape_cast %189 : vector<1x1x4x32x64xf32> to vector<4x32x64xf32>
      %191 = vector.shape_cast %190 : vector<4x32x64xf32> to vector<128x64xf32>
      %192 = arith.truncf %191 : vector<128x64xf32> to vector<128x64xbf16>
      %c14 = arith.constant 14 : index
      %c0_204 = arith.constant 0 : index
      %c0_205 = arith.constant 0 : index
      %193 = vector.load %arg4[%c14, %c0_204, %c0_205] : memref<16x64x128xbf16, #tpu.memory_space<vmem>>, vector<1x64x128xbf16>
      %194 = vector.shape_cast %193 : vector<1x64x128xbf16> to vector<64x128xbf16>
      %cst_206 = arith.constant dense<0.000000e+00> : vector<128x128xf32>
      %195 = tpu.matmul %192, %194, %cst_206 {dimension_numbers = #tpu.dot_dimension_numbers<[1], [0], [0], [1], [0, 0, 1, 1], [], []>} : vector<128x64xbf16>, vector<64x128xbf16>, vector<128x128xf32> -> vector<128x128xf32>
      %196 = arith.addf %188, %195 : vector<128x128xf32>
      %c1_207 = arith.constant 1 : index
      %c1_208 = arith.constant 1 : index
      %c1_209 = arith.constant 1 : index
      %c8_210 = arith.constant 8 : index
      %c0_211 = arith.constant 0 : index
      %197 = vector.load %arg15[%c1_207, %c1_208, %c1_209, %c8_210, %c0_211] : memref<2x2x5x40x64xf32, #tpu.memory_space<vmem>>, vector<1x1x4x32x64xf32>
      %198 = vector.shape_cast %197 : vector<1x1x4x32x64xf32> to vector<4x32x64xf32>
      %199 = vector.shape_cast %198 : vector<4x32x64xf32> to vector<128x64xf32>
      %200 = arith.truncf %199 : vector<128x64xf32> to vector<128x64xbf16>
      %c15 = arith.constant 15 : index
      %c0_212 = arith.constant 0 : index
      %c0_213 = arith.constant 0 : index
      %201 = vector.load %arg4[%c15, %c0_212, %c0_213] : memref<16x64x128xbf16, #tpu.memory_space<vmem>>, vector<1x64x128xbf16>
      %202 = vector.shape_cast %201 : vector<1x64x128xbf16> to vector<64x128xbf16>
      %cst_214 = arith.constant dense<0.000000e+00> : vector<128x128xf32>
      %203 = tpu.matmul %200, %202, %cst_214 {dimension_numbers = #tpu.dot_dimension_numbers<[1], [0], [0], [1], [0, 0, 1, 1], [], []>} : vector<128x64xbf16>, vector<64x128xbf16>, vector<128x128xf32> -> vector<128x128xf32>
      %204 = arith.addf %196, %203 : vector<128x128xf32>
      %c0_215 = arith.constant 0 : index
      %c0_216 = arith.constant 0 : index
      %205 = vector.load %arg5[%c0_215, %c0_216] : memref<1x128xf32, #tpu.memory_space<vmem>>, vector<1x128xf32>
      %206 = vector.broadcast %205 : vector<1x128xf32> to vector<128x128xf32>
      %207 = arith.addf %204, %206 : vector<128x128xf32>
      %cst_217 = arith.constant dense<0.000000e+00> : vector<128xf32>
      %208 = vector.multi_reduction <add>, %207, %cst_217 [0] : vector<128x128xf32> to vector<128xf32>
      %209 = vector.shape_cast %208 : vector<128xf32> to vector<1x128xf32>
      %cst_218 = arith.constant 1.280000e+02 : f32
      %210 = vector.broadcast %cst_218 : f32 to vector<1x128xf32>
      %211 = arith.divf %209, %210 : vector<1x128xf32>
      %212 = vector.broadcast %211 : vector<1x128xf32> to vector<128x128xf32>
      %213 = arith.subf %207, %212 : vector<128x128xf32>
      %214 = arith.mulf %213, %213 : vector<128x128xf32>
      %cst_219 = arith.constant dense<0.000000e+00> : vector<128xf32>
      %215 = vector.multi_reduction <add>, %214, %cst_219 [0] : vector<128x128xf32> to vector<128xf32>
      %216 = vector.shape_cast %215 : vector<128xf32> to vector<1x128xf32>
      %cst_220 = arith.constant 1.280000e+02 : f32
      %217 = vector.broadcast %cst_220 : f32 to vector<1x128xf32>
      %218 = arith.divf %216, %217 : vector<1x128xf32>
      %219 = vector.broadcast %211 : vector<1x128xf32> to vector<128x128xf32>
      %220 = arith.subf %207, %219 : vector<128x128xf32>
      %cst_221 = arith.constant 9.99999974E-6 : f32
      %221 = vector.broadcast %cst_221 : f32 to vector<1x128xf32>
      %222 = arith.addf %218, %221 : vector<1x128xf32>
      %223 = math.rsqrt %222 : vector<1x128xf32>
      %224 = vector.broadcast %223 : vector<1x128xf32> to vector<128x128xf32>
      %225 = arith.mulf %220, %224 : vector<128x128xf32>
      %c0_222 = arith.constant 0 : index
      %c0_223 = arith.constant 0 : index
      %226 = vector.load %arg6[%c0_222, %c0_223] : memref<1x128xf32, #tpu.memory_space<vmem>>, vector<1x128xf32>
      %227 = vector.broadcast %226 : vector<1x128xf32> to vector<128x128xf32>
      %228 = arith.mulf %225, %227 : vector<128x128xf32>
      %c0_224 = arith.constant 0 : index
      %c0_225 = arith.constant 0 : index
      %229 = vector.load %arg7[%c0_224, %c0_225] : memref<1x128xf32, #tpu.memory_space<vmem>>, vector<1x128xf32>
      %230 = vector.broadcast %229 : vector<1x128xf32> to vector<128x128xf32>
      %231 = arith.addf %228, %230 : vector<128x128xf32>
      %cst_226 = arith.constant 2.000000e-01 : f32
      %232 = vector.broadcast %cst_226 : f32 to vector<128x128xf32>
      %233 = arith.mulf %232, %231 : vector<128x128xf32>
      %234 = arith.maximumf %231, %233 : vector<128x128xf32>
      %235 = vector.extract_strided_slice %234 {offsets = [0, 0], sizes = [8, 128], strides = [1, 1]} : vector<128x128xf32> to vector<8x128xf32>
      %236 = arith.truncf %235 : vector<8x128xf32> to vector<8x128xbf16>
      %c0_227 = arith.constant 0 : index
      %c0_228 = arith.constant 0 : index
      %c0_229 = arith.constant 0 : index
      %237 = vector.load %arg16[%c0_227, %c0_228, %c0_229] : memref<4x8x512xbf16, #tpu.memory_space<vmem>>, vector<1x8x128xbf16>
      %238 = vector.shape_cast %237 : vector<1x8x128xbf16> to vector<8x128xbf16>
      %239 = vector.shape_cast %236 : vector<8x128xbf16> to vector<1x8x128xbf16>
      tpu.vector_store %arg16[%c0_227, %c0_228, %c0_229], %239 {strides = array<i32>} : memref<4x8x512xbf16, #tpu.memory_space<vmem>>, vector<1x8x128xbf16>,
      %240 = vector.extract_strided_slice %234 {offsets = [8, 0], sizes = [8, 128], strides = [1, 1]} : vector<128x128xf32> to vector<8x128xf32>
      %241 = arith.truncf %240 : vector<8x128xf32> to vector<8x128xbf16>
      %c0_230 = arith.constant 0 : index
      %c0_231 = arith.constant 0 : index
      %c128 = arith.constant 128 : index
      %242 = vector.load %arg16[%c0_230, %c0_231, %c128] : memref<4x8x512xbf16, #tpu.memory_space<vmem>>, vector<1x8x128xbf16>
      %243 = vector.shape_cast %242 : vector<1x8x128xbf16> to vector<8x128xbf16>
      %244 = vector.shape_cast %241 : vector<8x128xbf16> to vector<1x8x128xbf16>
      tpu.vector_store %arg16[%c0_230, %c0_231, %c128], %244 {strides = array<i32>} : memref<4x8x512xbf16, #tpu.memory_space<vmem>>, vector<1x8x128xbf16>,
      %245 = vector.extract_strided_slice %234 {offsets = [16, 0], sizes = [8, 128], strides = [1, 1]} : vector<128x128xf32> to vector<8x128xf32>
      %246 = arith.truncf %245 : vector<8x128xf32> to vector<8x128xbf16>
      %c0_232 = arith.constant 0 : index
      %c0_233 = arith.constant 0 : index
      %c256 = arith.constant 256 : index
      %247 = vector.load %arg16[%c0_232, %c0_233, %c256] : memref<4x8x512xbf16, #tpu.memory_space<vmem>>, vector<1x8x128xbf16>
      %248 = vector.shape_cast %247 : vector<1x8x128xbf16> to vector<8x128xbf16>
      %249 = vector.shape_cast %246 : vector<8x128xbf16> to vector<1x8x128xbf16>
      tpu.vector_store %arg16[%c0_232, %c0_233, %c256], %249 {strides = array<i32>} : memref<4x8x512xbf16, #tpu.memory_space<vmem>>, vector<1x8x128xbf16>,
      %250 = vector.extract_strided_slice %234 {offsets = [24, 0], sizes = [8, 128], strides = [1, 1]} : vector<128x128xf32> to vector<8x128xf32>
      %251 = arith.truncf %250 : vector<8x128xf32> to vector<8x128xbf16>
      %c0_234 = arith.constant 0 : index
      %c0_235 = arith.constant 0 : index
      %c384 = arith.constant 384 : index
      %252 = vector.load %arg16[%c0_234, %c0_235, %c384] : memref<4x8x512xbf16, #tpu.memory_space<vmem>>, vector<1x8x128xbf16>
      %253 = vector.shape_cast %252 : vector<1x8x128xbf16> to vector<8x128xbf16>
      %254 = vector.shape_cast %251 : vector<8x128xbf16> to vector<1x8x128xbf16>
      tpu.vector_store %arg16[%c0_234, %c0_235, %c384], %254 {strides = array<i32>} : memref<4x8x512xbf16, #tpu.memory_space<vmem>>, vector<1x8x128xbf16>,
      %255 = vector.extract_strided_slice %234 {offsets = [32, 0], sizes = [8, 128], strides = [1, 1]} : vector<128x128xf32> to vector<8x128xf32>
      %256 = arith.truncf %255 : vector<8x128xf32> to vector<8x128xbf16>
      %c1_236 = arith.constant 1 : index
      %c0_237 = arith.constant 0 : index
      %c0_238 = arith.constant 0 : index
      %257 = vector.load %arg16[%c1_236, %c0_237, %c0_238] : memref<4x8x512xbf16, #tpu.memory_space<vmem>>, vector<1x8x128xbf16>
      %258 = vector.shape_cast %257 : vector<1x8x128xbf16> to vector<8x128xbf16>
      %259 = vector.shape_cast %256 : vector<8x128xbf16> to vector<1x8x128xbf16>
      tpu.vector_store %arg16[%c1_236, %c0_237, %c0_238], %259 {strides = array<i32>} : memref<4x8x512xbf16, #tpu.memory_space<vmem>>, vector<1x8x128xbf16>,
      %260 = vector.extract_strided_slice %234 {offsets = [40, 0], sizes = [8, 128], strides = [1, 1]} : vector<128x128xf32> to vector<8x128xf32>
      %261 = arith.truncf %260 : vector<8x128xf32> to vector<8x128xbf16>
      %c1_239 = arith.constant 1 : index
      %c0_240 = arith.constant 0 : index
      %c128_241 = arith.constant 128 : index
      %262 = vector.load %arg16[%c1_239, %c0_240, %c128_241] : memref<4x8x512xbf16, #tpu.memory_space<vmem>>, vector<1x8x128xbf16>
      %263 = vector.shape_cast %262 : vector<1x8x128xbf16> to vector<8x128xbf16>
      %264 = vector.shape_cast %261 : vector<8x128xbf16> to vector<1x8x128xbf16>
      tpu.vector_store %arg16[%c1_239, %c0_240, %c128_241], %264 {strides = array<i32>} : memref<4x8x512xbf16, #tpu.memory_space<vmem>>, vector<1x8x128xbf16>,
      %265 = vector.extract_strided_slice %234 {offsets = [48, 0], sizes = [8, 128], strides = [1, 1]} : vector<128x128xf32> to vector<8x128xf32>
      %266 = arith.truncf %265 : vector<8x128xf32> to vector<8x128xbf16>
      %c1_242 = arith.constant 1 : index
      %c0_243 = arith.constant 0 : index
      %c256_244 = arith.constant 256 : index
      %267 = vector.load %arg16[%c1_242, %c0_243, %c256_244] : memref<4x8x512xbf16, #tpu.memory_space<vmem>>, vector<1x8x128xbf16>
      %268 = vector.shape_cast %267 : vector<1x8x128xbf16> to vector<8x128xbf16>
      %269 = vector.shape_cast %266 : vector<8x128xbf16> to vector<1x8x128xbf16>
      tpu.vector_store %arg16[%c1_242, %c0_243, %c256_244], %269 {strides = array<i32>} : memref<4x8x512xbf16, #tpu.memory_space<vmem>>, vector<1x8x128xbf16>,
      %270 = vector.extract_strided_slice %234 {offsets = [56, 0], sizes = [8, 128], strides = [1, 1]} : vector<128x128xf32> to vector<8x128xf32>
      %271 = arith.truncf %270 : vector<8x128xf32> to vector<8x128xbf16>
      %c1_245 = arith.constant 1 : index
      %c0_246 = arith.constant 0 : index
      %c384_247 = arith.constant 384 : index
      %272 = vector.load %arg16[%c1_245, %c0_246, %c384_247] : memref<4x8x512xbf16, #tpu.memory_space<vmem>>, vector<1x8x128xbf16>
      %273 = vector.shape_cast %272 : vector<1x8x128xbf16> to vector<8x128xbf16>
      %274 = vector.shape_cast %271 : vector<8x128xbf16> to vector<1x8x128xbf16>
      tpu.vector_store %arg16[%c1_245, %c0_246, %c384_247], %274 {strides = array<i32>} : memref<4x8x512xbf16, #tpu.memory_space<vmem>>, vector<1x8x128xbf16>,
      %275 = vector.extract_strided_slice %234 {offsets = [64, 0], sizes = [8, 128], strides = [1, 1]} : vector<128x128xf32> to vector<8x128xf32>
      %276 = arith.truncf %275 : vector<8x128xf32> to vector<8x128xbf16>
      %c2_248 = arith.constant 2 : index
      %c0_249 = arith.constant 0 : index
      %c0_250 = arith.constant 0 : index
      %277 = vector.load %arg16[%c2_248, %c0_249, %c0_250] : memref<4x8x512xbf16, #tpu.memory_space<vmem>>, vector<1x8x128xbf16>
      %278 = vector.shape_cast %277 : vector<1x8x128xbf16> to vector<8x128xbf16>
      %279 = vector.shape_cast %276 : vector<8x128xbf16> to vector<1x8x128xbf16>
      tpu.vector_store %arg16[%c2_248, %c0_249, %c0_250], %279 {strides = array<i32>} : memref<4x8x512xbf16, #tpu.memory_space<vmem>>, vector<1x8x128xbf16>,
      %280 = vector.extract_strided_slice %234 {offsets = [72, 0], sizes = [8, 128], strides = [1, 1]} : vector<128x128xf32> to vector<8x128xf32>
      %281 = arith.truncf %280 : vector<8x128xf32> to vector<8x128xbf16>
      %c2_251 = arith.constant 2 : index
      %c0_252 = arith.constant 0 : index
      %c128_253 = arith.constant 128 : index
      %282 = vector.load %arg16[%c2_251, %c0_252, %c128_253] : memref<4x8x512xbf16, #tpu.memory_space<vmem>>, vector<1x8x128xbf16>
      %283 = vector.shape_cast %282 : vector<1x8x128xbf16> to vector<8x128xbf16>
      %284 = vector.shape_cast %281 : vector<8x128xbf16> to vector<1x8x128xbf16>
      tpu.vector_store %arg16[%c2_251, %c0_252, %c128_253], %284 {strides = array<i32>} : memref<4x8x512xbf16, #tpu.memory_space<vmem>>, vector<1x8x128xbf16>,
      %285 = vector.extract_strided_slice %234 {offsets = [80, 0], sizes = [8, 128], strides = [1, 1]} : vector<128x128xf32> to vector<8x128xf32>
      %286 = arith.truncf %285 : vector<8x128xf32> to vector<8x128xbf16>
      %c2_254 = arith.constant 2 : index
      %c0_255 = arith.constant 0 : index
      %c256_256 = arith.constant 256 : index
      %287 = vector.load %arg16[%c2_254, %c0_255, %c256_256] : memref<4x8x512xbf16, #tpu.memory_space<vmem>>, vector<1x8x128xbf16>
      %288 = vector.shape_cast %287 : vector<1x8x128xbf16> to vector<8x128xbf16>
      %289 = vector.shape_cast %286 : vector<8x128xbf16> to vector<1x8x128xbf16>
      tpu.vector_store %arg16[%c2_254, %c0_255, %c256_256], %289 {strides = array<i32>} : memref<4x8x512xbf16, #tpu.memory_space<vmem>>, vector<1x8x128xbf16>,
      %290 = vector.extract_strided_slice %234 {offsets = [88, 0], sizes = [8, 128], strides = [1, 1]} : vector<128x128xf32> to vector<8x128xf32>
      %291 = arith.truncf %290 : vector<8x128xf32> to vector<8x128xbf16>
      %c2_257 = arith.constant 2 : index
      %c0_258 = arith.constant 0 : index
      %c384_259 = arith.constant 384 : index
      %292 = vector.load %arg16[%c2_257, %c0_258, %c384_259] : memref<4x8x512xbf16, #tpu.memory_space<vmem>>, vector<1x8x128xbf16>
      %293 = vector.shape_cast %292 : vector<1x8x128xbf16> to vector<8x128xbf16>
      %294 = vector.shape_cast %291 : vector<8x128xbf16> to vector<1x8x128xbf16>
      tpu.vector_store %arg16[%c2_257, %c0_258, %c384_259], %294 {strides = array<i32>} : memref<4x8x512xbf16, #tpu.memory_space<vmem>>, vector<1x8x128xbf16>,
      %295 = vector.extract_strided_slice %234 {offsets = [96, 0], sizes = [8, 128], strides = [1, 1]} : vector<128x128xf32> to vector<8x128xf32>
      %296 = arith.truncf %295 : vector<8x128xf32> to vector<8x128xbf16>
      %c3_260 = arith.constant 3 : index
      %c0_261 = arith.constant 0 : index
      %c0_262 = arith.constant 0 : index
      %297 = vector.load %arg16[%c3_260, %c0_261, %c0_262] : memref<4x8x512xbf16, #tpu.memory_space<vmem>>, vector<1x8x128xbf16>
      %298 = vector.shape_cast %297 : vector<1x8x128xbf16> to vector<8x128xbf16>
      %299 = vector.shape_cast %296 : vector<8x128xbf16> to vector<1x8x128xbf16>
      tpu.vector_store %arg16[%c3_260, %c0_261, %c0_262], %299 {strides = array<i32>} : memref<4x8x512xbf16, #tpu.memory_space<vmem>>, vector<1x8x128xbf16>,
      %300 = vector.extract_strided_slice %234 {offsets = [104, 0], sizes = [8, 128], strides = [1, 1]} : vector<128x128xf32> to vector<8x128xf32>
      %301 = arith.truncf %300 : vector<8x128xf32> to vector<8x128xbf16>
      %c3_263 = arith.constant 3 : index
      %c0_264 = arith.constant 0 : index
      %c128_265 = arith.constant 128 : index
      %302 = vector.load %arg16[%c3_263, %c0_264, %c128_265] : memref<4x8x512xbf16, #tpu.memory_space<vmem>>, vector<1x8x128xbf16>
      %303 = vector.shape_cast %302 : vector<1x8x128xbf16> to vector<8x128xbf16>
      %304 = vector.shape_cast %301 : vector<8x128xbf16> to vector<1x8x128xbf16>
      tpu.vector_store %arg16[%c3_263, %c0_264, %c128_265], %304 {strides = array<i32>} : memref<4x8x512xbf16, #tpu.memory_space<vmem>>, vector<1x8x128xbf16>,
      %305 = vector.extract_strided_slice %234 {offsets = [112, 0], sizes = [8, 128], strides = [1, 1]} : vector<128x128xf32> to vector<8x128xf32>
      %306 = arith.truncf %305 : vector<8x128xf32> to vector<8x128xbf16>
      %c3_266 = arith.constant 3 : index
      %c0_267 = arith.constant 0 : index
      %c256_268 = arith.constant 256 : index
      %307 = vector.load %arg16[%c3_266, %c0_267, %c256_268] : memref<4x8x512xbf16, #tpu.memory_space<vmem>>, vector<1x8x128xbf16>
      %308 = vector.shape_cast %307 : vector<1x8x128xbf16> to vector<8x128xbf16>
      %309 = vector.shape_cast %306 : vector<8x128xbf16> to vector<1x8x128xbf16>
      tpu.vector_store %arg16[%c3_266, %c0_267, %c256_268], %309 {strides = array<i32>} : memref<4x8x512xbf16, #tpu.memory_space<vmem>>, vector<1x8x128xbf16>,
      %310 = vector.extract_strided_slice %234 {offsets = [120, 0], sizes = [8, 128], strides = [1, 1]} : vector<128x128xf32> to vector<8x128xf32>
      %311 = arith.truncf %310 : vector<8x128xf32> to vector<8x128xbf16>
      %c3_269 = arith.constant 3 : index
      %c0_270 = arith.constant 0 : index
      %c384_271 = arith.constant 384 : index
      %312 = vector.load %arg16[%c3_269, %c0_270, %c384_271] : memref<4x8x512xbf16, #tpu.memory_space<vmem>>, vector<1x8x128xbf16>
      %313 = vector.shape_cast %312 : vector<1x8x128xbf16> to vector<8x128xbf16>
      %314 = vector.shape_cast %311 : vector<8x128xbf16> to vector<1x8x128xbf16>
      tpu.vector_store %arg16[%c3_269, %c0_270, %c384_271], %314 {strides = array<i32>} : memref<4x8x512xbf16, #tpu.memory_space<vmem>>, vector<1x8x128xbf16>,
      %cst_272 = arith.constant 0.000000e+00 : f32
      %315 = vector.broadcast %cst_272 : f32 to vector<8x1024xf32>
      %c0_273 = arith.constant 0 : index
      %c0_274 = arith.constant 0 : index
      %316 = vector.load %arg9[%c0_273, %c0_274] : memref<1x1024xf32, #tpu.memory_space<vmem>>, vector<1x1024xf32>
      %317 = vector.broadcast %316 : vector<1x1024xf32> to vector<8x1024xf32>
      %318 = arith.addf %315, %317 : vector<8x1024xf32>
      %c0_275 = arith.constant 0 : index
      %c0_276 = arith.constant 0 : index
      %319 = vector.load %arg17[%c0_275, %c0_276] : memref<8x1024xf32, #tpu.memory_space<vmem>>, vector<8x1024xf32>
      tpu.vector_store %arg17[%c0_275, %c0_276], %318 {strides = array<i32>} : memref<8x1024xf32, #tpu.memory_space<vmem>>, vector<8x1024xf32>,
    } else {
    }
    %c0 = arith.constant 0 : index
    %c0_1 = arith.constant 0 : index
    %3 = vector.load %arg17[%c0, %c0_1] : memref<8x1024xf32, #tpu.memory_space<vmem>>, vector<8x1024xf32>
    %4 = arith.index_cast %arg0 : i32 to index
    %c0_2 = arith.constant 0 : index
    %c0_3 = arith.constant 0 : index
    %5 = vector.load %arg16[%4, %c0_2, %c0_3] : memref<4x8x512xbf16, #tpu.memory_space<vmem>>, vector<1x8x512xbf16>
    %6 = vector.shape_cast %5 : vector<1x8x512xbf16> to vector<8x512xbf16>
    %c0_4 = arith.constant 0 : index
    %c0_5 = arith.constant 0 : index
    %c0_6 = arith.constant 0 : index
    %7 = vector.load %arg8[%c0_4, %c0_5, %c0_6] : memref<1x512x1024xbf16, #tpu.memory_space<vmem>>, vector<1x512x1024xbf16>
    %8 = vector.shape_cast %7 : vector<1x512x1024xbf16> to vector<512x1024xbf16>
    %cst = arith.constant dense<0.000000e+00> : vector<8x1024xf32>
    %9 = tpu.matmul %6, %8, %cst {dimension_numbers = #tpu.dot_dimension_numbers<[1], [0], [0], [1], [0, 0, 1, 1], [], []>} : vector<8x512xbf16>, vector<512x1024xbf16>, vector<8x1024xf32> -> vector<8x1024xf32>
    %10 = arith.addf %3, %9 : vector<8x1024xf32>
    %c0_7 = arith.constant 0 : index
    %c0_8 = arith.constant 0 : index
    %11 = vector.load %arg17[%c0_7, %c0_8] : memref<8x1024xf32, #tpu.memory_space<vmem>>, vector<8x1024xf32>
    tpu.vector_store %arg17[%c0_7, %c0_8], %10 {strides = array<i32>} : memref<8x1024xf32, #tpu.memory_space<vmem>>, vector<8x1024xf32>,
    %c3_i32 = arith.constant 3 : i32
    %12 = arith.cmpi eq, %arg0, %c3_i32 : i32
    %13 = arith.extui %12 : i1 to i32
    %c0_i32_9 = arith.constant 0 : i32
    %14 = arith.cmpi ne, %13, %c0_i32_9 : i32
    scf.if %14 {
      %c0_10 = arith.constant 0 : index
      %c0_11 = arith.constant 0 : index
      %15 = vector.load %arg17[%c0_10, %c0_11] : memref<8x1024xf32, #tpu.memory_space<vmem>>, vector<8x1024xf32>
      %cst_12 = arith.constant dense<0.000000e+00> : vector<1024xf32>
      %16 = vector.multi_reduction <add>, %15, %cst_12 [0] : vector<8x1024xf32> to vector<1024xf32>
      %17 = vector.shape_cast %16 : vector<1024xf32> to vector<1x1024xf32>
      %cst_13 = arith.constant 8.000000e+00 : f32
      %18 = vector.broadcast %cst_13 : f32 to vector<1x1024xf32>
      %19 = arith.divf %17, %18 : vector<1x1024xf32>
      %20 = vector.broadcast %19 : vector<1x1024xf32> to vector<8x1024xf32>
      %21 = arith.subf %15, %20 : vector<8x1024xf32>
      %22 = arith.mulf %21, %21 : vector<8x1024xf32>
      %cst_14 = arith.constant dense<0.000000e+00> : vector<1024xf32>
      %23 = vector.multi_reduction <add>, %22, %cst_14 [0] : vector<8x1024xf32> to vector<1024xf32>
      %24 = vector.shape_cast %23 : vector<1024xf32> to vector<1x1024xf32>
      %cst_15 = arith.constant 8.000000e+00 : f32
      %25 = vector.broadcast %cst_15 : f32 to vector<1x1024xf32>
      %26 = arith.divf %24, %25 : vector<1x1024xf32>
      %27 = vector.broadcast %19 : vector<1x1024xf32> to vector<8x1024xf32>
      %28 = arith.subf %15, %27 : vector<8x1024xf32>
      %cst_16 = arith.constant 9.99999974E-6 : f32
      %29 = vector.broadcast %cst_16 : f32 to vector<1x1024xf32>
      %30 = arith.addf %26, %29 : vector<1x1024xf32>
      %31 = math.rsqrt %30 : vector<1x1024xf32>
      %32 = vector.broadcast %31 : vector<1x1024xf32> to vector<8x1024xf32>
      %33 = arith.mulf %28, %32 : vector<8x1024xf32>
      %c0_17 = arith.constant 0 : index
      %c0_18 = arith.constant 0 : index
      %34 = vector.load %arg10[%c0_17, %c0_18] : memref<1x1024xf32, #tpu.memory_space<vmem>>, vector<1x1024xf32>
      %35 = vector.broadcast %34 : vector<1x1024xf32> to vector<8x1024xf32>
      %36 = arith.mulf %33, %35 : vector<8x1024xf32>
      %c0_19 = arith.constant 0 : index
      %c0_20 = arith.constant 0 : index
      %37 = vector.load %arg11[%c0_19, %c0_20] : memref<1x1024xf32, #tpu.memory_space<vmem>>, vector<1x1024xf32>
      %38 = vector.broadcast %37 : vector<1x1024xf32> to vector<8x1024xf32>
      %39 = arith.addf %36, %38 : vector<8x1024xf32>
      %cst_21 = arith.constant 2.000000e-01 : f32
      %40 = vector.broadcast %cst_21 : f32 to vector<8x1024xf32>
      %41 = arith.mulf %40, %39 : vector<8x1024xf32>
      %42 = arith.maximumf %39, %41 : vector<8x1024xf32>
      %43 = arith.truncf %42 : vector<8x1024xf32> to vector<8x1024xbf16>
      %c0_22 = arith.constant 0 : index
      %c0_23 = arith.constant 0 : index
      %44 = vector.load %arg12[%c0_22, %c0_23] : memref<1024x128xbf16, #tpu.memory_space<vmem>>, vector<1024x128xbf16>
      %cst_24 = arith.constant dense<0.000000e+00> : vector<8x128xf32>
      %45 = tpu.matmul %43, %44, %cst_24 {dimension_numbers = #tpu.dot_dimension_numbers<[1], [0], [0], [1], [0, 0, 1, 1], [], []>} : vector<8x1024xbf16>, vector<1024x128xbf16>, vector<8x128xf32> -> vector<8x128xf32>
      %c0_25 = arith.constant 0 : index
      %c0_26 = arith.constant 0 : index
      %46 = vector.load %arg13[%c0_25, %c0_26] : memref<1x128xf32, #tpu.memory_space<vmem>>, vector<1x128xf32>
      %47 = vector.broadcast %46 : vector<1x128xf32> to vector<8x128xf32>
      %48 = arith.addf %45, %47 : vector<8x128xf32>
      %c0_27 = arith.constant 0 : index
      %c0_28 = arith.constant 0 : index
      %49 = vector.load %arg14[%c0_27, %c0_28] : memref<8x128xf32, #tpu.memory_space<vmem>>, vector<8x128xf32>
      tpu.vector_store %arg14[%c0_27, %c0_28], %48 {strides = array<i32>} : memref<8x128xf32, #tpu.memory_space<vmem>>, vector<8x128xf32>,
    } else {
    }
    return
  }
  func.func @transform_0(%arg0: i32) -> (i32, i32) {
    %c0_i32 = arith.constant 0 : i32
    %c0_i32_0 = arith.constant 0 : i32
    %c0_i32_1 = arith.constant 0 : i32
    return %c0_i32, %c0_i32_0 : i32, i32
  }
  func.func @transform_1(%arg0: i32) -> (i32, i32) {
    %c0_i32 = arith.constant 0 : i32
    %c0_i32_0 = arith.constant 0 : i32
    %c0_i32_1 = arith.constant 0 : i32
    return %c0_i32, %c0_i32_0 : i32, i32
  }
  func.func @transform_2(%arg0: i32) -> (i32, i32) {
    %c0_i32 = arith.constant 0 : i32
    %c0_i32_0 = arith.constant 0 : i32
    %c0_i32_1 = arith.constant 0 : i32
    return %c0_i32, %c0_i32_0 : i32, i32
  }
  func.func @transform_3(%arg0: i32) -> (i32, i32, i32) {
    %c0_i32 = arith.constant 0 : i32
    %c0_i32_0 = arith.constant 0 : i32
    %c0_i32_1 = arith.constant 0 : i32
    %c0_i32_2 = arith.constant 0 : i32
    return %c0_i32, %c0_i32_0, %c0_i32_1 : i32, i32, i32
  }
  func.func @transform_4(%arg0: i32) -> (i32, i32) {
    %c0_i32 = arith.constant 0 : i32
    %c0_i32_0 = arith.constant 0 : i32
    %c0_i32_1 = arith.constant 0 : i32
    return %c0_i32, %c0_i32_0 : i32, i32
  }
  func.func @transform_5(%arg0: i32) -> (i32, i32) {
    %c0_i32 = arith.constant 0 : i32
    %c0_i32_0 = arith.constant 0 : i32
    %c0_i32_1 = arith.constant 0 : i32
    return %c0_i32, %c0_i32_0 : i32, i32
  }
  func.func @transform_6(%arg0: i32) -> (i32, i32) {
    %c0_i32 = arith.constant 0 : i32
    %c0_i32_0 = arith.constant 0 : i32
    %c0_i32_1 = arith.constant 0 : i32
    return %c0_i32, %c0_i32_0 : i32, i32
  }
  func.func @transform_7(%arg0: i32) -> (i32, i32, i32) {
    %c0_i32 = arith.constant 0 : i32
    %c0_i32_0 = arith.constant 0 : i32
    %c0_i32_1 = arith.constant 0 : i32
    return %arg0, %c0_i32, %c0_i32_0 : i32, i32, i32
  }
  func.func @transform_8(%arg0: i32) -> (i32, i32) {
    %c0_i32 = arith.constant 0 : i32
    %c0_i32_0 = arith.constant 0 : i32
    %c0_i32_1 = arith.constant 0 : i32
    return %c0_i32, %c0_i32_0 : i32, i32
  }
  func.func @transform_9(%arg0: i32) -> (i32, i32) {
    %c0_i32 = arith.constant 0 : i32
    %c0_i32_0 = arith.constant 0 : i32
    %c0_i32_1 = arith.constant 0 : i32
    return %c0_i32, %c0_i32_0 : i32, i32
  }
  func.func @transform_10(%arg0: i32) -> (i32, i32) {
    %c0_i32 = arith.constant 0 : i32
    %c0_i32_0 = arith.constant 0 : i32
    %c0_i32_1 = arith.constant 0 : i32
    return %c0_i32, %c0_i32_0 : i32, i32
  }
  func.func @transform_11(%arg0: i32) -> (i32, i32) {
    %c0_i32 = arith.constant 0 : i32
    %c0_i32_0 = arith.constant 0 : i32
    %c0_i32_1 = arith.constant 0 : i32
    return %c0_i32, %c0_i32_0 : i32, i32
  }
  func.func @transform_12(%arg0: i32) -> (i32, i32) {
    %c0_i32 = arith.constant 0 : i32
    %c0_i32_0 = arith.constant 0 : i32
    %c0_i32_1 = arith.constant 0 : i32
    return %c0_i32, %c0_i32_0 : i32, i32
  }
  func.func @transform_13(%arg0: i32) -> (i32, i32) {
    %c0_i32 = arith.constant 0 : i32
    %c0_i32_0 = arith.constant 0 : i32
    %c0_i32_1 = arith.constant 0 : i32
    return %c0_i32, %c0_i32_0 : i32, i32
  }
}

</mosaic_0001>

<bundles_post_ra>
// kernel: infogan_discriminator_classifier_forward.1
= control target key start
LH: loop header
LB: loop body
LE: loop exit
PB: predicated region body
PF: predicated region fallthrough
CT: control target
= control target key end

     0   :  { %18 = vsyncpa [#allocation6], 0  ;;  %s9421_s25 = smov 0   ;;  %s11636_s0 = inlined_call_operand.vmem [shape: bf16[512,128], index: 0, kind: input, shape index: {}]   ;;  %s11637_s1 = inlined_call_operand.vmem [shape: bf16[128,64], index: 1, kind: input, shape index: {}]   ;;  %s11638_s2 = inlined_call_operand.vmem [shape: f32[1,64], index: 2, kind: input, shape index: {}]   ;;  %s11639_s3 = inlined_call_operand.vmem [shape: bf16[16,64,128], index: 3, kind: input, shape index: {}]   ;;  %s11640_s4 = inlined_call_operand.vmem [shape: f32[1,128], index: 4, kind: input, shape index: {}]   ;;  %s11641_s5 = inlined_call_operand.vmem [shape: f32[1,128], index: 5, kind: input, shape index: {}]   ;;  %s11642_s6 = inlined_call_operand.vmem [shape: f32[1,128], index: 6, kind: input, shape index: {}]   ;;  %s11643_s7 = inlined_call_operand.vmem [shape: bf16[4,512,1024], index: 7, kind: input, shape index: {}]   ;;  %s11644_s8 = inlined_call_operand.vmem [shape: f32[1,1024], index: 8, kind: input, shape index: {}]   ;;  %s11645_s9 = inlined_call_operand.vmem [shape: f32[1,1024], index: 9, kind: input, shape index: {}]   ;;  %s11646_s10 = inlined_call_operand.vmem [shape: f32[1,1024], index: 10, kind: input, shape index: {}]   ;;  %s11647_s11 = inlined_call_operand.vmem [shape: bf16[1024,128], index: 11, kind: input, shape index: {}]   ;;  %s11648_s12 = inlined_call_operand.vmem [shape: f32[1,128], index: 12, kind: input, shape index: {}]   ;;  %s11649_s13 = inlined_call_operand.hbm [shape: f32[8,128], index: 13, kind: output, shape index: {}]  }
   0x1 LB: > { %s9427_s26 = sadd.s32 4294967295, %s9347_s25   ;;  %p7577_p0 = scmp.ge.s32.totalorder %s9347_s25, 1  ;;  %s9347_s25 = sphi %s9421_s25, %s24_s25  }
   0x2   : > { %p383_p1 = scmp.lt.s32.totalorder %s9347_s25, 5 }
   0x4   : > { %p384_p2 = pnand %p7577_p0, %p383_p1 }
   0x5   : > { %p422_p3 = scmp.lt.s32.totalorder (!%p384_p2), %s9427_s26, 3  ;;  %p7580_p4 = scmp.ne.s32.totalorder (!%p384_p2), %s9427_s26, 0 }
   0x6   : > { %387 = sbr.rel (%p384_p2) target bundleno = 1713 (0x6b1), region = 72 }
   0xb   : > { %s423_s27 = scalar_select %p422_p3, %s9427_s26, 3 }
   0xc   : > { %431 = sbr.rel (%p7580_p4) target bundleno = 925 (0x39d), region = 76 }
   0xd   : > { %s8269_s28 = sshll.u32 %s423_s27, 11 }
   0xe   : > { %s9436_s14 = scalar_lea.vmem %s11643_s7, %s8269_s28 }
  0x11   : > { %v9123_v0 = vld [vmem:[%s11637_s1 + $0x38] sm:$0xff]   ;;  %v9124_v1 = vld [vmem:[%s11637_s1 + $0x30] sm:$0xff]   ;;  %v9125_v2 = vld [vmem:[%s11637_s1 + $0x28] sm:$0xff]   ;;  %vm1176_vm0 = vcmask 523264   ;;  %v9349_v29 = vmov 0.0  }
  0x12   : > { %8635 = vmatprep.subr.bf16.mxu0 %v9123_v0  ;;  %v9126_v3 = vld [vmem:[%s11637_s1 + $0x20] sm:$0xff]   ;;  %v9127_v5 = vld [vmem:[%s11637_s1 + $0x18] sm:$0xff]   ;;  %v9128_v6 = vld [vmem:[%s11637_s1 + $0x10] sm:$0xff]   ;;  %1188 = vst.msk [vmem:[#allocation2 + $0xc8] sm:$0xff] %vm1176_vm0, %v9349_v29 }
  0x13   : > { %8636 = vmatpush3.bf16.msra.mxu0 %v9123_v0  ;;  %v9131_v4 = vld [vmem:[%s11636_s0] sm:$0xff]   ;;  %v9129_v7 = vld [vmem:[%s11637_s1 + $0x8] sm:$0xff]   ;;  %v9133_v10 = vld [vmem:[%s11636_s0 + $0x10] sm:$0xff]   ;;  %1189 = vst.msk [vmem:[#allocation2 + $0xd0] sm:$0xff] %vm1176_vm0, %v9349_v29 }
  0x14   : > { %8637 = vmatprep.subr.bf16.mxu0 %v9124_v1  ;;  %8651 = vmatprep.mubr.bf16.mxu0 %v9131_v4  ;;  %v9130_v8 = vld [vmem:[%s11637_s1] sm:$0xff]   ;;  %v9132_v9 = vld [vmem:[%s11636_s0 + $0x8] sm:$0xff]   ;;  %v9134_v11 = vld [vmem:[%s11636_s0 + $0x18] sm:$0xff]   ;;  %1177 = vst.msk [vmem:[#allocation2] sm:$0xff] %vm1176_vm0, %v9349_v29 }
  0x15   : > { %v9135_v12 = vld [vmem:[%s11636_s0 + $0x20] sm:$0xff]   ;;  %v9136_v13 = vld [vmem:[%s11636_s0 + $0x28] sm:$0xff]   ;;  %v9137_v14 = vld [vmem:[%s11636_s0 + $0x30] sm:$0xff]   ;;  %1178 = vst.msk [vmem:[#allocation2 + $0x8] sm:$0xff] %vm1176_vm0, %v9349_v29 }
  0x16   : > { %v9138_v15 = vld [vmem:[%s11636_s0 + $0x38] sm:$0xff]   ;;  %v9139_v16 = vld [vmem:[%s11636_s0 + $0x40] sm:$0xff]   ;;  %v9140_v17 = vld [vmem:[%s11636_s0 + $0x48] sm:$0xff]   ;;  %1179 = vst.msk [vmem:[#allocation2 + $0x10] sm:$0xff] %vm1176_vm0, %v9349_v29 }
  0x17   : > { %8638 = vmatpush3.bf16.msra.mxu0 %v9124_v1  ;;  %v9141_v18 = vld [vmem:[%s11636_s0 + $0x50] sm:$0xff]   ;;  %v9142_v19 = vld [vmem:[%s11636_s0 + $0x58] sm:$0xff]   ;;  %v9143_v20 = vld [vmem:[%s11636_s0 + $0x60] sm:$0xff]   ;;  %1180 = vst.msk [vmem:[#allocation2 + $0x18] sm:$0xff] %vm1176_vm0, %v9349_v29 }
  0x18   : > { %8639 = vmatprep.subr.bf16.mxu0 %v9125_v2  ;;  %v9144_v21 = vld [vmem:[%s11636_s0 + $0x68] sm:$0xff]   ;;  %v9145_v22 = vld [vmem:[%s11636_s0 + $0x70] sm:$0xff]   ;;  %v9146_v23 = vld [vmem:[%s11636_s0 + $0x78] sm:$0xff]   ;;  %1181 = vst.msk [vmem:[#allocation2 + $0x20] sm:$0xff] %vm1176_vm0, %v9349_v29 }
  0x19   : > { %v9147_v24 = vld [vmem:[%s11636_s0 + $0x80] sm:$0xff]   ;;  %v9148_v25 = vld [vmem:[%s11636_s0 + $0x88] sm:$0xff]   ;;  %v9149_v26 = vld [vmem:[%s11636_s0 + $0x90] sm:$0xff]   ;;  %1183 = vst.msk [vmem:[#allocation2 + $0x28] sm:$0xff] %vm1176_vm0, %v9349_v29 }
  0x1a   : > { %v9150_v27 = vld [vmem:[%s11636_s0 + $0x98] sm:$0xff]   ;;  %v9151_v28 = vld [vmem:[%s11636_s0 + $0xa0] sm:$0xff]   ;;  %1184 = vst.msk [vmem:[#allocation2 + $0x50] sm:$0xff] %vm1176_vm0, %v9349_v29  ;;  %1185 = vst.msk [vmem:[#allocation2 + $0x78] sm:$0xff] %vm1176_vm0, %v9349_v29 }
  0x1b   : > { %8640 = vmatpush3.bf16.msra.mxu0 %v9125_v2  ;;  %1186 = vst.msk [vmem:[#allocation2 + $0xa0] sm:$0xff] %vm1176_vm0, %v9349_v29  ;;  %1190 = vst.msk [vmem:[#allocation2 + $0xd8] sm:$0xff] %vm1176_vm0, %v9349_v29  ;;  %v9152_v30 = vld [vmem:[%s11636_s0 + $0xa8] sm:$0xff]   ;;  %v9153_v31 = vld [vmem:[%s11636_s0 + $0xb0] sm:$0xff]  }
  0x1c   : > { %8641 = vmatprep.subr.bf16.mxu0 %v9126_v3  ;;  %1191 = vst.msk [vmem:[#allocation2 + $0xe0] sm:$0xff] %vm1176_vm0, %v9349_v29  ;;  %1192 = vst.msk [vmem:[#allocation2 + $0xe8] sm:$0xff] %vm1176_vm0, %v9349_v29  ;;  %v9154_v32 = vld [vmem:[%s11636_s0 + $0xb8] sm:$0xff]   ;;  %v9155_v33 = vld [vmem:[%s11636_s0 + $0xc0] sm:$0xff]  }
  0x1d   : > { %1194 = vst.msk [vmem:[#allocation2 + $0x110] sm:$0xff] %vm1176_vm0, %v9349_v29  ;;  %1195 = vst.msk [vmem:[#allocation2 + $0x138] sm:$0xff] %vm1176_vm0, %v9349_v29  ;;  %v9163_v34 = vld [vmem:[%s11639_s3 + $0x38] sm:$0xff]   ;;  %v9156_v35 = vld [vmem:[%s11636_s0 + $0xc8] sm:$0xff]  }
  0x1e   : > { %1196 = vst.msk [vmem:[#allocation2 + $0x160] sm:$0xff] %vm1176_vm0, %v9349_v29  ;;  %1197 = vst.msk [vmem:[#allocation2 + $0x188] sm:$0xff] %vm1176_vm0, %v9349_v29  ;;  %8715 = vmatprep.subr.bf16.mxu1 %v9163_v34  ;;  %v9164_v36 = vld [vmem:[%s11639_s3 + $0x30] sm:$0xff]   ;;  %v9165_v38 = vld [vmem:[%s11639_s3 + $0x28] sm:$0xff]  }
  0x1f   : > { %8642 = vmatpush3.bf16.msra.mxu0 %v9126_v3  ;;  %1199 = vst.msk [vmem:[#allocation2 + $0x230] sm:$0xff] %vm1176_vm0, %v9349_v29  ;;  %1200 = vst.msk [vmem:[#allocation2 + $0x238] sm:$0xff] %vm1176_vm0, %v9349_v29  ;;  %8716 = vmatpush3.bf16.msra.mxu1 %v9163_v34  ;;  %v9157_v37 = vld [vmem:[%s11636_s0 + $0xd0] sm:$0xff]   ;;  %v9158_v39 = vld [vmem:[%s11636_s0 + $0xd8] sm:$0xff]  }
  0x20   : > { %8643 = vmatprep.subr.bf16.mxu0 %v9127_v5  ;;  %1201 = vst.msk [vmem:[#allocation2 + $0x240] sm:$0xff] %vm1176_vm0, %v9349_v29  ;;  %1202 = vst.msk [vmem:[#allocation2 + $0x248] sm:$0xff] %vm1176_vm0, %v9349_v29  ;;  %8717 = vmatprep.subr.bf16.mxu1 %v9164_v36  ;;  %v9166_v40 = vld [vmem:[%s11639_s3 + $0x20] sm:$0xff]   ;;  %v1320_v42 = vld [vmem:[#allocation2 + $0xc8] sm:$0xff] }
  0x21   : > { %1203 = vst.msk [vmem:[#allocation2 + $0x250] sm:$0xff] %vm1176_vm0, %v9349_v29  ;;  %1205 = vst.msk [vmem:[#allocation2 + $0x190] sm:$0xff] %vm1176_vm0, %v9349_v29  ;;  %v9159_v41 = vld [vmem:[%s11636_s0 + $0xe0] sm:$0xff]   ;;  %v9602_v43 = vld [vmem:[#allocation2 + $0xd0] sm:$0xff] }
  0x22   : > { %1206 = vst.msk [vmem:[#allocation2 + $0x1b8] sm:$0xff] %vm1176_vm0, %v9349_v29  ;;  %1207 = vst.msk [vmem:[#allocation2 + $0x1e0] sm:$0xff] %vm1176_vm0, %v9349_v29  ;;  %v1336_v44 = vpack.c.bf16 %v9602_v43, %v1320_v42  ;;  %v9605_v45 = vld [vmem:[#allocation2 + $0xd8] sm:$0xff]  ;;  %v9160_v48 = vld [vmem:[%s11636_s0 + $0xe8] sm:$0xff]  }
  0x23   : > { %8644 = vmatpush3.bf16.msra.mxu0 %v9127_v5  ;;  %1208 = vst.msk [vmem:[#allocation2 + $0x208] sm:$0xff] %vm1176_vm0, %v9349_v29  ;;  %1211 = vst.msk [vmem:[#allocation2 + $0x2f8] sm:$0xff] %vm1176_vm0, %v9349_v29  ;;  %8718 = vmatpush3.bf16.msra.mxu1 %v9164_v36  ;;  %v9607_v46 = vld [vmem:[#allocation2 + $0xe0] sm:$0xff]  ;;  %v9161_v49 = vld [vmem:[%s11636_s0 + $0xf0] sm:$0xff]  }
  0x24   : > { %8645 = vmatprep.subr.bf16.mxu0 %v9128_v6  ;;  %1212 = vst.msk [vmem:[#allocation2 + $0x300] sm:$0xff] %vm1176_vm0, %v9349_v29  ;;  %1213 = vst.msk [vmem:[#allocation2 + $0x308] sm:$0xff] %vm1176_vm0, %v9349_v29  ;;  %8719 = vmatprep.subr.bf16.mxu1 %v9165_v38  ;;  %v1337_v47 = vpack.c.bf16 %v9607_v46, %v9605_v45  ;;  %v9162_v50 = vld [vmem:[%s11636_s0 + $0xf8] sm:$0xff]   ;;  %v9168_v52 = vld [vmem:[%s11639_s3 + $0x10] sm:$0xff]  }
  0x25   : > { %1214 = vst.msk [vmem:[#allocation2 + $0x310] sm:$0xff] %vm1176_vm0, %v9349_v29  ;;  %1215 = vst.msk [vmem:[#allocation2 + $0x318] sm:$0xff] %vm1176_vm0, %v9349_v29  ;;  %8723 = vmatprep.mubr.msk.bf16.mxu1 %vm1176_vm0, %v1336_v44  ;;  %v9167_v51 = vld [vmem:[%s11639_s3 + $0x18] sm:$0xff]   ;;  %v9170_v54 = vld [vmem:[%s11639_s3 + $0x8] sm:$0xff]  }
  0x26   : > { %1217 = vst.msk [vmem:[#allocation2 + $0x278] sm:$0xff] %vm1176_vm0, %v9349_v29  ;;  %1218 = vst.msk [vmem:[#allocation2 + $0x2a0] sm:$0xff] %vm1176_vm0, %v9349_v29  ;;  %v9169_v53 = vld [vmem:[%s11639_s3 + $0xb8] sm:$0xff]   ;;  %v9171_v55 = vld [vmem:[%s11639_s3] sm:$0xff]  }
  0x27   : > { %8646 = vmatpush3.bf16.msra.mxu0 %v9128_v6  ;;  %1219 = vst.msk [vmem:[#allocation2 + $0x2c8] sm:$0xff] %vm1176_vm0, %v9349_v29  ;;  %1220 = vst.msk [vmem:[#allocation2 + $0x2f0] sm:$0xff] %vm1176_vm0, %v9349_v29  ;;  %8720 = vmatpush3.bf16.msra.mxu1 %v9165_v38  ;;  %v9640_v56 = vld [vmem:[%s11639_s3 + $0x58] sm:$0xff]   ;;  %v9174_v57 = vld [vmem:[%s11639_s3 + $0xb0] sm:$0xff]  }
  0x28   : > { %8647 = vmatprep.subr.bf16.mxu0 %v9129_v7  ;;  %1182 = vst.msk [vmem:[#allocation2] sm:$0xff] %vm1176_vm0, %v9349_v29  ;;  %1193 = vst.msk [vmem:[#allocation2 + $0xe8] sm:$0xff] %vm1176_vm0, %v9349_v29  ;;  %8721 = vmatprep.subr.bf16.mxu1 %v9166_v40  ;;  %v9178_v58 = vld [vmem:[%s11639_s3 + $0xa8] sm:$0xff]   ;;  %v9179_v59 = vld [vmem:[%s11639_s3 + $0xa0] sm:$0xff]  }
  0x29   : > { %1209 = vst.msk [vmem:[#allocation2 + $0x230] sm:$0xff] %vm1176_vm0, %v9349_v29  ;;  %1221 = vst.msk [vmem:[#allocation2 + $0x318] sm:$0xff] %vm1176_vm0, %v9349_v29  ;;  %v9655_v60 = vld [vmem:[%s11638_s2] ss:$0 sm:$0xff] }
  0x2b   : > { %8648 = vmatpush3.bf16.msra.mxu0 %v9129_v7  ;;  %8722 = vmatpush3.bf16.msra.mxu1 %v9166_v40 }
  0x2c   : > { %8649 = vmatprep.subr.bf16.mxu0 %v9130_v8  ;;  %8739 = vmatprep.subr.bf16.mxu1 %v9167_v51 }
  0x2e   : > { %8724 = vmatmul.mubr.msk.bf16.vlgmr.msra.gmra.mxu1 %vm1176_vm0, %v1337_v47 }
  0x2f   : > { %8650 = vmatpush3.bf16.msra.mxu0 %v9130_v8  ;;  %8740 = vmatpush3.bf16.msra.mxu1 %v9167_v51 }
  0x30   : > { %8741 = vmatprep.subr.bf16.mxu1 %v9168_v52  ;;  %8835 = vmatprep.subr.bf16.mxu0 %v9169_v53 }
  0x32   : > { %8652 = vmatmul.mubr.bf16.vlgmr.msra.gmra.mxu0 %v9132_v9 }
  0x33   : > { %8655 = vmatprep.mubr.bf16.mxu0 %v9133_v10  ;;  %8742 = vmatpush3.bf16.msra.mxu1 %v9168_v52  ;;  %v9665_v10 = vld [vmem:[%s11639_s3 + $0xf8] sm:$0xff]  }
  0x34   : > { %8836 = vmatpush3.bf16.msra.mxu0 %v9169_v53  ;;  %8743 = vmatprep.subr.bf16.mxu1 %v9170_v54 }
  0x35   : > { %8837 = vmatprep.subr.bf16.mxu0 %v9174_v57 }
  0x37   : > { %8744 = vmatpush3.bf16.msra.mxu1 %v9170_v54 }
  0x38   : > { %8745 = vmatprep.subr.bf16.mxu1 %v9171_v55  ;;  %8838 = vmatpush3.bf16.msra.mxu0 %v9174_v57 }
  0x39   : > { %8839 = vmatprep.subr.bf16.mxu0 %v9178_v58 }
  0x3a   : > { %8656 = vmatmul.mubr.bf16.gmra.mxu0 %v9134_v11 }
  0x3b   : > { %8659 = vmatprep.mubr.bf16.mxu0 %v9135_v12  ;;  %8746 = vmatpush3.bf16.msra.mxu1 %v9171_v55 }
  0x3c   : > { %8763 = vmatprep.subr.bf16.mxu1 %v9640_v56  ;;  %8840 = vmatpush3.bf16.msra.mxu0 %v9178_v58 }
  0x3d   : > { %8841 = vmatprep.subr.bf16.mxu0 %v9179_v59 }
  0x40   : > { %8842 = vmatpush3.bf16.msra.mxu0 %v9179_v59 }
  0x41   : > { %8883 = vmatprep.subr.bf16.mxu0 %v9665_v10 }
  0x42   : > { %8660 = vmatmul.mubr.bf16.gmra.mxu0 %v9136_v13 }
  0x43   : > { %8663 = vmatprep.mubr.bf16.mxu0 %v9137_v14 }
  0x4a   : > { %8664 = vmatmul.mubr.bf16.gmra.mxu0 %v9138_v15 }
  0x4b   : > { %8667 = vmatprep.mubr.bf16.mxu0 %v9139_v16 }
  0x52   : > { %8668 = vmatmul.mubr.bf16.gmra.mxu0 %v9140_v17 }
  0x53   : > { %8671 = vmatprep.mubr.bf16.mxu0 %v9141_v18 }
  0x5a   : > { %8672 = vmatmul.mubr.bf16.gmra.mxu0 %v9142_v19 }
  0x5b   : > { %8675 = vmatprep.mubr.bf16.mxu0 %v9143_v20 }
  0x62   : > { %8676 = vmatmul.mubr.bf16.gmra.mxu0 %v9144_v21 }
  0x63   : > { %8679 = vmatprep.mubr.bf16.mxu0 %v9145_v22 }
  0x6a   : > { %8680 = vmatmul.mubr.bf16.gmra.mxu0 %v9146_v23 }
  0x6b   : > { %8683 = vmatprep.mubr.bf16.mxu0 %v9147_v24 }
  0x72   : > { %8684 = vmatmul.mubr.bf16.gmra.mxu0 %v9148_v25 }
  0x73   : > { %8687 = vmatprep.mubr.bf16.mxu0 %v9149_v26 }
  0x7a   : > { %8688 = vmatmul.mubr.bf16.gmra.mxu0 %v9150_v27 }
  0x7b   : > { %8691 = vmatprep.mubr.bf16.mxu0 %v9151_v28 }
  0x82   : > { %8692 = vmatmul.mubr.bf16.gmra.mxu0 %v9152_v30 }
  0x83   : > { %8695 = vmatprep.mubr.bf16.mxu0 %v9153_v31 }
  0x8a   : > { %8696 = vmatmul.mubr.bf16.gmra.mxu0 %v9154_v32 }
  0x8b   : > { %8699 = vmatprep.mubr.bf16.mxu0 %v9155_v33 }
  0x92   : > { %8700 = vmatmul.mubr.bf16.gmra.mxu0 %v9156_v35 }
  0x93   : > { %8703 = vmatprep.mubr.bf16.mxu0 %v9157_v37 }
  0x9a   : > { %8704 = vmatmul.mubr.bf16.gmra.mxu0 %v9158_v39 }
  0x9b   : > { %8707 = vmatprep.mubr.bf16.mxu0 %v9159_v41 }
  0xa2   : > { %8708 = vmatmul.mubr.bf16.gmra.mxu0 %v9160_v48 }
  0xa3   : > { %8711 = vmatprep.mubr.bf16.mxu0 %v9161_v49 }
  0xaa   : > { %8712 = vmatmul.mubr.bf16.gmra.mxu0 %v9162_v50 }
  0xf2   : > { %v8653_v61 = vpop.f32.mrf.mxu0 }
  0xf3   : > { %v802_v62 = vadd.f32 %v8653_v61, %v9655_v60 }
  0xf4   : > { %v793_v63 = vpop.f32.mrf.mxu0 }
  0xf5   : > { %v1050_v0 = vmul.f32 0.2, %v802_v62  ;;  %v794_v1 = vadd.f32 %v9655_v60, %v793_v63 }
  0xf6   : > { %v8654_v2 = vpop.f32.mrf.mxu0 }
  0xf7   : > { %v1114_v3 = vmax.f32 %v802_v62, %v1050_v0  ;;  %v1048_v4 = vmul.f32 0.2, %v794_v1  ;;  %v805_v5 = vadd.f32 %v8654_v2, %v9655_v60 }
  0xf8   : > { %v796_v6 = vpop.f32.mrf.mxu0 }
  0xf9   : > { %1225 = vst.msk [vmem:[#allocation2 + $0x40] sm:$0xff] %vm1176_vm0, %v1114_v3  ;;  %v1112_v7 = vmax.f32 %v794_v1, %v1048_v4  ;;  %v1051_v8 = vmul.f32 0.2, %v805_v5  ;;  %v797_v9 = vadd.f32 %v9655_v60, %v796_v6 }
  0xfa   : > { %v8657_v11 = vpop.f32.mrf.mxu0 }
  0xfb   : > { %1223 = vst.msk [vmem:[#allocation2 + $0x30] sm:$0xff] %vm1176_vm0, %v1112_v7  ;;  %v1115_v12 = vmax.f32 %v805_v5, %v1051_v8  ;;  %v1049_v13 = vmul.f32 0.2, %v797_v9  ;;  %v818_v14 = vadd.f32 %v8657_v11, %v9655_v60 }
  0xfc   : > { %v809_v15 = vpop.f32.mrf.mxu0 }
  0xfd   : > { %1226 = vst.msk [vmem:[#allocation2 + $0x48] sm:$0xff] %vm1176_vm0, %v1115_v12  ;;  %v1113_v16 = vmax.f32 %v797_v9, %v1049_v13  ;;  %v1054_v17 = vmul.f32 0.2, %v818_v14  ;;  %v810_v18 = vadd.f32 %v9655_v60, %v809_v15 }
  0xfe   : > { %v8658_v19 = vpop.f32.mrf.mxu0 }
  0xff   : > { %1224 = vst.msk [vmem:[#allocation2 + $0x38] sm:$0xff] %vm1176_vm0, %v1113_v16  ;;  %v1118_v20 = vmax.f32 %v818_v14, %v1054_v17  ;;  %v1052_v21 = vmul.f32 0.2, %v810_v18  ;;  %v821_v22 = vadd.f32 %v8658_v19, %v9655_v60 }
 0x100   : > { %v812_v23 = vpop.f32.mrf.mxu0 }
 0x101   : > { %1229 = vst.msk [vmem:[#allocation2 + $0x68] sm:$0xff] %vm1176_vm0, %v1118_v20  ;;  %v1116_v24 = vmax.f32 %v810_v18, %v1052_v21  ;;  %v1055_v25 = vmul.f32 0.2, %v821_v22  ;;  %v813_v26 = vadd.f32 %v9655_v60, %v812_v23 }
 0x102   : > { %v8661_v27 = vpop.f32.mrf.mxu0 }
 0x103   : > { %1227 = vst.msk [vmem:[#allocation2 + $0x58] sm:$0xff] %vm1176_vm0, %v1116_v24  ;;  %v1119_v28 = vmax.f32 %v821_v22, %v1055_v25  ;;  %v1053_v29 = vmul.f32 0.2, %v813_v26  ;;  %v834_v30 = vadd.f32 %v8661_v27, %v9655_v60 }
 0x104   : > { %v825_v31 = vpop.f32.mrf.mxu0 }
 0x105   : > { %1230 = vst.msk [vmem:[#allocation2 + $0x70] sm:$0xff] %vm1176_vm0, %v1119_v28  ;;  %v1117_v32 = vmax.f32 %v813_v26, %v1053_v29  ;;  %v1058_v33 = vmul.f32 0.2, %v834_v30  ;;  %v826_v34 = vadd.f32 %v9655_v60, %v825_v31 }
 0x106   : > { %v8662_v35 = vpop.f32.mrf.mxu0 }
 0x107   : > { %1228 = vst.msk [vmem:[#allocation2 + $0x60] sm:$0xff] %vm1176_vm0, %v1117_v32  ;;  %v1122_v36 = vmax.f32 %v834_v30, %v1058_v33  ;;  %v1056_v37 = vmul.f32 0.2, %v826_v34  ;;  %v837_v38 = vadd.f32 %v8662_v35, %v9655_v60 }
 0x108   : > { %v828_v39 = vpop.f32.mrf.mxu0 }
 0x109   : > { %1233 = vst.msk [vmem:[#allocation2 + $0x90] sm:$0xff] %vm1176_vm0, %v1122_v36  ;;  %v1120_v40 = vmax.f32 %v826_v34, %v1056_v37  ;;  %v1059_v41 = vmul.f32 0.2, %v837_v38  ;;  %v829_v42 = vadd.f32 %v9655_v60, %v828_v39 }
 0x10a   : > { %v8665_v44 = vpop.f32.mrf.mxu0 }
 0x10b   : > { %1231 = vst.msk [vmem:[#allocation2 + $0x80] sm:$0xff] %vm1176_vm0, %v1120_v40  ;;  %v1123_v47 = vmax.f32 %v837_v38, %v1059_v41  ;;  %v1057_v48 = vmul.f32 0.2, %v829_v42  ;;  %v850_v49 = vadd.f32 %v8665_v44, %v9655_v60 }
 0x10c   : > { %v841_v50 = vpop.f32.mrf.mxu0 }
 0x10d   : > { %1234 = vst.msk [vmem:[#allocation2 + $0x98] sm:$0xff] %vm1176_vm0, %v1123_v47  ;;  %v1121_v51 = vmax.f32 %v829_v42, %v1057_v48  ;;  %v1062_v52 = vmul.f32 0.2, %v850_v49  ;;  %v842_v53 = vadd.f32 %v9655_v60, %v841_v50 }
 0x10e   : > { %v8666_v54 = vpop.f32.mrf.mxu0 }
 0x10f   : > { %1232 = vst.msk [vmem:[#allocation2 + $0x88] sm:$0xff] %vm1176_vm0, %v1121_v51  ;;  %v1126_v55 = vmax.f32 %v850_v49, %v1062_v52  ;;  %v1060_v57 = vmul.f32 0.2, %v842_v53  ;;  %v853_v58 = vadd.f32 %v8666_v54, %v9655_v60 }
 0x110   : > { %v844_v59 = vpop.f32.mrf.mxu0 }
 0x111   : > { %1237 = vst.msk [vmem:[#allocation2 + $0xb8] sm:$0xff] %vm1176_vm0, %v1126_v55  ;;  %v1124_v61 = vmax.f32 %v842_v53, %v1060_v57  ;;  %v1063_v62 = vmul.f32 0.2, %v853_v58  ;;  %v845_v63 = vadd.f32 %v9655_v60, %v844_v59 }
 0x112   : > { %v8669_v0 = vpop.f32.mrf.mxu0 }
 0x113   : > { %1235 = vst.msk [vmem:[#allocation2 + $0xa8] sm:$0xff] %vm1176_vm0, %v1124_v61  ;;  %v1127_v1 = vmax.f32 %v853_v58, %v1063_v62  ;;  %v1061_v2 = vmul.f32 0.2, %v845_v63  ;;  %v866_v3 = vadd.f32 %v8669_v0, %v9655_v60 }
 0x114   : > { %v857_v4 = vpop.f32.mrf.mxu0 }
 0x115   : > { %1238 = vst.msk [vmem:[#allocation2 + $0xc0] sm:$0xff] %vm1176_vm0, %v1127_v1  ;;  %v1125_v5 = vmax.f32 %v845_v63, %v1061_v2  ;;  %v1066_v6 = vmul.f32 0.2, %v866_v3  ;;  %v858_v7 = vadd.f32 %v9655_v60, %v857_v4 }
 0x116   : > { %v8670_v8 = vpop.f32.mrf.mxu0 }
 0x117   : > { %1236 = vst.msk [vmem:[#allocation2 + $0xb0] sm:$0xff] %vm1176_vm0, %v1125_v5  ;;  %v1130_v9 = vmax.f32 %v866_v3, %v1066_v6  ;;  %v1064_v11 = vmul.f32 0.2, %v858_v7  ;;  %v869_v12 = vadd.f32 %v8670_v8, %v9655_v60 }
 0x118   : > { %v860_v13 = vpop.f32.mrf.mxu0 }
 0x119   : > { %1242 = vst.msk [vmem:[#allocation2 + $0x100] sm:$0xff] %vm1176_vm0, %v1130_v9  ;;  %v1128_v14 = vmax.f32 %v858_v7, %v1064_v11  ;;  %v1067_v15 = vmul.f32 0.2, %v869_v12  ;;  %v861_v16 = vadd.f32 %v9655_v60, %v860_v13 }
 0x11a   : > { %v8673_v17 = vpop.f32.mrf.mxu0 }
 0x11b   : > { %1240 = vst.msk [vmem:[#allocation2 + $0xf0] sm:$0xff] %vm1176_vm0, %v1128_v14  ;;  %v1131_v18 = vmax.f32 %v869_v12, %v1067_v15  ;;  %v1065_v19 = vmul.f32 0.2, %v861_v16  ;;  %v882_v20 = vadd.f32 %v8673_v17, %v9655_v60 }
 0x11c   : > { %v873_v21 = vpop.f32.mrf.mxu0 }
 0x11d   : > { %1243 = vst.msk [vmem:[#allocation2 + $0x108] sm:$0xff] %vm1176_vm0, %v1131_v18  ;;  %v1129_v22 = vmax.f32 %v861_v16, %v1065_v19  ;;  %v1070_v23 = vmul.f32 0.2, %v882_v20  ;;  %v874_v24 = vadd.f32 %v9655_v60, %v873_v21 }
 0x11e   : > { %v8674_v25 = vpop.f32.mrf.mxu0 }
 0x11f   : > { %1241 = vst.msk [vmem:[#allocation2 + $0xf8] sm:$0xff] %vm1176_vm0, %v1129_v22  ;;  %v1134_v26 = vmax.f32 %v882_v20, %v1070_v23  ;;  %v1068_v27 = vmul.f32 0.2, %v874_v24  ;;  %v885_v28 = vadd.f32 %v8674_v25, %v9655_v60  ;;  %v1288_v25 = vld [vmem:[#allocation2] sm:$0xff] }
 0x120   : > { %v876_v29 = vpop.f32.mrf.mxu0  ;;  %v9721_v52 = vld [vmem:[#allocation2 + $0x100] sm:$0xff] }
 0x121   : > { %1246 = vst.msk [vmem:[#allocation2 + $0x128] sm:$0xff] %vm1176_vm0, %v1134_v26  ;;  %v1132_v30 = vmax.f32 %v874_v24, %v1068_v27  ;;  %v1071_v31 = vmul.f32 0.2, %v885_v28  ;;  %v877_v32 = vadd.f32 %v9655_v60, %v876_v29  ;;  %v9764_v26 = vld [vmem:[#allocation2 + $0x8] sm:$0xff] }
 0x122   : > { %v8677_v33 = vpop.f32.mrf.mxu0  ;;  %v1324_v44 = vld [vmem:[#allocation2 + $0xf0] sm:$0xff] }
 0x123   : > { %1244 = vst.msk [vmem:[#allocation2 + $0x118] sm:$0xff] %vm1176_vm0, %v1132_v30  ;;  %v1135_v34 = vmax.f32 %v885_v28, %v1071_v31  ;;  %v1069_v35 = vmul.f32 0.2, %v877_v32  ;;  %v898_v36 = vadd.f32 %v8677_v33, %v9655_v60 }
 0x124   : > { %v889_v37 = vpop.f32.mrf.mxu0  ;;  %v9712_v41 = vld [vmem:[#allocation2 + $0x108] sm:$0xff] }
 0x125   : > { %1247 = vst.msk [vmem:[#allocation2 + $0x130] sm:$0xff] %vm1176_vm0, %v1135_v34  ;;  %v1133_v38 = vmax.f32 %v877_v32, %v1069_v35  ;;  %v1074_v39 = vmul.f32 0.2, %v898_v36  ;;  %v890_v40 = vadd.f32 %v9655_v60, %v889_v37  ;;  %v9725_v54 = vpack.c.bf16 %v9712_v41, %v9721_v52 }
 0x126   : > { %v8678_v42 = vpop.f32.mrf.mxu0  ;;  %v9714_v47 = vld [vmem:[#allocation2 + $0xf8] sm:$0xff]  ;;  %v1304_v35 = vpack.c.bf16 %v9764_v26, %v1288_v25 }
 0x127   : > { %1245 = vst.msk [vmem:[#allocation2 + $0x120] sm:$0xff] %vm1176_vm0, %v1133_v38  ;;  %v1138_v48 = vmax.f32 %v898_v36, %v1074_v39  ;;  %v1072_v49 = vmul.f32 0.2, %v890_v40  ;;  %v901_v50 = vadd.f32 %v8678_v42, %v9655_v60  ;;  %v9719_v51 = vpack.c.bf16 %v9714_v47, %v1324_v44 }
 0x128   : > { %v892_v53 = vpop.f32.mrf.mxu0  ;;  %v1855_v55 = vpack.c.bf16 %v9721_v52, %v9714_v47  ;;  %v9748_v14 = vld [vmem:[#allocation2 + $0x128] sm:$0xff]  ;;  %v9190_v52 = vld [vmem:[%s11639_s3 + $0x80] sm:$0xff]  }
 0x129   : > { %1250 = vst.msk [vmem:[#allocation2 + $0x150] sm:$0xff] %vm1176_vm0, %v1138_v48  ;;  %v1136_v57 = vmax.f32 %v890_v40, %v1072_v49  ;;  %v1075_v58 = vmul.f32 0.2, %v901_v50  ;;  %v893_v59 = vadd.f32 %v9655_v60, %v892_v53  ;;  %8727 = vmatprep.mubr.msk.bf16.mxu1 %vm1176_vm0, %v9719_v51 }
 0x12a   : > { %v8681_v61 = vpop.f32.mrf.mxu0  ;;  %8728 = vmatmul.mubr.msk.bf16.gmra.mxu1 %vm1176_vm0, %v9725_v54  ;;  %v1328_v7 = vld [vmem:[#allocation2 + $0x118] sm:$0xff] }
 0x12b   : > { %1248 = vst.msk [vmem:[#allocation2 + $0x140] sm:$0xff] %vm1176_vm0, %v1136_v57  ;;  %v1139_v62 = vmax.f32 %v901_v50, %v1075_v58  ;;  %v1073_v63 = vmul.f32 0.2, %v893_v59  ;;  %v914_v0 = vadd.f32 %v8681_v61, %v9655_v60 }
 0x12c   : > { %v905_v1 = vpop.f32.mrf.mxu0  ;;  %v9739_v5 = vld [vmem:[#allocation2 + $0x130] sm:$0xff] }
 0x12d   : > { %1251 = vst.msk [vmem:[#allocation2 + $0x158] sm:$0xff] %vm1176_vm0, %v1139_v62  ;;  %v1137_v2 = vmax.f32 %v893_v59, %v1073_v63  ;;  %v1078_v3 = vmul.f32 0.2, %v914_v0  ;;  %v906_v4 = vadd.f32 %v9655_v60, %v905_v1  ;;  %v9752_v16 = vpack.c.bf16 %v9739_v5, %v9748_v14  ;;  %v9795_v62 = vld [vmem:[#allocation2 + $0x10] sm:$0xff]  ;;  %v9797_v63 = vld [vmem:[#allocation2 + $0x18] sm:$0xff] }
 0x12e   : > { %v8682_v6 = vpop.f32.mrf.mxu0  ;;  %v9741_v8 = vld [vmem:[#allocation2 + $0x120] sm:$0xff] }
 0x12f   : > { %1249 = vst.msk [vmem:[#allocation2 + $0x148] sm:$0xff] %vm1176_vm0, %v1137_v2  ;;  %v1142_v9 = vmax.f32 %v914_v0, %v1078_v3  ;;  %v1076_v11 = vmul.f32 0.2, %v906_v4  ;;  %v917_v12 = vadd.f32 %v8682_v6, %v9655_v60  ;;  %v9746_v13 = vpack.c.bf16 %v9741_v8, %v1328_v7  ;;  %v1292_v7 = vld [vmem:[#allocation2 + $0x28] sm:$0xff] }
 0x130   : > { %v908_v15 = vpop.f32.mrf.mxu0  ;;  %v1857_v17 = vpack.c.bf16 %v9748_v14, %v9741_v8  ;;  %v9778_v40 = vld [vmem:[#allocation2 + $0x150] sm:$0xff]  ;;  %v1305_v6 = vpack.c.bf16 %v9797_v63, %v9795_v62  ;;  %v9194_v8 = vld [vmem:[%s11639_s3 + $0x128] sm:$0xff]  }
 0x131   : > { %1254 = vst.msk [vmem:[#allocation2 + $0x178] sm:$0xff] %vm1176_vm0, %v1142_v9  ;;  %v1140_v18 = vmax.f32 %v906_v4, %v1076_v11  ;;  %v1079_v19 = vmul.f32 0.2, %v917_v12  ;;  %v909_v20 = vadd.f32 %v9655_v60, %v908_v15  ;;  %8731 = vmatprep.mubr.msk.bf16.mxu1 %vm1176_vm0, %v9746_v13  ;;  %v9803_v9 = vld [vmem:[#allocation2 + $0x30] sm:$0xff] }
 0x132   : > { %v8685_v21 = vpop.f32.mrf.mxu0  ;;  %8732 = vmatmul.mubr.msk.bf16.gmra.mxu1 %vm1176_vm0, %v9752_v16  ;;  %v1332_v33 = vld [vmem:[#allocation2 + $0x140] sm:$0xff] }
 0x133   : > { %1252 = vst.msk [vmem:[#allocation2 + $0x168] sm:$0xff] %vm1176_vm0, %v1140_v18  ;;  %v1143_v22 = vmax.f32 %v917_v12, %v1079_v19  ;;  %v1077_v23 = vmul.f32 0.2, %v909_v20  ;;  %v930_v24 = vadd.f32 %v8685_v21, %v9655_v60  ;;  %v9173_v19 = vld [vmem:[%s11639_s3 + $0x50] sm:$0xff]  }
 0x134   : > { %v921_v27 = vpop.f32.mrf.mxu0  ;;  %v9768_v31 = vld [vmem:[#allocation2 + $0x158] sm:$0xff] }
 0x135   : > { %1255 = vst.msk [vmem:[#allocation2 + $0x180] sm:$0xff] %vm1176_vm0, %v1143_v22  ;;  %v1141_v28 = vmax.f32 %v909_v20, %v1077_v23  ;;  %v1082_v29 = vmul.f32 0.2, %v930_v24  ;;  %v922_v30 = vadd.f32 %v9655_v60, %v921_v27  ;;  %v9782_v44 = vpack.c.bf16 %v9768_v31, %v9778_v40 }
 0x136   : > { %v8686_v32 = vpop.f32.mrf.mxu0  ;;  %v9770_v34 = vld [vmem:[#allocation2 + $0x148] sm:$0xff]  ;;  %v1306_v23 = vpack.c.bf16 %v9803_v9, %v1292_v7 }
 0x137   : > { %1253 = vst.msk [vmem:[#allocation2 + $0x170] sm:$0xff] %vm1176_vm0, %v1141_v28  ;;  %v1146_v36 = vmax.f32 %v930_v24, %v1082_v29  ;;  %v1080_v37 = vmul.f32 0.2, %v922_v30  ;;  %v933_v38 = vadd.f32 %v8686_v32, %v9655_v60  ;;  %v9776_v39 = vpack.c.bf16 %v9770_v34, %v1332_v33 }
 0x138   : > { %v924_v42 = vpop.f32.mrf.mxu0  ;;  %v1859_v48 = vpack.c.bf16 %v9778_v40, %v9770_v34 }
 0x139   : > { %1258 = vst.msk [vmem:[#allocation2 + $0x1a8] sm:$0xff] %vm1176_vm0, %v1146_v36  ;;  %v1144_v49 = vmax.f32 %v922_v30, %v1080_v37  ;;  %v1083_v50 = vmul.f32 0.2, %v933_v38  ;;  %v925_v53 = vadd.f32 %v9655_v60, %v924_v42  ;;  %8735 = vmatprep.mubr.msk.bf16.mxu1 %vm1176_vm0, %v9776_v39  ;;  %v9175_v30 = vld [vmem:[%s11639_s3 + $0x48] sm:$0xff]   ;;  %v9823_v36 = vld [vmem:[#allocation2 + $0x38] sm:$0xff] }
 0x13a   : > { %v8689_v57 = vpop.f32.mrf.mxu0  ;;  %8736 = vmatmul.mubr.msk.bf16.gmra.mxu1 %vm1176_vm0, %v9782_v44  ;;  %v9825_v42 = vld [vmem:[#allocation2 + $0x58] sm:$0xff] }
 0x13b   : > { %1256 = vst.msk [vmem:[#allocation2 + $0x198] sm:$0xff] %vm1176_vm0, %v1144_v49  ;;  %v1147_v58 = vmax.f32 %v933_v38, %v1083_v50  ;;  %v1081_v59 = vmul.f32 0.2, %v925_v53  ;;  %v946_v61 = vadd.f32 %v8689_v57, %v9655_v60  ;;  %8747 = vmatprep.mubr.msk.bf16.mxu1 %vm1176_vm0, %v1304_v35  ;;  %v1296_v38 = vld [vmem:[#allocation2 + $0x50] sm:$0xff] }
 0x13c   : > { %v937_v0 = vpop.f32.mrf.mxu0 }
 0x13d   : > { %1259 = vst.msk [vmem:[#allocation2 + $0x1b0] sm:$0xff] %vm1176_vm0, %v1147_v58  ;;  %v1145_v1 = vmax.f32 %v925_v53, %v1081_v59  ;;  %v1086_v2 = vmul.f32 0.2, %v946_v61  ;;  %v938_v3 = vadd.f32 %v9655_v60, %v937_v0  ;;  %v9829_v53 = vld [vmem:[#allocation2 + $0x40] sm:$0xff] }
 0x13e   : > { %v8690_v4 = vpop.f32.mrf.mxu0  ;;  %v1307_v58 = vpack.c.bf16 %v9829_v53, %v9823_v36  ;;  %v9176_v59 = vld [vmem:[%s11639_s3 + $0x40] sm:$0xff]  }
 0x13f   : > { %1257 = vst.msk [vmem:[#allocation2 + $0x1a0] sm:$0xff] %vm1176_vm0, %v1145_v1  ;;  %v1150_v11 = vmax.f32 %v946_v61, %v1086_v2  ;;  %v1084_v12 = vmul.f32 0.2, %v938_v3  ;;  %v949_v15 = vadd.f32 %v8690_v4, %v9655_v60  ;;  %v1308_v2 = vpack.c.bf16 %v9825_v42, %v1296_v38 }
 0x140   : > { %v940_v18 = vpop.f32.mrf.mxu0 }
 0x141   : > { %1262 = vst.msk [vmem:[#allocation2 + $0x1d0] sm:$0xff] %vm1176_vm0, %v1150_v11  ;;  %v1148_v20 = vmax.f32 %v938_v3, %v1084_v12  ;;  %v1087_v21 = vmul.f32 0.2, %v949_v15  ;;  %v941_v22 = vadd.f32 %v9655_v60, %v940_v18  ;;  %v9846_v12 = vld [vmem:[%s11639_s3 + $0x78] sm:$0xff]  }
 0x142   : > { %v8693_v24 = vpop.f32.mrf.mxu0  ;;  %8748 = vmatmul.mubr.msk.bf16.vlgmr.msra.gmra.mxu1 %vm1176_vm0, %v1305_v6 }
 0x143   : > { %1260 = vst.msk [vmem:[#allocation2 + $0x1c0] sm:$0xff] %vm1176_vm0, %v1148_v20  ;;  %v1151_v25 = vmax.f32 %v949_v15, %v1087_v21  ;;  %v1085_v27 = vmul.f32 0.2, %v941_v22  ;;  %v962_v28 = vadd.f32 %v8693_v24, %v9655_v60  ;;  %8764 = vmatpush3.bf16.msra.mxu1 %v9640_v56  ;;  %8751 = vmatprep.mubr.msk.bf16.mxu1 %vm1176_vm0, %v1306_v23  ;;  %v9850_v20 = vld [vmem:[#allocation2 + $0x60] sm:$0xff] }
 0x144   : > { %v953_v29 = vpop.f32.mrf.mxu0  ;;  %8765 = vmatprep.subr.bf16.mxu1 %v9173_v19  ;;  %v9852_v23 = vld [vmem:[#allocation2 + $0x80] sm:$0xff] }
 0x145   : > { %1263 = vst.msk [vmem:[#allocation2 + $0x1d8] sm:$0xff] %vm1176_vm0, %v1151_v25  ;;  %v1149_v32 = vmax.f32 %v941_v22, %v1085_v27  ;;  %v1090_v33 = vmul.f32 0.2, %v962_v28  ;;  %v954_v35 = vadd.f32 %v9655_v60, %v953_v29  ;;  %v1300_v22 = vld [vmem:[#allocation2 + $0x78] sm:$0xff] }
 0x146   : > { %v8694_v37 = vpop.f32.mrf.mxu0 }
 0x147   : > { %1261 = vst.msk [vmem:[#allocation2 + $0x1c8] sm:$0xff] %vm1176_vm0, %v1149_v32  ;;  %v1154_v56 = vmax.f32 %v962_v28, %v1090_v33  ;;  %v1088_v49 = vmul.f32 0.2, %v954_v35  ;;  %v965_v50 = vadd.f32 %v8694_v37, %v9655_v60  ;;  %8766 = vmatpush3.bf16.msra.mxu1 %v9173_v19  ;;  %v9856_v28 = vld [vmem:[#allocation2 + $0x68] sm:$0xff]  ;;  %v1310_v37 = vpack.c.bf16 %v9852_v23, %v1300_v22 }
 0x148   : > { %v956_v57 = vpop.f32.mrf.mxu0  ;;  %8767 = vmatprep.subr.bf16.mxu1 %v9175_v30 }
 0x149   : > { %1266 = vst.msk [vmem:[#allocation2 + $0x1f8] sm:$0xff] %vm1176_vm0, %v1154_v56  ;;  %v1152_v61 = vmax.f32 %v954_v35, %v1088_v49  ;;  %v1091_v0 = vmul.f32 0.2, %v965_v50  ;;  %v957_v1 = vadd.f32 %v9655_v60, %v956_v57 }
 0x14a   : > { %v8697_v3 = vpop.f32.mrf.mxu0  ;;  %8752 = vmatmul.mubr.msk.bf16.gmra.mxu1 %vm1176_vm0, %v1307_v58 }
 0x14b   : > { %1264 = vst.msk [vmem:[#allocation2 + $0x1e8] sm:$0xff] %vm1176_vm0, %v1152_v61  ;;  %v1155_v4 = vmax.f32 %v965_v50, %v1091_v0  ;;  %v1089_v6 = vmul.f32 0.2, %v957_v1  ;;  %v978_v7 = vadd.f32 %v8697_v3, %v9655_v60  ;;  %8755 = vmatprep.mubr.msk.bf16.mxu1 %vm1176_vm0, %v1308_v2  ;;  %8768 = vmatpush3.bf16.msra.mxu1 %v9175_v30  ;;  %v9870_v0 = vld [vmem:[#allocation2 + $0x88] sm:$0xff] }
 0x14c   : > { %v969_v11 = vpop.f32.mrf.mxu0  ;;  %8769 = vmatprep.subr.bf16.mxu1 %v9176_v59  ;;  %v1309_v30 = vpack.c.bf16 %v9856_v28, %v9850_v20 }
 0x14d   : > { %1267 = vst.msk [vmem:[#allocation2 + $0x200] sm:$0xff] %vm1176_vm0, %v1155_v4  ;;  %v1153_v15 = vmax.f32 %v957_v1, %v1089_v6  ;;  %v1094_v18 = vmul.f32 0.2, %v978_v7  ;;  %v970_v19 = vadd.f32 %v9655_v60, %v969_v11  ;;  %v9874_v6 = vld [vmem:[#allocation2 + $0x90] sm:$0xff] }
 0x14e   : > { %v8698_v21 = vpop.f32.mrf.mxu0 }
 0x14f   : > { %1265 = vst.msk [vmem:[#allocation2 + $0x1f0] sm:$0xff] %vm1176_vm0, %v1153_v15  ;;  %v1158_v24 = vmax.f32 %v978_v7, %v1094_v18  ;;  %v1092_v25 = vmul.f32 0.2, %v970_v19  ;;  %v981_v27 = vadd.f32 %v8698_v21, %v9655_v60  ;;  %8770 = vmatpush3.bf16.msra.mxu1 %v9176_v59  ;;  %v1659_v7 = vpack.c.bf16 %v9795_v62, %v9764_v26  ;;  %v1646_v26 = vld [vmem:[#allocation2 + $0x20] sm:$0xff] }
 0x150   : > { %v972_v29 = vpop.f32.mrf.mxu0  ;;  %8787 = vmatprep.subr.bf16.mxu1 %v9846_v12  ;;  %v1311_v15 = vpack.c.bf16 %v9874_v6, %v9870_v0 }
 0x151   : > { %1270 = vst.msk [vmem:[#allocation2 + $0x220] sm:$0xff] %vm1176_vm0, %v1158_v24  ;;  %v1156_v32 = vmax.f32 %v970_v19, %v1092_v25  ;;  %v1095_v33 = vmul.f32 0.2, %v981_v27  ;;  %v973_v35 = vadd.f32 %v9655_v60, %v972_v29 }
 0x152   : > { %v8701_v38 = vpop.f32.mrf.mxu0  ;;  %8756 = vmatmul.mubr.msk.bf16.gmra.mxu1 %vm1176_vm0, %v1309_v30 }
 0x153   : > { %1268 = vst.msk [vmem:[#allocation2 + $0x210] sm:$0xff] %vm1176_vm0, %v1156_v32  ;;  %v1159_v56 = vmax.f32 %v981_v27, %v1095_v33  ;;  %v1093_v49 = vmul.f32 0.2, %v973_v35  ;;  %v994_v50 = vadd.f32 %v8701_v38, %v9655_v60  ;;  %8759 = vmatprep.mubr.msk.bf16.mxu1 %vm1176_vm0, %v1310_v37 }
 0x154   : > { %v985_v57 = vpop.f32.mrf.mxu0 }
 0x155   : > { %1271 = vst.msk [vmem:[#allocation2 + $0x228] sm:$0xff] %vm1176_vm0, %v1159_v56  ;;  %v1157_v58 = vmax.f32 %v973_v35, %v1093_v49  ;;  %v1098_v59 = vmul.f32 0.2, %v994_v50  ;;  %v986_v61 = vadd.f32 %v9655_v60, %v985_v57  ;;  %v1660_v35 = vpack.c.bf16 %v1646_v26, %v9797_v63 }
 0x156   : > { %v8702_v1 = vpop.f32.mrf.mxu0  ;;  %v1661_v63 = vpack.c.bf16 %v9823_v36, %v9803_v9  ;;  %v9181_v9 = vld [vmem:[%s11639_s3 + $0x68] sm:$0xff]  }
 0x157   : > { %1269 = vst.msk [vmem:[#allocation2 + $0x218] sm:$0xff] %vm1176_vm0, %v1157_v58  ;;  %v1162_v2 = vmax.f32 %v994_v50, %v1098_v59  ;;  %v1096_v3 = vmul.f32 0.2, %v986_v61  ;;  %v997_v4 = vadd.f32 %v8702_v1, %v9655_v60  ;;  %v9180_v50 = vld [vmem:[%s11639_s3 + $0x70] sm:$0xff]  }
 0x158   : > { %v988_v11 = vpop.f32.mrf.mxu0 }
 0x159   : > { %1274 = vst.msk [vmem:[#allocation2 + $0x268] sm:$0xff] %vm1176_vm0, %v1162_v2  ;;  %v1160_v18 = vmax.f32 %v986_v61, %v1096_v3  ;;  %v1099_v19 = vmul.f32 0.2, %v997_v4  ;;  %v989_v21 = vadd.f32 %v9655_v60, %v988_v11 }
 0x15a   : > { %v8705_v22 = vpop.f32.mrf.mxu0  ;;  %8760 = vmatmul.mubr.msk.bf16.gmra.mxu1 %vm1176_vm0, %v1311_v15 }
 0x15b   : > { %1272 = vst.msk [vmem:[#allocation2 + $0x258] sm:$0xff] %vm1176_vm0, %v1160_v18  ;;  %v1163_v24 = vmax.f32 %v997_v4, %v1099_v19  ;;  %v1097_v25 = vmul.f32 0.2, %v989_v21  ;;  %v1010_v27 = vadd.f32 %v8705_v22, %v9655_v60  ;;  %8771 = vmatprep.mubr.msk.bf16.mxu1 %vm1176_vm0, %v1659_v7 }
 0x15c   : > { %v1001_v62 = vpop.f32.mrf.mxu0 }
 0x15d   : > { %1275 = vst.msk [vmem:[#allocation2 + $0x270] sm:$0xff] %vm1176_vm0, %v1163_v24  ;;  %v1161_v29 = vmax.f32 %v989_v21, %v1097_v25  ;;  %v1102_v30 = vmul.f32 0.2, %v1010_v27  ;;  %v1002_v32 = vadd.f32 %v9655_v60, %v1001_v62 }
 0x15e   : > { %v8706_v33 = vpop.f32.mrf.mxu0 }
 0x15f   : > { %1273 = vst.msk [vmem:[#allocation2 + $0x260] sm:$0xff] %vm1176_vm0, %v1161_v29  ;;  %v1166_v37 = vmax.f32 %v1010_v27, %v1102_v30  ;;  %v1100_v38 = vmul.f32 0.2, %v1002_v32  ;;  %v1013_v56 = vadd.f32 %v8706_v33, %v9655_v60 }
 0x160   : > { %v1004_v49 = vpop.f32.mrf.mxu0  ;;  %v9903_v4 = vld [vmem:[#allocation2 + $0x268] sm:$0xff] }
 0x161   : > { %1278 = vst.msk [vmem:[#allocation2 + $0x290] sm:$0xff] %vm1176_vm0, %v1166_v37  ;;  %v1164_v57 = vmax.f32 %v1002_v32, %v1100_v38  ;;  %v1103_v58 = vmul.f32 0.2, %v1013_v56  ;;  %v1005_v59 = vadd.f32 %v9655_v60, %v1004_v49  ;;  %v9182_v32 = vld [vmem:[%s11639_s3 + $0x60] sm:$0xff]   ;;  %v1663_v38 = vpack.c.bf16 %v9850_v20, %v9825_v42 }
 0x162   : > { %v8709_v61 = vpop.f32.mrf.mxu0  ;;  %8772 = vmatmul.mubr.msk.bf16.vlgmr.msra.gmra.mxu1 %vm1176_vm0, %v1660_v35  ;;  %v2225_v11 = vld [vmem:[#allocation2 + $0x258] sm:$0xff] }
 0x163   : > { %1276 = vst.msk [vmem:[#allocation2 + $0x280] sm:$0xff] %vm1176_vm0, %v1164_v57  ;;  %v1167_v1 = vmax.f32 %v1013_v56, %v1103_v58  ;;  %v1101_v2 = vmul.f32 0.2, %v1005_v59  ;;  %v1026_v3 = vadd.f32 %v8709_v61, %v9655_v60  ;;  %8788 = vmatpush3.bf16.msra.mxu1 %v9846_v12  ;;  %8775 = vmatprep.mubr.msk.bf16.mxu1 %vm1176_vm0, %v1661_v63  ;;  %v1650_v12 = vld [vmem:[#allocation2 + $0x48] sm:$0xff]  ;;  %v9944_v63 = vld [vmem:[%s11639_s3 + $0x98] sm:$0xff]  }
 0x164   : > { %v1017_v7 = vpop.f32.mrf.mxu0  ;;  %8789 = vmatprep.subr.bf16.mxu1 %v9180_v50  ;;  %v9905_v15 = vld [vmem:[#allocation2 + $0x270] sm:$0xff]  ;;  %v1662_v30 = vpack.c.bf16 %v1650_v12, %v9829_v53 }
 0x165   : > { %1279 = vst.msk [vmem:[#allocation2 + $0x298] sm:$0xff] %vm1176_vm0, %v1167_v1  ;;  %v1165_v36 = vmax.f32 %v1005_v59, %v1101_v2  ;;  %v1106_v18 = vmul.f32 0.2, %v1026_v3  ;;  %v1018_v19 = vadd.f32 %v9655_v60, %v1017_v7  ;;  %v2242_v24 = vpack.c.bf16 %v9905_v15, %v9903_v4  ;;  %v9184_v53 = vld [vmem:[%s11639_s3 + $0xf0] sm:$0xff]   ;;  %v9186_v7 = vld [vmem:[%s11639_s3 + $0xe8] sm:$0xff]  }
 0x166   : > { %v8710_v21 = vpop.f32.mrf.mxu0  ;;  %v9912_v22 = vld [vmem:[#allocation2 + $0x260] sm:$0xff] }
 0x167   : > { %1277 = vst.msk [vmem:[#allocation2 + $0x288] sm:$0xff] %vm1176_vm0, %v1165_v36  ;;  %v1170_v25 = vmax.f32 %v1026_v3, %v1106_v18  ;;  %v1104_v27 = vmul.f32 0.2, %v1018_v19  ;;  %v1029_v26 = vadd.f32 %v8710_v21, %v9655_v60  ;;  %v2241_v62 = vpack.c.bf16 %v9912_v22, %v2225_v11  ;;  %8790 = vmatpush3.bf16.msra.mxu1 %v9180_v50  ;;  %v1654_v3 = vld [vmem:[#allocation2 + $0x70] sm:$0xff] }
 0x168   : > { %v1020_v29 = vpop.f32.mrf.mxu0  ;;  %8791 = vmatprep.subr.bf16.mxu1 %v9181_v9  ;;  %v9936_v58 = vld [vmem:[#allocation2 + $0x290] sm:$0xff] }
 0x169   : > { %1282 = vst.msk [vmem:[#allocation2 + $0x2b8] sm:$0xff] %vm1176_vm0, %v1170_v25  ;;  %v1168_v33 = vmax.f32 %v1018_v19, %v1104_v27  ;;  %v1107_v35 = vmul.f32 0.2, %v1029_v26  ;;  %v1021_v37 = vadd.f32 %v9655_v60, %v1020_v29  ;;  %8843 = vmatprep.mubr.msk.bf16.mxu0 %vm1176_vm0, %v2241_v62  ;;  %v1665_v62 = vpack.c.bf16 %v9870_v0, %v9852_v23 }
 0x16a   : > { %v8713_v56 = vpop.f32.mrf.mxu0  ;;  %8776 = vmatmul.mubr.msk.bf16.gmra.mxu1 %vm1176_vm0, %v1662_v30  ;;  %8844 = vmatmul.mubr.msk.bf16.vlgmr.msra.gmra.mxu0 %vm1176_vm0, %v2242_v24  ;;  %v2229_v20 = vld [vmem:[#allocation2 + $0x280] sm:$0xff]  ;;  %v1664_v24 = vpack.c.bf16 %v1654_v3, %v9856_v28 }
 0x16b   : > { %1280 = vst.msk [vmem:[#allocation2 + $0x2a8] sm:$0xff] %vm1176_vm0, %v1168_v33  ;;  %v1171_v49 = vmax.f32 %v1029_v26, %v1107_v35  ;;  %v1105_v50 = vmul.f32 0.2, %v1021_v37  ;;  %v1042_v57 = vadd.f32 %v8713_v56, %v9655_v60  ;;  %8779 = vmatprep.mubr.msk.bf16.mxu1 %vm1176_vm0, %v1663_v38  ;;  %8792 = vmatpush3.bf16.msra.mxu1 %v9181_v9  ;;  %v9187_v28 = vld [vmem:[%s11639_s3 + $0xe0] sm:$0xff]   ;;  %v1658_v33 = vld [vmem:[#allocation2 + $0x98] sm:$0xff] }
 0x16c   : > { %v1033_v42 = vpop.f32.mrf.mxu0  ;;  %v9938_v59 = vld [vmem:[#allocation2 + $0x298] sm:$0xff]  ;;  %8793 = vmatprep.subr.bf16.mxu1 %v9182_v32  ;;  %8884 = vmatpush3.bf16.msra.mxu0 %v9665_v10  ;;  %v1853_v56 = vpack.c.bf16 %v9605_v45, %v9602_v43 }
 0x16d   : > { %1283 = vst.msk [vmem:[#allocation2 + $0x2c0] sm:$0xff] %vm1176_vm0, %v1171_v49  ;;  %v1169_v61 = vmax.f32 %v1021_v37, %v1105_v50  ;;  %v1110_v1 = vmul.f32 0.2, %v1042_v57  ;;  %v1034_v2 = vadd.f32 %v9655_v60, %v1033_v42  ;;  %8885 = vmatprep.subr.bf16.mxu0 %v9184_v53  ;;  %v9955_v10 = vpack.c.bf16 %v9938_v59, %v9936_v58  ;;  %v9191_v35 = vld [vmem:[%s11639_s3 + $0x138] sm:$0xff]   ;;  %v1840_v50 = vld [vmem:[#allocation2 + $0xe8] sm:$0xff] }
 0x16e   : > { %v8714_v11 = vpop.f32.mrf.mxu0  ;;  %v9951_v9 = vld [vmem:[#allocation2 + $0x288] sm:$0xff]  ;;  %v1666_v49 = vpack.c.bf16 %v1658_v33, %v9874_v6  ;;  %v1854_v45 = vpack.c.bf16 %v1840_v50, %v9607_v46  ;;  %v2616_v46 = vld [vmem:[#allocation2 + $0x278] sm:$0xff] }
 0x16f   : > { %1281 = vst.msk [vmem:[#allocation2 + $0x2b0] sm:$0xff] %vm1176_vm0, %v1169_v61  ;;  %v1174_v36 = vmax.f32 %v1042_v57, %v1110_v1  ;;  %v1108_v18 = vmul.f32 0.2, %v1034_v2  ;;  %v1045_v19 = vadd.f32 %v8714_v11, %v9655_v60  ;;  %v9960_v12 = vpack.c.bf16 %v9951_v9, %v2229_v20  ;;  %8794 = vmatpush3.bf16.msra.mxu1 %v9182_v32  ;;  %v9188_v1 = vld [vmem:[%s11639_s3 + $0x90] sm:$0xff]   ;;  %v9195_v11 = vld [vmem:[%s11639_s3 + $0x120] sm:$0xff]   ;;  %v10164_v50 = vld [vmem:[#allocation2 + $0x1f8] sm:$0xff] }
 0x170   : > { %v1036_v21 = vpop.f32.mrf.mxu0  ;;  %8886 = vmatpush3.bf16.msra.mxu0 %v9184_v53  ;;  %8811 = vmatprep.subr.bf16.mxu1 %v9944_v63  ;;  %v9978_v30 = vld [vmem:[#allocation2 + $0x2b8] sm:$0xff]  ;;  %v2630_v3 = vpack.c.bf16 %v2616_v46, %v9905_v15 }
 0x171   : > { %1286 = vst.msk [vmem:[#allocation2 + $0x2e0] sm:$0xff] %vm1176_vm0, %v1174_v36  ;;  %v1172_v25 = vmax.f32 %v1034_v2, %v1108_v18  ;;  %v1111_v27 = vmul.f32 0.2, %v1045_v19  ;;  %v1037_v26 = vadd.f32 %v9655_v60, %v1036_v21  ;;  %8847 = vmatprep.mubr.msk.bf16.mxu0 %vm1176_vm0, %v9960_v12  ;;  %8887 = vmatprep.subr.bf16.mxu0 %v9186_v7  ;;  %v10063_v15 = vld [vmem:[#allocation2 + $0x138] sm:$0xff]  ;;  %v2031_v18 = vld [vmem:[#allocation2 + $0x190] sm:$0xff] }
 0x172   : > { %8780 = vmatmul.mubr.msk.bf16.gmra.mxu1 %vm1176_vm0, %v1664_v24  ;;  %8848 = vmatmul.mubr.msk.bf16.gmra.mxu0 %vm1176_vm0, %v9955_v10  ;;  %v2233_v32 = vld [vmem:[#allocation2 + $0x2a8] sm:$0xff]  ;;  %v2629_v2 = vpack.c.bf16 %v9903_v4, %v9912_v22  ;;  %v10038_v22 = vld [vmem:[#allocation2 + $0x110] sm:$0xff]  ;;  %v10109_v24 = vld [vmem:[#allocation2 + $0x1a0] sm:$0xff] }
 0x173   : > { %1284 = vst.msk [vmem:[#allocation2 + $0x2d0] sm:$0xff] %vm1176_vm0, %v1172_v25  ;;  %v1175_v29 = vmax.f32 %v1045_v19, %v1111_v27  ;;  %v1109_v60 = vmul.f32 0.2, %v1037_v26  ;;  %8783 = vmatprep.mubr.msk.bf16.mxu1 %vm1176_vm0, %v1665_v62  ;;  %v9189_v4 = vld [vmem:[%s11639_s3 + $0x88] sm:$0xff]   ;;  %v1856_v47 = vpack.c.bf16 %v10038_v22, %v9712_v41  ;;  %v10061_v41 = vld [vmem:[#allocation2 + $0x2a0] sm:$0xff]  ;;  %v10096_v19 = vld [vmem:[#allocation2 + $0x198] sm:$0xff] }
 0x174   : > { %v9980_v23 = vld [vmem:[#allocation2 + $0x2c0] sm:$0xff]  ;;  %8888 = vmatpush3.bf16.msra.mxu0 %v9186_v7  ;;  %v2632_v14 = vpack.c.bf16 %v10061_v41, %v9938_v59  ;;  %v1858_v7 = vpack.c.bf16 %v10063_v15, %v9739_v5  ;;  %v10087_v5 = vld [vmem:[#allocation2 + $0x2c8] sm:$0xff]  ;;  %v10107_v21 = vld [vmem:[#allocation2 + $0x2f0] sm:$0xff] }
 0x175   : > { %1287 = vst.msk [vmem:[#allocation2 + $0x2e8] sm:$0xff] %vm1176_vm0, %v1175_v29  ;;  %v1173_v0 = vmax.f32 %v1037_v26, %v1109_v60  ;;  %8889 = vmatprep.subr.bf16.mxu0 %v9187_v28  ;;  %v9990_v38 = vpack.c.bf16 %v9980_v23, %v9978_v30  ;;  %v10089_v59 = vld [vmem:[#allocation2 + $0x160] sm:$0xff]  ;;  %v2634_v36 = vpack.c.bf16 %v10087_v5, %v9980_v23  ;;  %v10111_v25 = vld [vmem:[#allocation2 + $0x1a8] sm:$0xff]  ;;  %v2035_v27 = vld [vmem:[#allocation2 + $0x1b8] sm:$0xff] }
 0x176   : > { %v9986_v37 = vld [vmem:[#allocation2 + $0x2b0] sm:$0xff]  ;;  %v1860_v40 = vpack.c.bf16 %v10089_v59, %v9768_v31  ;;  %v10115_v26 = vld [vmem:[#allocation2 + $0x1c0] sm:$0xff]  ;;  %v2048_v62 = vpack.c.bf16 %v10111_v25, %v10109_v24  ;;  %v9197_v60 = vld [vmem:[%s11639_s3 + $0xc8] sm:$0xff]  }
 0x177   : > { %1285 = vst.msk [vmem:[#allocation2 + $0x2d8] sm:$0xff] %vm1176_vm0, %v1173_v0  ;;  %v9994_v53 = vpack.c.bf16 %v9986_v37, %v2233_v32  ;;  %v10123_v29 = vpack.c.bf16 %v10115_v26, %v2035_v27  ;;  %v10136_v32 = vld [vmem:[#allocation2 + $0x1d0] sm:$0xff]  ;;  %v2039_v23 = vld [vmem:[#allocation2 + $0x1e0] sm:$0xff]  ;;  %v10138_v0 = vld [vmem:[#allocation2 + $0x1e8] sm:$0xff] }
 0x178   : > { %8890 = vmatpush3.bf16.msra.mxu0 %v9187_v28  ;;  %v10005_v57 = vld [vmem:[#allocation2 + $0x2e0] sm:$0xff]  ;;  %v9196_v28 = vld [vmem:[%s11639_s3 + $0xd0] sm:$0xff]   ;;  %v9207_v46 = vld [vmem:[%s11639_s3 + $0x1b8] sm:$0xff]  }
 0x179   : > { %8851 = vmatprep.mubr.msk.bf16.mxu0 %vm1176_vm0, %v9994_v53  ;;  %8931 = vmatprep.subr.bf16.mxu0 %v9191_v35  ;;  %v9206_v27 = vld [vmem:[%s11639_s3 + $0x100] sm:$0xff]  }
 0x17a   : > { %8784 = vmatmul.mubr.msk.bf16.gmra.mxu1 %vm1176_vm0, %v1666_v49  ;;  %8852 = vmatmul.mubr.msk.bf16.gmra.mxu0 %vm1176_vm0, %v9990_v38  ;;  %v2237_v42 = vld [vmem:[#allocation2 + $0x2d0] sm:$0xff] }
 0x17b   : > { %8795 = vmatprep.mubr.msk.bf16.mxu1 %vm1176_vm0, %v1853_v56  ;;  %v9201_v56 = vld [vmem:[%s11639_s3 + $0x118] sm:$0xff]   ;;  %v2041_v49 = vld [vmem:[#allocation2 + $0x1f0] sm:$0xff] }
 0x17c   : > { %v10007_v20 = vld [vmem:[#allocation2 + $0x2e8] sm:$0xff] }
 0x17d   : > { %v10014_v6 = vpack.c.bf16 %v10007_v20, %v10005_v57  ;;  %v2636_v31 = vpack.c.bf16 %v10107_v21, %v10007_v20  ;;  %v10169_v20 = vld [vmem:[#allocation2 + $0x210] sm:$0xff] }
 0x17e   : > { %v10009_v43 = vld [vmem:[#allocation2 + $0x2d8] sm:$0xff] }
 0x17f   : > { %v10017_v61 = vpack.c.bf16 %v10009_v43, %v2237_v42  ;;  %v2635_v34 = vpack.c.bf16 %v10005_v57, %v10009_v43  ;;  %v2043_v42 = vld [vmem:[#allocation2 + $0x208] sm:$0xff] }
 0x180   : > { %v10175_v43 = vpack.c.bf16 %v10169_v20, %v2043_v42  ;;  %v2807_v42 = vld [vmem:[#allocation2 + $0x28] sm:$0xff] }
 0x181   : > { %8855 = vmatprep.mubr.msk.bf16.mxu0 %vm1176_vm0, %v10017_v61 }
 0x182   : > { %8796 = vmatmul.mubr.msk.bf16.vlgmr.msra.gmra.mxu1 %vm1176_vm0, %v1854_v45  ;;  %8856 = vmatmul.mubr.msk.bf16.gmra.mxu0 %vm1176_vm0, %v10014_v6  ;;  %v9203_v45 = vld [vmem:[%s11639_s3 + $0x160] sm:$0xff]  }
 0x183   : > { %8812 = vmatpush3.bf16.msra.mxu1 %v9944_v63  ;;  %8799 = vmatprep.mubr.msk.bf16.mxu1 %vm1176_vm0, %v1855_v55  ;;  %v10043_v63 = vpack.c.bf16 %v9936_v58, %v9951_v9  ;;  %v9192_v55 = vld [vmem:[%s11639_s3 + $0x130] sm:$0xff]   ;;  %v9193_v58 = vld [vmem:[%s11639_s3 + $0xd8] sm:$0xff]  }
 0x184   : > { %8813 = vmatprep.subr.bf16.mxu1 %v9188_v1  ;;  %8891 = vmatprep.mubr.msk.bf16.mxu0 %vm1176_vm0, %v2629_v2  ;;  %v9199_v9 = vld [vmem:[%s11639_s3 + $0x178] sm:$0xff]   ;;  %v10188_v2 = vld [vmem:[#allocation2 + $0x220] sm:$0xff] }
 0x187   : > { %8814 = vmatpush3.bf16.msra.mxu1 %v9188_v1  ;;  %v2045_v1 = vld [vmem:[#allocation2 + $0x218] sm:$0xff] }
 0x188   : > { %8815 = vmatprep.subr.bf16.mxu1 %v9189_v4 }
 0x18a   : > { %8800 = vmatmul.mubr.msk.bf16.gmra.mxu1 %vm1176_vm0, %v1856_v47  ;;  %8892 = vmatmul.mubr.msk.bf16.vlgmr.msra.gmra.mxu0 %vm1176_vm0, %v2630_v3  ;;  %v10193_v3 = vld [vmem:[#allocation2 + $0x170] sm:$0xff]  ;;  %v2435_v47 = vpack.c.bf16 %v10109_v24, %v10096_v19  ;;  %v3394_v24 = vld [vmem:[#allocation2 + $0x128] sm:$0xff] }
 0x18b   : > { %8803 = vmatprep.mubr.msk.bf16.mxu1 %vm1176_vm0, %v1857_v17  ;;  %8895 = vmatprep.mubr.msk.bf16.mxu0 %vm1176_vm0, %v10043_v63  ;;  %v2633_v17 = vpack.c.bf16 %v9978_v30, %v9986_v37  ;;  %v10134_v30 = vld [vmem:[#allocation2 + $0x1c8] sm:$0xff]  ;;  %v9200_v37 = vld [vmem:[%s11639_s3 + $0x170] sm:$0xff]  }
 0x18c   : > { %8816 = vmatpush3.bf16.msra.mxu1 %v9189_v4  ;;  %8932 = vmatpush3.bf16.msra.mxu0 %v9191_v35  ;;  %v10142_v33 = vpack.c.bf16 %v10136_v32, %v10134_v30  ;;  %v9198_v35 = vld [vmem:[%s11639_s3 + $0xc0] sm:$0xff]   ;;  %v3013_v4 = vld [vmem:[#allocation2 + $0x168] sm:$0xff] }
 0x18d   : > { %8817 = vmatprep.subr.bf16.mxu1 %v9190_v52  ;;  %8933 = vmatprep.subr.bf16.mxu0 %v9192_v55 }
 0x190   : > { %8818 = vmatpush3.bf16.msra.mxu1 %v9190_v52  ;;  %8934 = vmatpush3.bf16.msra.mxu0 %v9192_v55  ;;  %v2422_v52 = vld [vmem:[#allocation2 + $0x1b0] sm:$0xff]  ;;  %v10207_v55 = vld [vmem:[#allocation2 + $0x178] sm:$0xff] }
 0x191   : > { %8859 = vmatprep.subr.bf16.mxu1 %v9193_v58  ;;  %8935 = vmatprep.subr.bf16.mxu0 %v9194_v8 }
 0x192   : > { %8804 = vmatmul.mubr.msk.bf16.gmra.mxu1 %vm1176_vm0, %v1858_v7  ;;  %8896 = vmatmul.mubr.msk.bf16.gmra.mxu0 %vm1176_vm0, %v2632_v14  ;;  %v2436_v14 = vpack.c.bf16 %v2422_v52, %v10111_v25  ;;  %v9204_v7 = vld [vmem:[%s11639_s3 + $0x110] sm:$0xff]   ;;  %v10232_v25 = vpack.c.bf16 %v2041_v49, %v10138_v0  ;;  %v10291_v52 = vld [vmem:[#allocation2 + $0x58] sm:$0xff] }
 0x193   : > { %8807 = vmatprep.mubr.msk.bf16.mxu1 %vm1176_vm0, %v1859_v48  ;;  %8899 = vmatprep.mubr.msk.bf16.mxu0 %vm1176_vm0, %v2633_v17  ;;  %v2047_v48 = vpack.c.bf16 %v10096_v19, %v2031_v18  ;;  %v10226_v18 = vld [vmem:[#allocation2 + $0x1d8] sm:$0xff]  ;;  %v3391_v19 = vld [vmem:[#allocation2 + $0x108] sm:$0xff] }
 0x194   : > { %8936 = vmatpush3.bf16.msra.mxu0 %v9194_v8  ;;  %v3389_v8 = vld [vmem:[#allocation2 + $0xf8] sm:$0xff] }
 0x195   : > { %8937 = vmatprep.subr.bf16.mxu0 %v9195_v11 }
 0x198   : > { %8938 = vmatpush3.bf16.msra.mxu0 %v9195_v11  ;;  %v3390_v11 = vld [vmem:[#allocation2 + $0x100] sm:$0xff] }
 0x199   : > { %8979 = vmatprep.subr.bf16.mxu0 %v9199_v9 }
 0x19a   : > { %8808 = vmatmul.mubr.msk.bf16.gmra.mxu1 %vm1176_vm0, %v1860_v40  ;;  %8900 = vmatmul.mubr.msk.bf16.gmra.mxu0 %vm1176_vm0, %v2634_v36  ;;  %v9205_v36 = vld [vmem:[%s11639_s3 + $0x108] sm:$0xff]   ;;  %v2438_v40 = vpack.c.bf16 %v10226_v18, %v10136_v32 }
 0x19b   : > { %8819 = vmatprep.mubr.msk.bf16.mxu1 %vm1176_vm0, %v2047_v48  ;;  %8903 = vmatprep.mubr.msk.bf16.mxu0 %vm1176_vm0, %v2635_v34  ;;  %v3393_v34 = vld [vmem:[#allocation2 + $0x120] sm:$0xff]  ;;  %v3406_v48 = vpack.c.bf16 %v10038_v22, %v3391_v19  ;;  %v3395_v22 = vld [vmem:[#allocation2 + $0x130] sm:$0xff]  ;;  %v3397_v32 = vld [vmem:[#allocation2 + $0x148] sm:$0xff] }
 0x19c   : > { %v10318_v19 = vld [vmem:[#allocation2 + $0x68] sm:$0xff] }
 0x1a2   : > { %8820 = vmatmul.mubr.msk.bf16.vlgmr.msra.gmra.mxu1 %vm1176_vm0, %v2048_v62  ;;  %8904 = vmatmul.mubr.msk.bf16.gmra.mxu0 %vm1176_vm0, %v2636_v31  ;;  %v3407_v31 = vpack.c.bf16 %v3394_v24, %v3393_v34  ;;  %v10245_v62 = vld [vmem:[#allocation2 + $0x200] sm:$0xff]  ;;  %v10331_v24 = vld [vmem:[%s11639_s3 + $0x1f0] sm:$0xff]  }
 0x1a3   : > { %8860 = vmatpush3.bf16.msra.mxu1 %v9193_v58  ;;  %8823 = vmatprep.mubr.msk.bf16.mxu1 %vm1176_vm0, %v10123_v29  ;;  %v10209_v58 = vld [vmem:[#allocation2 + $0x180] sm:$0xff] }
 0x1a4   : > { %8939 = vmatprep.mubr.msk.bf16.mxu0 %vm1176_vm0, %v9719_v51  ;;  %8861 = vmatprep.subr.bf16.mxu1 %v9196_v28  ;;  %v10145_v51 = vpack.c.bf16 %v10138_v0, %v2039_v23  ;;  %v3024_v17 = vpack.c.bf16 %v10209_v58, %v10207_v55  ;;  %v2440_v23 = vpack.c.bf16 %v10245_v62, %v10164_v50 }
 0x1a5   : > { %v3408_v0 = vpack.c.bf16 %v10063_v15, %v3395_v22  ;;  %v10267_v15 = vld [vmem:[#allocation2 + $0x228] sm:$0xff]  ;;  %v9217_v22 = vld [vmem:[%s11639_s3 + $0x198] sm:$0xff]  }
 0x1a7   : > { %8862 = vmatpush3.bf16.msra.mxu1 %v9196_v28  ;;  %v9209_v28 = vld [vmem:[%s11639_s3 + $0x158] sm:$0xff]  }
 0x1a8   : > { %8863 = vmatprep.subr.bf16.mxu1 %v9197_v60 }
 0x1aa   : > { %8824 = vmatmul.mubr.msk.bf16.gmra.mxu1 %vm1176_vm0, %v10142_v33  ;;  %8940 = vmatmul.mubr.msk.bf16.vlgmr.msra.gmra.mxu0 %vm1176_vm0, %v9725_v54  ;;  %v9202_v54 = vld [vmem:[%s11639_s3 + $0x168] sm:$0xff]  }
 0x1ab   : > { %8827 = vmatprep.mubr.msk.bf16.mxu1 %vm1176_vm0, %v10145_v51  ;;  %8943 = vmatprep.mubr.msk.bf16.mxu0 %vm1176_vm0, %v9746_v13  ;;  %v10172_v13 = vpack.c.bf16 %v10164_v50, %v2041_v49  ;;  %v9211_v49 = vld [vmem:[%s11639_s3 + $0x1a0] sm:$0xff]   ;;  %v3399_v50 = vld [vmem:[#allocation2 + $0x158] sm:$0xff] }
 0x1ac   : > { %8864 = vmatpush3.bf16.msra.mxu1 %v9197_v60  ;;  %8980 = vmatpush3.bf16.msra.mxu0 %v9199_v9  ;;  %v3405_v9 = vpack.c.bf16 %v3390_v11, %v3389_v8  ;;  %v9210_v60 = vld [vmem:[%s11639_s3 + $0x1a8] sm:$0xff]   ;;  %v10293_v8 = vld [vmem:[#allocation2 + $0x40] sm:$0xff] }
 0x1ad   : > { %8865 = vmatprep.subr.bf16.mxu1 %v9198_v35  ;;  %8981 = vmatprep.subr.bf16.mxu0 %v9200_v37  ;;  %v10314_v11 = vld [vmem:[#allocation2 + $0x60] sm:$0xff] }
 0x1b0   : > { %8866 = vmatpush3.bf16.msra.mxu1 %v9198_v35  ;;  %8982 = vmatpush3.bf16.msra.mxu0 %v9200_v37  ;;  %v3398_v35 = vld [vmem:[#allocation2 + $0x150] sm:$0xff]  ;;  %v10257_v37 = vpack.c.bf16 %v2045_v1, %v10169_v20 }
 0x1b1   : > { %8907 = vmatprep.subr.bf16.mxu1 %v9201_v56  ;;  %8983 = vmatprep.subr.bf16.mxu0 %v9202_v54  ;;  %v10274_v20 = vld [vmem:[#allocation2 + $0x30] sm:$0xff] }
 0x1b2   : > { %8828 = vmatmul.mubr.msk.bf16.gmra.mxu1 %vm1176_vm0, %v10172_v13  ;;  %8944 = vmatmul.mubr.msk.bf16.gmra.mxu0 %vm1176_vm0, %v9752_v16  ;;  %v10196_v16 = vpack.c.bf16 %v10188_v2, %v2045_v1  ;;  %v3410_v1 = vpack.c.bf16 %v10089_v59, %v3399_v50  ;;  %v3404_v59 = vld [vmem:[#allocation2 + $0x188] sm:$0xff] }
 0x1b3   : > { %8831 = vmatprep.mubr.msk.bf16.mxu1 %vm1176_vm0, %v10175_v43  ;;  %8947 = vmatprep.mubr.msk.bf16.mxu0 %vm1176_vm0, %v9776_v39  ;;  %v3023_v39 = vpack.c.bf16 %v10193_v3, %v3013_v4  ;;  %v3411_v4 = vpack.c.bf16 %v10207_v55, %v10193_v3 }
 0x1b4   : > { %8984 = vmatpush3.bf16.msra.mxu0 %v9202_v54  ;;  %v10272_v54 = vld [vmem:[%s11639_s3 + $0x1f8] sm:$0xff]  }
 0x1b5   : > { %8985 = vmatprep.subr.bf16.mxu0 %v9203_v45 }
 0x1b8   : > { %8986 = vmatpush3.bf16.msra.mxu0 %v9203_v45  ;;  %v2442_v45 = vpack.c.bf16 %v10267_v15, %v10188_v2  ;;  %v10289_v2 = vld [vmem:[#allocation2 + $0x38] sm:$0xff] }
 0x1b9   : > { %9027 = vmatprep.subr.bf16.mxu0 %v9207_v46  ;;  %v2824_v55 = vpack.c.bf16 %v10293_v8, %v10289_v2 }
 0x1ba   : > { %8832 = vmatmul.mubr.msk.bf16.gmra.mxu1 %vm1176_vm0, %v10196_v16  ;;  %8948 = vmatmul.mubr.msk.bf16.gmra.mxu0 %vm1176_vm0, %v9782_v44  ;;  %v2437_v44 = vpack.c.bf16 %v10134_v30, %v10115_v26  ;;  %v9208_v26 = vld [vmem:[%s11639_s3 + $0x1b0] sm:$0xff]  }
 0x1bb   : > { %8867 = vmatprep.mubr.msk.bf16.mxu1 %vm1176_vm0, %v2435_v47  ;;  %8951 = vmatprep.mubr.msk.bf16.mxu0 %vm1176_vm0, %v3023_v39  ;;  %v10287_v47 = vpop.f32.mrf.mxu1  ;;  %v2811_v39 = vld [vmem:[#allocation2 + $0x50] sm:$0xff] }
 0x1bd   : > { %v10295_v3 = vpop.f32.mrf.mxu1 }
 0x1c2   : > { %8868 = vmatmul.mubr.msk.bf16.vlgmr.msra.gmra.mxu1 %vm1176_vm0, %v2436_v14  ;;  %8952 = vmatmul.mubr.msk.bf16.gmra.mxu0 %vm1176_vm0, %v3024_v17  ;;  %v3412_v14 = vpack.c.bf16 %v3404_v59, %v10209_v58  ;;  %v9212_v17 = vld [vmem:[%s11639_s3 + $0x150] sm:$0xff]   ;;  %v9213_v58 = vld [vmem:[%s11639_s3 + $0x148] sm:$0xff]  }
 0x1c3   : > { %8908 = vmatpush3.bf16.msra.mxu1 %v9201_v56  ;;  %8871 = vmatprep.mubr.msk.bf16.mxu1 %vm1176_vm0, %v2437_v44  ;;  %v3409_v56 = vpack.c.bf16 %v3398_v35, %v3397_v32  ;;  %v10307_v44 = vpop.f32.mrf.mxu1  ;;  %v10359_v32 = vld [vmem:[#allocation2 + $0x90] sm:$0xff] }
 0x1c4   : > { %8987 = vmatprep.mubr.msk.bf16.mxu0 %vm1176_vm0, %v3405_v9  ;;  %8909 = vmatprep.subr.bf16.mxu1 %v9204_v7  ;;  %v2815_v9 = vld [vmem:[#allocation2 + $0x78] sm:$0xff] }
 0x1c5   : > { %v10320_v34 = vpop.f32.mrf.mxu1 }
 0x1c7   : > { %8910 = vmatpush3.bf16.msra.mxu1 %v9204_v7  ;;  %v2825_v7 = vpack.c.bf16 %v10291_v52, %v2811_v39  ;;  %v3211_v39 = vpack.c.bf16 %v10289_v2, %v10274_v20 }
 0x1c8   : > { %8911 = vmatprep.subr.bf16.mxu1 %v9205_v36 }
 0x1ca   : > { %8872 = vmatmul.mubr.msk.bf16.gmra.mxu1 %vm1176_vm0, %v2438_v40  ;;  %8988 = vmatmul.mubr.msk.bf16.vlgmr.msra.gmra.mxu0 %vm1176_vm0, %v3406_v48  ;;  %v2826_v40 = vpack.c.bf16 %v10318_v19, %v10314_v11  ;;  %v9214_v48 = vld [vmem:[%s11639_s3 + $0x140] sm:$0xff]  }
 0x1cb   : > { %8875 = vmatprep.mubr.msk.bf16.mxu1 %vm1176_vm0, %v10232_v25  ;;  %8991 = vmatprep.mubr.msk.bf16.mxu0 %vm1176_vm0, %v3407_v31 }
 0x1cc   : > { %8912 = vmatpush3.bf16.msra.mxu1 %v9205_v36  ;;  %9028 = vmatpush3.bf16.msra.mxu0 %v9207_v46  ;;  %v2823_v46 = vpack.c.bf16 %v10274_v20, %v2807_v42  ;;  %v10316_v36 = vld [vmem:[#allocation2 + $0x80] sm:$0xff]  ;;  %v3791_v42 = vld [vmem:[#allocation2 + $0x2f8] sm:$0xff] }
 0x1cd   : > { %8913 = vmatprep.subr.bf16.mxu1 %v9206_v27  ;;  %9029 = vmatprep.subr.bf16.mxu0 %v9208_v26 }
 0x1d0   : > { %8914 = vmatpush3.bf16.msra.mxu1 %v9206_v27  ;;  %9030 = vmatpush3.bf16.msra.mxu0 %v9208_v26  ;;  %v10344_v26 = vld [vmem:[#allocation2 + $0x88] sm:$0xff] }
 0x1d1   : > { %8955 = vmatprep.subr.bf16.mxu1 %v9209_v28  ;;  %9031 = vmatprep.subr.bf16.mxu0 %v9210_v60 }
 0x1d2   : > { %8876 = vmatmul.mubr.msk.bf16.gmra.mxu1 %vm1176_vm0, %v2440_v23  ;;  %8992 = vmatmul.mubr.msk.bf16.gmra.mxu0 %vm1176_vm0, %v3408_v0  ;;  %v2828_v0 = vpack.c.bf16 %v10359_v32, %v10344_v26 }
 0x1d3   : > { %8879 = vmatprep.mubr.msk.bf16.mxu1 %vm1176_vm0, %v10257_v37  ;;  %8995 = vmatprep.mubr.msk.bf16.mxu0 %vm1176_vm0, %v3409_v56  ;;  %v10371_v56 = vld [vmem:[%s11639_s3 + $0x1e0] sm:$0xff]  }
 0x1d4   : > { %9032 = vmatpush3.bf16.msra.mxu0 %v9210_v60  ;;  %v10357_v60 = vld [vmem:[#allocation2 + $0xa8] sm:$0xff] }
 0x1d5   : > { %9033 = vmatprep.subr.bf16.mxu0 %v9211_v49 }
 0x1d8   : > { %9034 = vmatpush3.bf16.msra.mxu0 %v9211_v49 }
 0x1d9   : > { %9075 = vmatprep.subr.bf16.mxu0 %v10272_v54 }
 0x1da   : > { %8880 = vmatmul.mubr.msk.bf16.gmra.mxu1 %vm1176_vm0, %v2442_v45  ;;  %8996 = vmatmul.mubr.msk.bf16.gmra.mxu0 %vm1176_vm0, %v3410_v1  ;;  %v10383_v45 = vld [vmem:[#allocation2 + $0x300] sm:$0xff]  ;;  %v10386_v1 = vld [vmem:[#allocation2 + $0xb0] sm:$0xff] }
 0x1db   : > { %8915 = vmatprep.mubr.msk.bf16.mxu1 %vm1176_vm0, %v2823_v46  ;;  %8999 = vmatprep.mubr.msk.bf16.mxu0 %vm1176_vm0, %v3411_v4  ;;  %v10391_v4 = vld [vmem:[#allocation2 + $0xb8] sm:$0xff] }
 0x1e2   : > { %8916 = vmatmul.mubr.msk.bf16.vlgmr.msra.gmra.mxu1 %vm1176_vm0, %v2824_v55  ;;  %9000 = vmatmul.mubr.msk.bf16.gmra.mxu0 %vm1176_vm0, %v3412_v14  ;;  %v10408_v14 = vld [vmem:[#allocation2 + $0x308] sm:$0xff] }
 0x1e3   : > { %8956 = vmatpush3.bf16.msra.mxu1 %v9209_v28  ;;  %8919 = vmatprep.mubr.msk.bf16.mxu1 %vm1176_vm0, %v2825_v7  ;;  %v2819_v28 = vld [vmem:[#allocation2 + $0xa0] sm:$0xff] }
 0x1e4   : > { %9035 = vmatprep.mubr.msk.bf16.mxu0 %vm1176_vm0, %v9960_v12  ;;  %8957 = vmatprep.subr.bf16.mxu1 %v9212_v17  ;;  %v2827_v12 = vpack.c.bf16 %v10316_v36, %v2815_v9  ;;  %v2829_v35 = vpack.c.bf16 %v10357_v60, %v2819_v28  ;;  %v9221_v28 = vld [vmem:[%s11639_s3 + $0x188] sm:$0xff]  }
 0x1e7   : > { %8958 = vmatpush3.bf16.msra.mxu1 %v9212_v17  ;;  %v10410_v17 = vld [vmem:[#allocation2 + $0x310] sm:$0xff] }
 0x1e8   : > { %8959 = vmatprep.subr.bf16.mxu1 %v9213_v58  ;;  %v3802_v20 = vpack.c.bf16 %v10410_v17, %v10408_v14 }
 0x1ea   : > { %v10333_v31 = vpop.f32.mrf.mxu1  ;;  %8920 = vmatmul.mubr.msk.bf16.gmra.mxu1 %vm1176_vm0, %v2826_v40  ;;  %9036 = vmatmul.mubr.msk.bf16.vlgmr.msra.gmra.mxu0 %vm1176_vm0, %v9955_v10  ;;  %v10353_v10 = vld [vmem:[%s11639_s3 + $0x1e8] sm:$0xff]   ;;  %v9220_v40 = vld [vmem:[%s11639_s3 + $0x190] sm:$0xff]  }
 0x1eb   : > { %8923 = vmatprep.mubr.msk.bf16.mxu1 %vm1176_vm0, %v2827_v12  ;;  %9039 = vmatprep.mubr.msk.bf16.mxu0 %vm1176_vm0, %v9994_v53  ;;  %v3213_v12 = vpack.c.bf16 %v10314_v11, %v10291_v52  ;;  %v3202_v52 = vld [vmem:[#allocation2 + $0x70] sm:$0xff]  ;;  %v4169_v11 = vld [vmem:[#allocation2 + $0x298] sm:$0xff] }
 0x1ec   : > { %v10341_v27 = vpop.f32.mrf.mxu1  ;;  %8960 = vmatpush3.bf16.msra.mxu1 %v9213_v58  ;;  %9076 = vmatpush3.bf16.msra.mxu0 %v10272_v54  ;;  %v3198_v58 = vld [vmem:[#allocation2 + $0x48] sm:$0xff] }
 0x1ed   : > { %8961 = vmatprep.subr.bf16.mxu1 %v9214_v48  ;;  %9077 = vmatprep.subr.bf16.mxu0 %v10331_v24 }
 0x1ee   : > { %v10355_v53 = vpop.f32.mrf.mxu1 }
 0x1f0   : > { %v10361_v23 = vpop.f32.mrf.mxu1  ;;  %8962 = vmatpush3.bf16.msra.mxu1 %v9214_v48  ;;  %9078 = vmatpush3.bf16.msra.mxu0 %v10331_v24 }
 0x1f1   : > { %9003 = vmatprep.subr.bf16.mxu1 %v9217_v22  ;;  %9079 = vmatprep.subr.bf16.mxu0 %v10353_v10 }
 0x1f2   : > { %v10373_v49 = vpop.f32.mrf.mxu1  ;;  %8924 = vmatmul.mubr.msk.bf16.gmra.mxu1 %vm1176_vm0, %v2828_v0  ;;  %9040 = vmatmul.mubr.msk.bf16.gmra.mxu0 %vm1176_vm0, %v9990_v38  ;;  %v3801_v38 = vpack.c.bf16 %v10383_v45, %v3791_v42  ;;  %v4172_v42 = vld [vmem:[#allocation2 + $0x2b8] sm:$0xff] }
 0x1f3   : > { %8927 = vmatprep.mubr.msk.bf16.mxu1 %vm1176_vm0, %v2829_v35  ;;  %9043 = vmatprep.mubr.msk.bf16.mxu0 %vm1176_vm0, %v10017_v61  ;;  %v2830_v61 = vpack.c.bf16 %v10391_v4, %v10386_v1  ;;  %v4171_v35 = vld [vmem:[#allocation2 + $0x2b0] sm:$0xff] }
 0x1f4   : > { %v10381_v50 = vpop.f32.mrf.mxu1  ;;  %9080 = vmatpush3.bf16.msra.mxu0 %v10353_v10 }
 0x1f5   : > { %9081 = vmatprep.subr.bf16.mxu0 %v10371_v56 }
 0x1f6   : > { %v10389_v46 = vpop.f32.mrf.mxu1 }
 0x1f8   : > { %v10394_v59 = vpop.f32.mrf.mxu1  ;;  %9082 = vmatpush3.bf16.msra.mxu0 %v10371_v56 }
 0x1fa   : > { %v10401_v55 = vpop.f32.mrf.mxu1  ;;  %8928 = vmatmul.mubr.msk.bf16.gmra.mxu1 %vm1176_vm0, %v2830_v61  ;;  %9044 = vmatmul.mubr.msk.bf16.gmra.mxu0 %vm1176_vm0, %v10014_v6  ;;  %v3212_v6 = vpack.c.bf16 %v3198_v58, %v10293_v8  ;;  %v4184_v61 = vpack.c.bf16 %v10061_v41, %v4169_v11  ;;  %v4185_v58 = vpack.c.bf16 %v4172_v42, %v4171_v35 }
 0x1fb   : > { %8963 = vmatprep.mubr.msk.bf16.mxu1 %vm1176_vm0, %v3211_v39  ;;  %9047 = vmatprep.mubr.msk.bf16.mxu0 %vm1176_vm0, %v3801_v38  ;;  %v3214_v38 = vpack.c.bf16 %v3202_v52, %v10318_v19  ;;  %v3215_v39 = vpack.c.bf16 %v10344_v26, %v10316_v36  ;;  %v4173_v26 = vld [vmem:[#allocation2 + $0x2c0] sm:$0xff]  ;;  %v4175_v52 = vld [vmem:[#allocation2 + $0x2d8] sm:$0xff]  ;;  %v3217_v42 = vpack.c.bf16 %v10386_v1, %v10357_v60 }
 0x1fc   : > { %v10412_v7 = vpop.f32.mrf.mxu1  ;;  %v3210_v60 = vld [vmem:[#allocation2 + $0xc0] sm:$0xff] }
 0x1fe   : > { %v10414_v9 = vpop.f32.mrf.mxu1 }
 0x200   : > { %v10418_v2 = vpop.f32.mrf.mxu1 }
 0x202   : > { %v10426_v48 = vpop.f32.mrf.mxu1  ;;  %8964 = vmatmul.mubr.msk.bf16.vlgmr.msra.gmra.mxu1 %vm1176_vm0, %v3212_v6  ;;  %9048 = vmatmul.mubr.msk.bf16.gmra.mxu0 %vm1176_vm0, %v3802_v20  ;;  %v9222_v20 = vld [vmem:[%s11639_s3 + $0x180] sm:$0xff]  }
 0x203   : > { %9004 = vmatpush3.bf16.msra.mxu1 %v9217_v22  ;;  %8967 = vmatprep.mubr.msk.bf16.mxu1 %vm1176_vm0, %v3213_v12 }
 0x204   : > { %9083 = vmatprep.mubr.msk.bf16.mxu0 %vm1176_vm0, %v10043_v63  ;;  %v10433_v8 = vpop.f32.mrf.mxu1  ;;  %9005 = vmatprep.subr.bf16.mxu1 %v9220_v40 }
 0x206   : > { %v10438_v0 = vpop.f32.mrf.mxu1 }
 0x207   : > { %9006 = vmatpush3.bf16.msra.mxu1 %v9220_v40  ;;  %v9223_v40 = vld [vmem:[%s11639_s3 + $0x1d8] sm:$0xff]  }
 0x208   : > { %v1583_v22 = vpop.f32.mrf.mxu1  ;;  %9007 = vmatprep.subr.bf16.mxu1 %v9221_v28 }
 0x209   : > { %v10443_v63 = vadd.f32 %v1583_v22, %v10320_v34  ;;  %v3206_v34 = vld [vmem:[#allocation2 + $0x98] sm:$0xff]  ;;  %v4187_v22 = vpack.c.bf16 %v10005_v57, %v4175_v52 }
 0x20a   : > { %v8753_v6 = vpop.f32.mrf.mxu1  ;;  %8968 = vmatmul.mubr.msk.bf16.gmra.mxu1 %vm1176_vm0, %v3214_v38  ;;  %9084 = vmatmul.mubr.msk.bf16.vlgmr.msra.gmra.mxu0 %vm1176_vm0, %v4184_v61  ;;  %v3216_v35 = vpack.c.bf16 %v3206_v34, %v10359_v32 }
 0x20b   : > { %v10453_v19 = vadd.f32 %v8753_v6, %v10333_v31  ;;  %8971 = vmatprep.mubr.msk.bf16.mxu1 %vm1176_vm0, %v3215_v39  ;;  %9087 = vmatprep.mubr.msk.bf16.mxu0 %vm1176_vm0, %v4185_v58  ;;  %v3218_v39 = vpack.c.bf16 %v3210_v60, %v10391_v4 }
 0x20c   : > { %v1596_v41 = vpop.f32.mrf.mxu1  ;;  %9008 = vmatpush3.bf16.msra.mxu1 %v9221_v28  ;;  %v4186_v28 = vpack.c.bf16 %v10087_v5, %v4173_v26 }
 0x20d   : > { %v10458_v36 = vadd.f32 %v1596_v41, %v10341_v27  ;;  %9009 = vmatprep.subr.bf16.mxu1 %v9222_v20  ;;  %v9224_v41 = vld [vmem:[%s11639_s3 + $0x1d0] sm:$0xff]  }
 0x20e   : > { %v8754_v12 = vpop.f32.mrf.mxu1 }
 0x20f   : > { %v10464_v31 = vadd.f32 %v8754_v12, %v10355_v53 }
 0x210   : > { %v1599_v11 = vpop.f32.mrf.mxu1  ;;  %9010 = vmatpush3.bf16.msra.mxu1 %v9222_v20 }
 0x211   : > { %v10469_v27 = vadd.f32 %v1599_v11, %v10361_v23  ;;  %9051 = vmatprep.subr.bf16.mxu1 %v9223_v40  ;;  %v4177_v23 = vld [vmem:[#allocation2 + $0x2e8] sm:$0xff] }
 0x212   : > { %v8757_v38 = vpop.f32.mrf.mxu1  ;;  %8972 = vmatmul.mubr.msk.bf16.gmra.mxu1 %vm1176_vm0, %v3216_v35  ;;  %9088 = vmatmul.mubr.msk.bf16.gmra.mxu0 %vm1176_vm0, %v4186_v28  ;;  %v3596_v35 = vld [vmem:[#allocation2 + $0x230] sm:$0xff]  ;;  %v10547_v28 = vld [vmem:[#allocation2 + $0x238] sm:$0xff] }
 0x213   : > { %v10477_v53 = vadd.f32 %v8757_v38, %v10373_v49  ;;  %8975 = vmatprep.mubr.msk.bf16.mxu1 %vm1176_vm0, %v3217_v42  ;;  %9091 = vmatprep.mubr.msk.bf16.mxu0 %vm1176_vm0, %v4187_v22  ;;  %v4188_v49 = vpack.c.bf16 %v10107_v21, %v4177_v23  ;;  %v10572_v23 = vld [vmem:[#allocation2 + $0x240] sm:$0xff] }
 0x214   : > { %v1612_v5 = vpop.f32.mrf.mxu1 }
 0x215   : > { %v10482_v32 = vadd.f32 %v1612_v5, %v10381_v50 }
 0x216   : > { %v8758_v57 = vpop.f32.mrf.mxu1 }
 0x217   : > { %v10485_v1 = vadd.f32 %v8758_v57, %v10389_v46  ;;  %v10574_v57 = vld [vmem:[#allocation2 + $0x248] sm:$0xff] }
 0x218   : > { %v1615_v61 = vpop.f32.mrf.mxu1 }
 0x219   : > { %v10490_v58 = vadd.f32 %v1615_v61, %v10394_v59 }
 0x21a   : > { %v8761_v20 = vpop.f32.mrf.mxu1  ;;  %8976 = vmatmul.mubr.msk.bf16.gmra.mxu1 %vm1176_vm0, %v3218_v39  ;;  %9092 = vmatmul.mubr.msk.bf16.gmra.mxu0 %vm1176_vm0, %v4188_v49 }
 0x21b   : > { %v10495_v50 = vadd.f32 %v8761_v20, %v10401_v55  ;;  %9011 = vmatprep.mubr.msk.bf16.mxu1 %vm1176_vm0, %v10123_v29  ;;  %v1589_v55 = vadd.f32 %v10426_v48, %v10287_v47  ;;  %v9225_v47 = vld [vmem:[%s11639_s3 + $0x1c8] sm:$0xff]  }
 0x21c   : > { %v1628_v46 = vpop.f32.mrf.mxu1 }
 0x21d   : > { %v10500_v6 = vadd.f32 %v1628_v46, %v10412_v7  ;;  %v1581_v7 = vadd.f32 %v10433_v8, %v10295_v3 }
 0x21e   : > { %v8762_v4 = vpop.f32.mrf.mxu1 }
 0x21f   : > { %v10503_v21 = vadd.f32 %v8762_v4, %v10414_v9 }
 0x220   : > { %v1631_v59 = vpop.f32.mrf.mxu1 }
 0x221   : > { %v10511_v34 = vadd.f32 %v1631_v59, %v10418_v2  ;;  %v1592_v2 = vadd.f32 %v10438_v0, %v10307_v44 }
 0x222   : > { %v8773_v29 = vpop.f32.mrf.mxu1  ;;  %9012 = vmatmul.mubr.msk.bf16.vlgmr.msra.gmra.mxu1 %vm1176_vm0, %v10142_v33 }
 0x223   : > { %v10517_v9 = vadd.f32 %v8773_v29, %v1589_v55  ;;  %9052 = vmatpush3.bf16.msra.mxu1 %v9223_v40  ;;  %9015 = vmatprep.mubr.msk.bf16.mxu1 %vm1176_vm0, %v10145_v51  ;;  %v9226_v51 = vld [vmem:[%s11639_s3 + $0x1c0] sm:$0xff]  }
 0x224   : > { %v1758_v26 = vpop.f32.mrf.mxu1  ;;  %9053 = vmatprep.subr.bf16.mxu1 %v9224_v41 }
 0x225   : > { %v10526_v48 = vadd.f32 %v1758_v26, %v1581_v7 }
 0x226   : > { %v8774_v33 = vpop.f32.mrf.mxu1 }
 0x227   : > { %v10528_v12 = vadd.f32 %v8774_v33, %v1592_v2  ;;  %9054 = vmatpush3.bf16.msra.mxu1 %v9224_v41 }
 0x228   : > { %v1761_v3 = vpop.f32.mrf.mxu1  ;;  %9055 = vmatprep.subr.bf16.mxu1 %v9225_v47 }
 0x229   : > { %v10534_v8 = vadd.f32 %v1761_v3, %v10443_v63 }
 0x22a   : > { %v8777_v40 = vpop.f32.mrf.mxu1  ;;  %v10536_v52 = vpop.f32.mrf.mxu0  ;;  %9016 = vmatmul.mubr.msk.bf16.gmra.mxu1 %vm1176_vm0, %v10172_v13 }
 0x22b   : > { %v10541_v44 = vadd.f32 %v8777_v40, %v10453_v19  ;;  %9019 = vmatprep.mubr.msk.bf16.mxu1 %vm1176_vm0, %v10175_v43  ;;  %9056 = vmatpush3.bf16.msra.mxu1 %v9225_v47  ;;  %v3606_v19 = vpack.c.bf16 %v10547_v28, %v3596_v35 }
 0x22c   : > { %v1774_v0 = vpop.f32.mrf.mxu1  ;;  %v10545_v11 = vpop.f32.mrf.mxu0  ;;  %9057 = vmatprep.subr.bf16.mxu1 %v9226_v51 }
 0x22d   : > { %v10550_v63 = vadd.f32 %v1774_v0, %v10458_v36 }
 0x22e   : > { %v8778_v42 = vpop.f32.mrf.mxu1  ;;  %v10552_v22 = vpop.f32.mrf.mxu0 }
 0x22f   : > { %v10555_v13 = vadd.f32 %v8778_v42, %v10464_v31  ;;  %9058 = vmatpush3.bf16.msra.mxu1 %v9226_v51 }
 0x230   : > { %v1777_v43 = vpop.f32.mrf.mxu1  ;;  %v10558_v38 = vpop.f32.mrf.mxu0  ;;  %9099 = vmatprep.subr.bf16.mxu1 %v10272_v54 }
 0x231   : > { %v10562_v5 = vadd.f32 %v1777_v43, %v10469_v27 }
 0x232   : > { %v8781_v60 = vpop.f32.mrf.mxu1  ;;  %v10564_v36 = vpop.f32.mrf.mxu0  ;;  %9020 = vmatmul.mubr.msk.bf16.gmra.mxu1 %vm1176_vm0, %v10196_v16  ;;  %v3607_v16 = vpack.c.bf16 %v10574_v57, %v10572_v23 }
 0x233   : > { %v10569_v31 = vadd.f32 %v8781_v60, %v10477_v53  ;;  %9023 = vmatprep.mubr.msk.bf16.mxu1 %vm1176_vm0, %v3606_v19  ;;  %v3973_v53 = vld [vmem:[#allocation2 + $0x1c0] sm:$0xff] }
 0x234   : > { %v1790_v61 = vpop.f32.mrf.mxu1  ;;  %v10576_v39 = vpop.f32.mrf.mxu0  ;;  %v3989_v55 = vpack.c.bf16 %v10134_v30, %v3973_v53 }
 0x235   : > { %v10579_v27 = vadd.f32 %v1790_v61, %v10482_v32 }
 0x236   : > { %v8782_v49 = vpop.f32.mrf.mxu1  ;;  %v10581_v20 = vpop.f32.mrf.mxu0 }
 0x237   : > { %v10586_v46 = vadd.f32 %v8782_v49, %v10485_v1 }
 0x238   : > { %v1793_v4 = vpop.f32.mrf.mxu1  ;;  %v10588_v59 = vpop.f32.mrf.mxu0 }
 0x239   : > { %v10591_v41 = vadd.f32 %v1793_v4, %v10490_v58  ;;  %v3975_v58 = vld [vmem:[#allocation2 + $0x1d0] sm:$0xff] }
 0x23a   : > { %v8785_v32 = vpop.f32.mrf.mxu1  ;;  %v10594_v29 = vpop.f32.mrf.mxu0  ;;  %9024 = vmatmul.mubr.msk.bf16.gmra.mxu1 %vm1176_vm0, %v3607_v16  ;;  %v3983_v16 = vld [vmem:[#allocation2 + $0x220] sm:$0xff] }
 0x23b   : > { %v10598_v7 = vadd.f32 %v8785_v32, %v10495_v50  ;;  %9059 = vmatprep.mubr.msk.bf16.mxu1 %vm1176_vm0, %v3989_v55  ;;  %v3990_v50 = vpack.c.bf16 %v10226_v18, %v3975_v58  ;;  %v3994_v32 = vpack.c.bf16 %v10267_v15, %v3983_v16 }
 0x23c   : > { %v1806_v1 = vpop.f32.mrf.mxu1  ;;  %v10601_v26 = vpop.f32.mrf.mxu0 }
 0x23d   : > { %v10604_v47 = vadd.f32 %v1806_v1, %v10500_v6 }
 0x23e   : > { %v8786_v2 = vpop.f32.mrf.mxu1  ;;  %v10606_v33 = vpop.f32.mrf.mxu0 }
 0x23f   : > { %v10609_v30 = vadd.f32 %v8786_v2, %v10503_v21 }
 0x240   : > { %v1809_v3 = vpop.f32.mrf.mxu1  ;;  %v10611_v51 = vpop.f32.mrf.mxu0 }
 0x241   : > { %v10615_v40 = vadd.f32 %v1809_v3, %v10511_v34  ;;  %v3979_v34 = vld [vmem:[#allocation2 + $0x1f8] sm:$0xff] }
 0x242   : > { %v8797_v0 = vpop.f32.mrf.mxu1  ;;  %v10617_v35 = vpop.f32.mrf.mxu0  ;;  %9060 = vmatmul.mubr.msk.bf16.vlgmr.msra.gmra.mxu1 %vm1176_vm0, %v3990_v50 }
 0x243   : > { %v10621_v6 = vadd.f32 %v8797_v0, %v10517_v9  ;;  %9103 = vmatpush3.bf16.msra.mxu1 %v10272_v54  ;;  %9063 = vmatprep.mubr.msk.bf16.mxu1 %vm1176_vm0, %v10232_v25  ;;  %v3992_v25 = vpack.c.bf16 %v10245_v62, %v3979_v34 }
 0x244   : > { %v1952_v21 = vpop.f32.mrf.mxu1  ;;  %v10626_v42 = vpop.f32.mrf.mxu0  ;;  %9100 = vmatprep.subr.bf16.mxu1 %v10331_v24 }
 0x245   : > { %v10630_v18 = vadd.f32 %v1952_v21, %v10526_v48 }
 0x246   : > { %v8798_v19 = vpop.f32.mrf.mxu1  ;;  %v10632_v43 = vpop.f32.mrf.mxu0 }
 0x247   : > { %v10635_v9 = vadd.f32 %v8798_v19, %v10528_v12  ;;  %9104 = vmatpush3.bf16.msra.mxu1 %v10331_v24 }
 0x248   : > { %v1955_v54 = vpop.f32.mrf.mxu1  ;;  %v10638_v60 = vpop.f32.mrf.mxu0  ;;  %9101 = vmatprep.subr.bf16.mxu1 %v10353_v10 }
 0x249   : > { %v10643_v61 = vadd.f32 %v1955_v54, %v10534_v8 }
 0x24a   : > { %v8801_v48 = vpop.f32.mrf.mxu1  ;;  %v10645_v49 = vpop.f32.mrf.mxu0  ;;  %9064 = vmatmul.mubr.msk.bf16.gmra.mxu1 %vm1176_vm0, %v3992_v25 }
 0x24b   : > { %v10649_v12 = vadd.f32 %v8801_v48, %v10541_v44  ;;  %9067 = vmatprep.mubr.msk.bf16.mxu1 %vm1176_vm0, %v10257_v37  ;;  %9105 = vmatpush3.bf16.msra.mxu1 %v10353_v10  ;;  %v3995_v37 = vpack.c.bf16 %v10572_v23, %v10547_v28  ;;  %v3988_v28 = vld [vmem:[#allocation2 + $0x250] sm:$0xff] }
 0x24c   : > { %v1968_v24 = vpop.f32.mrf.mxu1  ;;  %v10654_v62 = vpop.f32.mrf.mxu0  ;;  %9102 = vmatprep.subr.bf16.mxu1 %v10371_v56  ;;  %v3996_v3 = vpack.c.bf16 %v3988_v28, %v10574_v57  ;;  %v4182_v57 = vld [vmem:[#allocation2 + $0x318] sm:$0xff] }
 0x24d   : > { %v10658_v8 = vadd.f32 %v1968_v24, %v10550_v63 }
 0x24e   : > { %v8802_v53 = vpop.f32.mrf.mxu1  ;;  %v10660_v4 = vpop.f32.mrf.mxu0 }
 0x24f   : > { %v10663_v44 = vadd.f32 %v8802_v53, %v10555_v13  ;;  %9106 = vmatpush3.bf16.msra.mxu1 %v10371_v56 }
 0x250   : > { %v1971_v10 = vpop.f32.mrf.mxu1  ;;  %v10668_v55 = vpop.f32.mrf.mxu0 }
 0x251   : > { %v10672_v63 = vadd.f32 %v1971_v10, %v10562_v5 }
 0x252   : > { %v8805_v1 = vpop.f32.mrf.mxu1  ;;  %v10674_v58 = vpop.f32.mrf.mxu0  ;;  %9068 = vmatmul.mubr.msk.bf16.gmra.mxu1 %vm1176_vm0, %v3994_v32 }
 0x253   : > { %v10678_v13 = vadd.f32 %v8805_v1, %v10569_v31  ;;  %9071 = vmatprep.mubr.msk.bf16.mxu1 %vm1176_vm0, %v3995_v37  ;;  %v4189_v31 = vpack.c.bf16 %v10408_v14, %v10383_v45 }
 0x254   : > { %v1984_v56 = vpop.f32.mrf.mxu1  ;;  %v10681_v23 = vpop.f32.mrf.mxu0 }
 0x255   : > { %v10684_v2 = vadd.f32 %v1984_v56, %v10579_v27 }
 0x256   : > { %v8806_v15 = vpop.f32.mrf.mxu1  ;;  %v10686_v5 = vpop.f32.mrf.mxu0 }
 0x257   : > { %v10690_v50 = vadd.f32 %v8806_v15, %v10586_v46 }
 0x258   : > { %v1987_v0 = vpop.f32.mrf.mxu1  ;;  %v10694_v21 = vpop.f32.mrf.mxu0 }
 0x259   : > { %v10697_v34 = vadd.f32 %v1987_v0, %v10591_v41  ;;  %v4190_v41 = vpack.c.bf16 %v4182_v57, %v10410_v17 }
 0x25a   : > { %v8809_v19 = vpop.f32.mrf.mxu1  ;;  %v10699_v27 = vpop.f32.mrf.mxu0  ;;  %9072 = vmatmul.mubr.msk.bf16.gmra.mxu1 %vm1176_vm0, %v3996_v3 }
 0x25b   : > { %v10703_v54 = vadd.f32 %v8809_v19, %v10598_v7  ;;  %9095 = vmatprep.mubr.msk.bf16.mxu1 %vm1176_vm0, %v4189_v31 }
 0x25c   : > { %v2000_v46 = vpop.f32.mrf.mxu1  ;;  %v10706_v25 = vpop.f32.mrf.mxu0 }
 0x25d   : > { %v2027_v45 = vadd.f32 %v2000_v46, %v10604_v47 }
 0x25e   : > { %v8810_v14 = vpop.f32.mrf.mxu1  ;;  %v10709_v48 = vpop.f32.mrf.mxu0 }
 0x25f   : > { %v2030_v24 = vadd.f32 %v8810_v14, %v10609_v30 }
 0x260   : > { %v2003_v16 = vpop.f32.mrf.mxu1  ;;  %v10713_v53 = vpop.f32.mrf.mxu0 }
 0x261   : > { %v10716_v7 = vadd.f32 %v2003_v16, %v10615_v40 }
 0x262   : > { %v8821_v37 = vpop.f32.mrf.mxu1  ;;  %v10718_v10 = vpop.f32.mrf.mxu0  ;;  %9096 = vmatmul.mubr.msk.bf16.vlgmr.msra.gmra.mxu1 %vm1176_vm0, %v4190_v41 }
 0x263   : > { %v2211_v47 = vadd.f32 %v8821_v37, %v10621_v6 }
 0x264   : > { %v2146_v32 = vpop.f32.mrf.mxu1  ;;  %v10722_v1 = vpop.f32.mrf.mxu0 }
 0x265   : > { %v2209_v17 = vadd.f32 %v2146_v32, %v10630_v18  ;;  %v2405_v30 = vadd.f32 %v10536_v52, %v2211_v47 }
 0x266   : > { %v8822_v28 = vpop.f32.mrf.mxu1  ;;  %v10726_v56 = vpop.f32.mrf.mxu0 }
 0x267   : > { %v2212_v40 = vadd.f32 %v8822_v28, %v10635_v9  ;;  %v2403_v15 = vadd.f32 %v10545_v11, %v2209_v17 }
 0x268   : > { %v2149_v3 = vpop.f32.mrf.mxu1  ;;  %v10730_v31 = vpop.f32.mrf.mxu0 }
 0x269   : > { %v2210_v0 = vadd.f32 %v2149_v3, %v10643_v61  ;;  %v2406_v6 = vadd.f32 %v10552_v22, %v2212_v40 }
 0x26a   : > { %v8825_v19 = vpop.f32.mrf.mxu1  ;;  %v10734_v57 = vpop.f32.mrf.mxu0 }
 0x26b   : > { %v2215_v18 = vadd.f32 %v8825_v19, %v10649_v12  ;;  %v2404_v52 = vadd.f32 %v10558_v38, %v2210_v0 }
 0x26c   : > { %v2162_v46 = vpop.f32.mrf.mxu1  ;;  %v10738_v14 = vpop.f32.mrf.mxu0 }
 0x26d   : > { %v2213_v9 = vadd.f32 %v2162_v46, %v10658_v8  ;;  %v2409_v11 = vadd.f32 %v10564_v36, %v2215_v18 }
 0x26e   : > { %v8826_v41 = vpop.f32.mrf.mxu1  ;;  %v10742_v16 = vpop.f32.mrf.mxu0 }
 0x26f   : > { %v2216_v61 = vadd.f32 %v8826_v41, %v10663_v44  ;;  %v2407_v22 = vadd.f32 %v10576_v39, %v2213_v9 }
 0x270   : > { %v2165_v37 = vpop.f32.mrf.mxu1  ;;  %v10746_v47 = vpop.f32.mrf.mxu0 }
 0x271   : > { %v2214_v12 = vadd.f32 %v2165_v37, %v10672_v63  ;;  %v2410_v38 = vadd.f32 %v10581_v20, %v2216_v61 }
 0x272   : > { %v8829_v32 = vpop.f32.mrf.mxu1  ;;  %v10750_v17 = vpop.f32.mrf.mxu0 }
 0x273   : > { %v2219_v8 = vadd.f32 %v8829_v32, %v10678_v13  ;;  %v2408_v36 = vadd.f32 %v10588_v59, %v2214_v12 }
 0x274   : > { %v2178_v28 = vpop.f32.mrf.mxu1  ;;  %v10754_v40 = vpop.f32.mrf.mxu0 }
 0x275   : > { %v2217_v44 = vadd.f32 %v2178_v28, %v10684_v2  ;;  %v2413_v39 = vadd.f32 %v10594_v29, %v2219_v8 }
 0x276   : > { %v8830_v3 = vpop.f32.mrf.mxu1  ;;  %v10758_v0 = vpop.f32.mrf.mxu0 }
 0x277   : > { %v2220_v63 = vadd.f32 %v8830_v3, %v10690_v50  ;;  %v2411_v20 = vadd.f32 %v10601_v26, %v2217_v44 }
 0x278   : > { %v2181_v19 = vpop.f32.mrf.mxu1  ;;  %v10762_v18 = vpop.f32.mrf.mxu0 }
 0x279   : > { %v2218_v13 = vadd.f32 %v2181_v19, %v10697_v34  ;;  %v2414_v59 = vadd.f32 %v10606_v33, %v2220_v63 }
 0x27a   : > { %v8833_v46 = vpop.f32.mrf.mxu1  ;;  %v10766_v9 = vpop.f32.mrf.mxu0 }
 0x27b   : > { %v2223_v2 = vadd.f32 %v8833_v46, %v10703_v54  ;;  %v2412_v29 = vadd.f32 %v10611_v51, %v2218_v13 }
 0x27c   : > { %v2194_v41 = vpop.f32.mrf.mxu1  ;;  %v10770_v61 = vpop.f32.mrf.mxu0 }
 0x27d   : > { %v2221_v50 = vadd.f32 %v2194_v41, %v2027_v45  ;;  %v2417_v26 = vadd.f32 %v10617_v35, %v2223_v2 }
 0x27e   : > { %v8834_v37 = vpop.f32.mrf.mxu1  ;;  %v10773_v12 = vpop.f32.mrf.mxu0 }
 0x27f   : > { %v2224_v32 = vadd.f32 %v8834_v37, %v2030_v24  ;;  %v2415_v34 = vadd.f32 %v10626_v42, %v2221_v50 }
 0x280   : > { %v2197_v33 = vpop.f32.mrf.mxu1  ;;  %v10776_v8 = vpop.f32.mrf.mxu0 }
 0x281   : > { %v2222_v28 = vadd.f32 %v2197_v33, %v10716_v7  ;;  %v2418_v54 = vadd.f32 %v10632_v43, %v2224_v32 }
 0x282   : > { %v8869_v51 = vpop.f32.mrf.mxu1  ;;  %v10780_v44 = vpop.f32.mrf.mxu0 }
 0x283   : > { %v2599_v3 = vadd.f32 %v8869_v51, %v2405_v30  ;;  %v2416_v45 = vadd.f32 %v10638_v60, %v2222_v28 }
 0x284   : > { %v2534_v35 = vpop.f32.mrf.mxu1  ;;  %v10783_v63 = vpop.f32.mrf.mxu0 }
 0x285   : > { %v2597_v19 = vadd.f32 %v2534_v35, %v2403_v15  ;;  %v2793_v24 = vadd.f32 %v10645_v49, %v2599_v3 }
 0x286   : > { %v8870_v42 = vpop.f32.mrf.mxu1  ;;  %v10786_v13 = vpop.f32.mrf.mxu0 }
 0x287   : > { %v2600_v46 = vadd.f32 %v8870_v42, %v2406_v6  ;;  %v2791_v7 = vadd.f32 %v10654_v62, %v2597_v19 }
 0x288   : > { %v2537_v2 = vpop.f32.mrf.mxu1  ;;  %v10789_v43 = vpop.f32.mrf.mxu0 }
 0x289   : > { %v2598_v41 = vadd.f32 %v2537_v2, %v2404_v52  ;;  %v2794_v30 = vadd.f32 %v10660_v4, %v2600_v46 }
 0x28a   : > { %v8873_v50 = vpop.f32.mrf.mxu1  ;;  %v10792_v60 = vpop.f32.mrf.mxu0 }
 0x28b   : > { %v2603_v37 = vadd.f32 %v8873_v50, %v2409_v11  ;;  %v2792_v15 = vadd.f32 %v10668_v55, %v2598_v41 }
 0x28c   : > { %v2550_v32 = vpop.f32.mrf.mxu1  ;;  %v10795_v49 = vpop.f32.mrf.mxu0 }
 0x28d   : > { %v2601_v33 = vadd.f32 %v2550_v32, %v2407_v22  ;;  %v2797_v6 = vadd.f32 %v10674_v58, %v2603_v37 }
 0x28e   : > { %v8874_v28 = vpop.f32.mrf.mxu1  ;;  %v10798_v62 = vpop.f32.mrf.mxu0 }
 0x28f   : > { %v2604_v51 = vadd.f32 %v8874_v28, %v2410_v38  ;;  %v2795_v52 = vadd.f32 %v10681_v23, %v2601_v33 }
 0x290   : > { %v2553_v3 = vpop.f32.mrf.mxu1  ;;  %v10801_v4 = vpop.f32.mrf.mxu0 }
 0x291   : > { %v2602_v35 = vadd.f32 %v2553_v3, %v2408_v36  ;;  %v2798_v11 = vadd.f32 %v10686_v5, %v2604_v51 }
 0x292   : > { %v8877_v19 = vpop.f32.mrf.mxu1  ;;  %v10804_v55 = vpop.f32.mrf.mxu0 }
 0x293   : > { %v2607_v42 = vadd.f32 %v8877_v19, %v2413_v39  ;;  %v2796_v22 = vadd.f32 %v10694_v21, %v2602_v35 }
 0x294   : > { %v2566_v46 = vpop.f32.mrf.mxu1  ;;  %v10807_v58 = vpop.f32.mrf.mxu0 }
 0x295   : > { %v2605_v2 = vadd.f32 %v2566_v46, %v2411_v20  ;;  %v2801_v38 = vadd.f32 %v10699_v27, %v2607_v42 }
 0x296   : > { %v8878_v41 = vpop.f32.mrf.mxu1  ;;  %v10810_v23 = vpop.f32.mrf.mxu0 }
 0x297   : > { %v2608_v50 = vadd.f32 %v8878_v41, %v2414_v59  ;;  %v2799_v36 = vadd.f32 %v10706_v25, %v2605_v2 }
 0x298   : > { %v2569_v37 = vpop.f32.mrf.mxu1  ;;  %v10813_v5 = vpop.f32.mrf.mxu0 }
 0x299   : > { %v2606_v32 = vadd.f32 %v2569_v37, %v2412_v29  ;;  %v2802_v39 = vadd.f32 %v10709_v48, %v2608_v50 }
 0x29a   : > { %v8881_v33 = vpop.f32.mrf.mxu1  ;;  %v10816_v21 = vpop.f32.mrf.mxu0 }
 0x29b   : > { %v2611_v28 = vadd.f32 %v8881_v33, %v2417_v26  ;;  %v2800_v20 = vadd.f32 %v10713_v53, %v2606_v32 }
 0x29c   : > { %v2582_v51 = vpop.f32.mrf.mxu1  ;;  %v10819_v27 = vpop.f32.mrf.mxu0 }
 0x29d   : > { %v2609_v3 = vadd.f32 %v2582_v51, %v2415_v34  ;;  %v2805_v59 = vadd.f32 %v10718_v10, %v2611_v28 }
 0x29e   : > { %v8882_v35 = vpop.f32.mrf.mxu1  ;;  %v10822_v25 = vpop.f32.mrf.mxu0 }
 0x29f   : > { %v2612_v19 = vadd.f32 %v8882_v35, %v2418_v54  ;;  %v2803_v29 = vadd.f32 %v10722_v1, %v2609_v3 }
 0x2a0   : > { %v2585_v42 = vpop.f32.mrf.mxu1  ;;  %v10825_v48 = vpop.f32.mrf.mxu0 }
 0x2a1   : > { %v2610_v46 = vadd.f32 %v2585_v42, %v2416_v45  ;;  %v2806_v26 = vadd.f32 %v10726_v56, %v2612_v19 }
 0x2a2   : > { %v8917_v2 = vpop.f32.mrf.mxu1  ;;  %v10828_v53 = vpop.f32.mrf.mxu0 }
 0x2a3   : > { %v2987_v41 = vadd.f32 %v8917_v2, %v2793_v24  ;;  %v2804_v34 = vadd.f32 %v10730_v31, %v2610_v46 }
 0x2a4   : > { %v2922_v50 = vpop.f32.mrf.mxu1  ;;  %v10831_v10 = vpop.f32.mrf.mxu0 }
 0x2a5   : > { %11650 = vst [vmem:[#allocation8_spill] sm:$0xff] %v10831_v10  ;;  %v2985_v37 = vadd.f32 %v2922_v50, %v2791_v7  ;;  %v3181_v54 = vadd.f32 %v10734_v57, %v2987_v41 }
 0x2a6   : > { %v8918_v32 = vpop.f32.mrf.mxu1  ;;  %v10834_v1 = vpop.f32.mrf.mxu0 }
 0x2a7   : > { %11651 = vst [vmem:[#allocation9_spill] sm:$0xff] %v10834_v1  ;;  %v2988_v33 = vadd.f32 %v8918_v32, %v2794_v30  ;;  %v3179_v45 = vadd.f32 %v10738_v14, %v2985_v37 }
 0x2a8   : > { %v2925_v28 = vpop.f32.mrf.mxu1  ;;  %v10838_v3 = vpop.f32.mrf.mxu0 }
 0x2a9   : > { %v2986_v56 = vadd.f32 %v2925_v28, %v2792_v15  ;;  %v3182_v51 = vadd.f32 %v10742_v16, %v2988_v33  ;;  %11652 = vst [vmem:[#allocation10_spill] sm:$0xff] %v10838_v3 }
 0x2aa   : > { %v8921_v24 = vpop.f32.mrf.mxu1  ;;  %v10844_v42 = vpop.f32.mrf.mxu0 }
 0x2ab   : > { %v2991_v31 = vadd.f32 %v8921_v24, %v2797_v6  ;;  %v10841_v35 = vadd.f32 %v10746_v47, %v2986_v56 }
 0x2ac   : > { %v2938_v7 = vpop.f32.mrf.mxu1  ;;  %v10848_v41 = vpop.f32.mrf.mxu0 }
 0x2ad   : > { %v2989_v19 = vadd.f32 %v2938_v7, %v2795_v52  ;;  %v3185_v57 = vadd.f32 %v10750_v17, %v2991_v31 }
 0x2ae   : > { %v8922_v30 = vpop.f32.mrf.mxu1  ;;  %v10854_v32 = vpop.f32.mrf.mxu0 }
 0x2af   : > { %v2992_v46 = vadd.f32 %v8922_v30, %v2798_v11  ;;  %v3183_v14 = vadd.f32 %v10754_v40, %v2989_v19 }
 0x2b0   : > { %v2941_v15 = vpop.f32.mrf.mxu1  ;;  %v10858_v56 = vpop.f32.mrf.mxu0 }
 0x2b1   : > { %v2990_v2 = vadd.f32 %v2941_v15, %v2796_v22  ;;  %v3186_v16 = vadd.f32 %v10758_v0, %v2992_v46 }
 0x2b2   : > { %v8925_v6 = vpop.f32.mrf.mxu1  ;;  %v10864_v7 = vpop.f32.mrf.mxu0 }
 0x2b3   : > { %v2995_v50 = vadd.f32 %v8925_v6, %v2801_v38  ;;  %v10851_v47 = vadd.f32 %v10762_v18, %v2990_v2 }
 0x2b4   : > { %v2954_v52 = vpop.f32.mrf.mxu1  ;;  %v10868_v46 = vpop.f32.mrf.mxu0 }
 0x2b5   : > { %v2993_v37 = vadd.f32 %v2954_v52, %v2799_v36  ;;  %v3189_v17 = vadd.f32 %v10766_v9, %v2995_v50 }
 0x2b6   : > { %v8926_v11 = vpop.f32.mrf.mxu1  ;;  %v10874_v6 = vpop.f32.mrf.mxu0 }
 0x2b7   : > { %v2996_v33 = vadd.f32 %v8926_v11, %v2802_v39  ;;  %v3187_v40 = vadd.f32 %v10770_v61, %v2993_v37 }
 0x2b8   : > { %v2957_v22 = vpop.f32.mrf.mxu1  ;;  %v10876_v52 = vpop.f32.mrf.mxu0 }
 0x2b9   : > { %v2994_v28 = vadd.f32 %v2957_v22, %v2800_v20  ;;  %v3190_v0 = vadd.f32 %v10773_v12, %v2996_v33 }
 0x2ba   : > { %v8929_v38 = vpop.f32.mrf.mxu1 }
 0x2bb   : > { %v2999_v24 = vadd.f32 %v8929_v38, %v2805_v59  ;;  %v10861_v18 = vadd.f32 %v10776_v8, %v2994_v28 }
 0x2bc   : > { %v2970_v36 = vpop.f32.mrf.mxu1 }
 0x2bd   : > { %v2997_v31 = vadd.f32 %v2970_v36, %v2803_v29  ;;  %v3193_v9 = vadd.f32 %v10780_v44, %v2999_v24 }
 0x2be   : > { %v8930_v39 = vpop.f32.mrf.mxu1 }
 0x2bf   : > { %v3000_v19 = vadd.f32 %v8930_v39, %v2806_v26  ;;  %v3191_v61 = vadd.f32 %v10783_v63, %v2997_v31 }
 0x2c0   : > { %v2973_v20 = vpop.f32.mrf.mxu1 }
 0x2c1   : > { %v2998_v30 = vadd.f32 %v2973_v20, %v2804_v34  ;;  %v3194_v12 = vadd.f32 %v10786_v13, %v3000_v19 }
 0x2c2   : > { %v8965_v59 = vpop.f32.mrf.mxu1 }
 0x2c3   : > { %v3375_v15 = vadd.f32 %v8965_v59, %v3181_v54  ;;  %v10871_v8 = vadd.f32 %v10789_v43, %v2998_v30  ;;  %v10883_v43 = vpop.f32.mrf.mxu0 }
 0x2c4   : > { %v3310_v29 = vpop.f32.mrf.mxu1 }
 0x2c5   : > { %11653 = vst [vmem:[#allocation11_spill] sm:$0xff] %v10871_v8  ;;  %v3373_v2 = vadd.f32 %v3310_v29, %v3179_v45  ;;  %v3569_v44 = vadd.f32 %v10792_v60, %v3375_v15  ;;  %v10887_v22 = vpop.f32.mrf.mxu0 }
 0x2c6   : > { %v8966_v26 = vpop.f32.mrf.mxu1 }
 0x2c7   : > { %v3376_v50 = vadd.f32 %v8966_v26, %v3182_v51 }
 0x2c8   : > { %v3313_v63 = vpop.f32.mrf.mxu1 }
 0x2c9   : > { %v3570_v8 = vadd.f32 %v10798_v62, %v3376_v50 }
 0x2ca   : > { %v8969_v34 = vpop.f32.mrf.mxu1 }
 0x2cb   : > { %v3379_v13 = vadd.f32 %v8969_v34, %v3185_v57 }
 0x2cc   : > { %v3326_v37 = vpop.f32.mrf.mxu1 }
 0x2cd   : > { %v10878_v11 = vadd.f32 %v3326_v37, %v3183_v14  ;;  %v10881_v54 = vadd.f32 %v10804_v55, %v3379_v13  ;;  %v10894_v14 = vpop.f32.mrf.mxu0 }
 0x2ce   : > { %v8970_v45 = vpop.f32.mrf.mxu1  ;;  %11654 = vst [vmem:[#allocation12_spill] sm:$0xff] %v10894_v14 }
 0x2cf   : > { %v10885_v33 = vadd.f32 %v8970_v45, %v3186_v16  ;;  %v10900_v16 = vpop.f32.mrf.mxu0 }
 0x2d0   : > { %v3329_v60 = vpop.f32.mrf.mxu1  ;;  %11655 = vst [vmem:[#allocation13_spill] sm:$0xff] %v10900_v16 }
 0x2d2   : > { %v8973_v51 = vpop.f32.mrf.mxu1 }
 0x2d3   : > { %v3383_v28 = vadd.f32 %v8973_v51, %v3189_v17 }
 0x2d4   : > { %v3342_v38 = vpop.f32.mrf.mxu1 }
 0x2d5   : > { %v10889_v24 = vadd.f32 %v3342_v38, %v3187_v40  ;;  %v10892_v57 = vadd.f32 %v10816_v21, %v3383_v28  ;;  %v10907_v40 = vpop.f32.mrf.mxu0 }
 0x2d6   : > { %v8974_v55 = vpop.f32.mrf.mxu1  ;;  %11657 = vst [vmem:[#allocation15_spill] sm:$0xff] %v10907_v40 }
 0x2d7   : > { %v10896_v36 = vadd.f32 %v8974_v55, %v3190_v0  ;;  %v10913_v0 = vpop.f32.mrf.mxu0 }
 0x2d8   : > { %v10898_v31 = vpop.f32.mrf.mxu1  ;;  %11660 = vst [vmem:[#allocation18_spill] sm:$0xff] %v10913_v0  ;;  %v3567_v0 = vadd.f32 %v10795_v49, %v3373_v2  ;;  %v3378_v49 = vadd.f32 %v3329_v60, %v10851_v47 }
 0x2d9   : > { %v10915_v34 = vpop.f32.mrf.mxu0 }
 0x2da   : > { %v8977_v39 = vpop.f32.mrf.mxu1  ;;  %11661 = vst [vmem:[#allocation19_spill] sm:$0xff] %v10915_v34 }
 0x2db   : > { %v3387_v19 = vadd.f32 %v8977_v39, %v3193_v9 }
 0x2dc   : > { %v3358_v20 = vpop.f32.mrf.mxu1 }
 0x2dd   : > { %v10902_v30 = vadd.f32 %v3358_v20, %v3191_v61  ;;  %v10905_v17 = vadd.f32 %v10828_v53, %v3387_v19  ;;  %v10917_v61 = vpop.f32.mrf.mxu0 }
 0x2de   : > { %v8978_v21 = vpop.f32.mrf.mxu1  ;;  %11662 = vst [vmem:[#allocation20_spill] sm:$0xff] %v10917_v61  ;;  %v3374_v61 = vadd.f32 %v3313_v63, %v10841_v35  ;;  %v3571_v63 = vadd.f32 %v10807_v58, %v10878_v11 }
 0x2df   : > { %11656 = vst [vmem:[#allocation14_spill] sm:$0xff] %v10905_v17  ;;  %v10909_v59 = vadd.f32 %v8978_v21, %v3194_v12  ;;  %v9085_v45 = vpop.f32.mrf.mxu0 }
 0x2e0   : > { %v10911_v15 = vpop.f32.mrf.mxu1  ;;  %v3568_v16 = vadd.f32 %v10801_v4, %v3374_v61 }
 0x2e1   : > { %11658 = vst [vmem:[#allocation16_spill] sm:$0xff] %v10909_v59  ;;  %11659 = vst [vmem:[#allocation17_spill] sm:$0xff] %v10911_v15  ;;  %v4282_v38 = vpop.f32.mrf.mxu0 }
 0x2e2   : > { %v9013_v29 = vpop.f32.mrf.mxu1 }
 0x2e3   : > { %v9086_v39 = vpop.f32.mrf.mxu0  ;;  %v3764_v15 = vadd.f32 %v9013_v29, %v3569_v44 }
 0x2e4   : > { %v3699_v26 = vpop.f32.mrf.mxu1 }
 0x2e5   : > { %v4285_v21 = vpop.f32.mrf.mxu0  ;;  %v3762_v1 = vadd.f32 %v3699_v26, %v3567_v0  ;;  %v3959_v0 = vadd.f32 %v10844_v42, %v3764_v15 }
 0x2e6   : > { %v9014_v9 = vpop.f32.mrf.mxu1 }
 0x2e7   : > { %v10931_v17 = vpop.f32.mrf.mxu0  ;;  %v3765_v10 = vadd.f32 %v9014_v9, %v3570_v8  ;;  %v3957_v35 = vadd.f32 %v10848_v41, %v3762_v1  ;;  %v3574_v1 = vadd.f32 %v10810_v23, %v10885_v33  ;;  %v3572_v41 = vadd.f32 %v10813_v5, %v3378_v49  ;;  %v10958_v5 = vld [vmem:[%s11640_s4] ss:$0 sm:$0xff] }
 0x2e8   : > { %v3702_v13 = vpop.f32.mrf.mxu1  ;;  %v3575_v23 = vadd.f32 %v10819_v27, %v10889_v24 }
 0x2e9   : > { %v4298_v14 = vpop.f32.mrf.mxu0  ;;  %v3960_v4 = vadd.f32 %v10854_v32, %v3765_v10  ;;  %v3382_v32 = vadd.f32 %v10898_v31, %v10861_v18 }
 0x2ea   : > { %v9017_v37 = vpop.f32.mrf.mxu1 }
 0x2eb   : > { %v9090_v44 = vpop.f32.mrf.mxu0 }
 0x2ec   : > { %v3715_v53 = vpop.f32.mrf.mxu1 }
 0x2ed   : > { %v3766_v62 = vadd.f32 %v3715_v53, %v3571_v63  ;;  %v4301_v60 = vpop.f32.mrf.mxu0 }
 0x2ee   : > { %v9018_v51 = vpop.f32.mrf.mxu1 }
 0x2ef   : > { %v3769_v15 = vadd.f32 %v9018_v51, %v3574_v1  ;;  %v3961_v10 = vadd.f32 %v10868_v46, %v3766_v62  ;;  %v9093_v18 = vpop.f32.mrf.mxu0 }
 0x2f0   : > { %v3718_v28 = vpop.f32.mrf.mxu1 }
 0x2f1   : > { %v3767_v9 = vadd.f32 %v3718_v28, %v3572_v41  ;;  %v3964_v27 = vadd.f32 %v10874_v6, %v3769_v15  ;;  %v11667_v41 = vld [vmem:[#allocation13_spill] sm:$0xff] }
 0x2f2   : > { %v10919_v12 = vpop.f32.mrf.mxu1  ;;  %v11669_v15 = vld [vmem:[#allocation17_spill] sm:$0xff] }
 0x2f3   : > { %v3962_v53 = vadd.f32 %v10876_v52, %v3767_v9 }
 0x2f4   : > { %v3731_v55 = vpop.f32.mrf.mxu1 }
 0x2f5   : > { %v3770_v31 = vadd.f32 %v3731_v55, %v3575_v23  ;;  %v3576_v55 = vadd.f32 %v10825_v48, %v3382_v32 }
 0x2f6   : > { %v10921_v19 = vpop.f32.mrf.mxu1 }
 0x2f8   : > { %v10923_v20 = vpop.f32.mrf.mxu1 }
 0x2fa   : > { %v10925_v34 = vpop.f32.mrf.mxu1 }
 0x2fb   : > { %11663 = vst [vmem:[#allocation21_spill] sm:$0xff] %v10925_v34 }
 0x2fc   : > { %v10927_v40 = vpop.f32.mrf.mxu1 }
 0x2fd   : > { %11664 = vst [vmem:[#allocation22_spill] sm:$0xff] %v10927_v40  ;;  %v3763_v40 = vadd.f32 %v3702_v13, %v3568_v16  ;;  %v3768_v16 = vadd.f32 %v9017_v37, %v10881_v54 }
 0x2fe   : > { %v10933_v3 = vpop.f32.mrf.mxu1 }
 0x2ff   : > { %v3958_v8 = vadd.f32 %v10858_v56, %v3763_v40  ;;  %v3963_v56 = vadd.f32 %v10864_v7, %v3768_v16 }
 0x300   : > { %v10935_v59 = vpop.f32.mrf.mxu1 }
 0x302   : > { %v9061_v34 = vpop.f32.mrf.mxu1 }
 0x303   : > { %v4153_v50 = vadd.f32 %v9061_v34, %v3959_v0 }
 0x304   : > { %v4088_v2 = vpop.f32.mrf.mxu1 }
 0x305   : > { %v4151_v26 = vadd.f32 %v4088_v2, %v3957_v35  ;;  %v4347_v34 = vadd.f32 %v9085_v45, %v4153_v50  ;;  %v4314_v2 = vpop.f32.mrf.mxu0 }
 0x306   : > { %v9062_v29 = vpop.f32.mrf.mxu1 }
 0x307   : > { %v4345_v58 = vadd.f32 %v4282_v38, %v4151_v26  ;;  %v4154_v11 = vadd.f32 %v9062_v29, %v3960_v4  ;;  %v10970_v45 = vadd.f32 %v10958_v5, %v4347_v34  ;;  %v3772_v38 = vadd.f32 %v10919_v12, %v10892_v57  ;;  %v9094_v4 = vpop.f32.mrf.mxu0 }
 0x308   : > { %v4091_v47 = vpop.f32.mrf.mxu1  ;;  %v3965_v57 = vadd.f32 %v10887_v22, %v3770_v31  ;;  %v11665_v22 = vld [vmem:[#allocation8_spill] sm:$0xff] }
 0x309   : > { %v4152_v42 = vadd.f32 %v4091_v47, %v3958_v8  ;;  %v10962_v33 = vadd.f32 %v10958_v5, %v4345_v58  ;;  %v4348_v40 = vadd.f32 %v9086_v39, %v4154_v11  ;;  %v3578_v39 = vadd.f32 %v10822_v25, %v10896_v36  ;;  %v11666_v8 = vld [vmem:[#allocation12_spill] sm:$0xff] }
 0x30a   : > { %v9065_v13 = vpop.f32.mrf.mxu1  ;;  %v3967_v26 = vadd.f32 %v10883_v43, %v3772_v38  ;;  %v4594_v58 = vlaneseq }
 0x30b   : > { %v4346_v61 = vadd.f32 %v4285_v21, %v4152_v42  ;;  %v4157_v51 = vadd.f32 %v9065_v13, %v3963_v56  ;;  %v10980_v21 = vadd.f32 %v10958_v5, %v4348_v40  ;;  %v3773_v63 = vadd.f32 %v10921_v19, %v3578_v39  ;;  %v11670_v13 = vld [vmem:[#allocation22_spill] sm:$0xff] }
 0x30c   : > { %v4104_v54 = vpop.f32.mrf.mxu1 }
 0x30d   : > { %v10965_v46 = vadd.f32 %v10958_v5, %v4346_v61  ;;  %v4155_v37 = vadd.f32 %v4104_v54, %v3961_v10  ;;  %v4351_v25 = vadd.f32 %v10931_v17, %v4157_v51  ;;  %v3579_v17 = vadd.f32 %v11665_v22, %v10902_v30  ;;  %v4317_v54 = vpop.f32.mrf.mxu0  ;;  %v11674_v22 = vld [vmem:[#allocation14_spill] sm:$0xff] }
 0x30e   : > { %v9066_v24 = vpop.f32.mrf.mxu1  ;;  %v3968_v16 = vadd.f32 %v11666_v8, %v3773_v63  ;;  %v4595_v30 = vshrl.u32 %v4594_v58, 7 }
 0x30f   : > { %v4384_v7 = vadd.f32 %v10965_v46, %v10962_v33  ;;  %v4349_v28 = vadd.f32 %v4298_v14, %v4155_v37  ;;  %v4158_v35 = vadd.f32 %v9066_v24, %v3964_v27  ;;  %v3771_v14 = vadd.f32 %v10923_v20, %v3576_v55  ;;  %v4592_v37 = vld [vmem:[%s11644_s8] sm:$0xff] }
 0x310   : > { %v4107_v6 = vpop.f32.mrf.mxu1  ;;  %v11001_v43 = vadd.f32 %v10958_v5, %v4351_v25  ;;  %v3774_v34 = vadd.f32 %v11670_v13, %v3579_v17  ;;  %v4596_v31 = vsub.s32 0, %v4595_v30  ;;  %v4600_v27 = vsub.s32 1, %v4595_v30  ;;  %v11675_v17 = vld [vmem:[#allocation21_spill] sm:$0xff] }
 0x311   : > { %v4385_v52 = vadd.f32 %v4384_v7, %v10970_v45  ;;  %v4156_v49 = vadd.f32 %v4107_v6, %v3962_v53  ;;  %v10988_v48 = vadd.f32 %v10958_v5, %v4349_v28  ;;  %v4352_v50 = vadd.f32 %v9090_v44, %v4158_v35 }
 0x312   : > { %v9069_v0 = vpop.f32.mrf.mxu1  ;;  %v3966_v47 = vadd.f32 %v11667_v41, %v3771_v14  ;;  %v4604_v24 = vsub.s32 2, %v4595_v30  ;;  %v4608_v53 = vsub.s32 3, %v4595_v30  ;;  %v4597_v55 = vrot.slane %v4592_v37, %v4596_v31 }
 0x313   : > { %v4386_v36 = vadd.f32 %v4385_v52, %v10980_v21  ;;  %v4350_v12 = vadd.f32 %v4301_v60, %v4156_v49  ;;  %v4161_v44 = vadd.f32 %v9069_v0, %v3967_v26  ;;  %v11668_v60 = vld [vmem:[#allocation11_spill] sm:$0xff]  ;;  %v11008_v10 = vadd.f32 %v10958_v5, %v4352_v50  ;;  %v11671_v0 = vld [vmem:[#allocation16_spill] sm:$0xff] }
 0x314   : > { %v4120_v29 = vpop.f32.mrf.mxu1  ;;  %v3386_v9 = vadd.f32 %v11669_v15, %v11668_v60  ;;  %v4601_v6 = vrot.slane %v4592_v37, %v4600_v27  ;;  %v4605_v52 = vrot.slane %v4592_v37, %v4604_v24  ;;  %v4609_v35 = vrot.slane %v4592_v37, %v4608_v53  ;;  %4642 = vst [vmem:[#allocation4 + $0x30] sm:$0xff] %v4597_v55  ;;  %v11679_v27 = vld [vmem:[#allocation19_spill] sm:$0xff] }
 0x315   : > { %v4387_v62 = vadd.f32 %v4386_v36, %v10988_v48  ;;  %v10994_v19 = vadd.f32 %v10958_v5, %v4350_v12  ;;  %v4159_v20 = vadd.f32 %v4120_v29, %v3965_v57  ;;  %v4355_v7 = vadd.f32 %v9093_v18, %v4161_v44  ;;  %v11672_v18 = vld [vmem:[#allocation9_spill] sm:$0xff]  ;;  %v11673_v29 = vld [vmem:[#allocation10_spill] sm:$0xff] }
 0x316   : > { %v9070_v1 = vpop.f32.mrf.mxu1  ;;  %v4612_v14 = vsub.s32 4, %v4595_v30  ;;  %v3582_v57 = vadd.f32 %v11672_v18, %v11671_v0  ;;  %v4616_v36 = vsub.s32 5, %v4595_v30  ;;  %v4620_v12 = vsub.s32 6, %v4595_v30  ;;  %4643 = vst [vmem:[#allocation4] sm:$0xff] %v4601_v6  ;;  %4644 = vst [vmem:[#allocation4 + $0x18] sm:$0xff] %v4605_v52  ;;  %v11676_v44 = vld [vmem:[#allocation18_spill] sm:$0xff] }
 0x317   : > { %v4388_v11 = vadd.f32 %v4387_v62, %v10994_v19  ;;  %v4353_v42 = vadd.f32 %v4314_v2, %v4159_v20  ;;  %v4162_v23 = vadd.f32 %v9070_v1, %v3968_v16  ;;  %v4624_v26 = vsub.s32 7, %v4595_v30  ;;  %4645 = vst [vmem:[#allocation4 + $0x10] sm:$0xff] %v4609_v35 }
 0x318   : > { %v4123_v61 = vpop.f32.mrf.mxu1  ;;  %v3580_v62 = vadd.f32 %v11673_v29, %v3386_v9  ;;  %v4378_v50 = vadd.f32 %v10958_v5, %v4355_v7  ;;  %v3776_v8 = vadd.f32 %v11675_v17, %v11674_v22  ;;  %v4617_v1 = vrot.slane %v4592_v37, %v4616_v36 }
 0x319   : > { %v4389_v32 = vadd.f32 %v4388_v11, %v11001_v43  ;;  %v4160_v56 = vadd.f32 %v4123_v61, %v3966_v47  ;;  %v11015_v51 = vadd.f32 %v10958_v5, %v4353_v42  ;;  %v4356_v2 = vadd.f32 %v9094_v4, %v4162_v23 }
 0x31a   : > { %v9073_v40 = vpop.f32.mrf.mxu1  ;;  %v4613_v4 = vrot.slane %v4592_v37, %v4612_v14  ;;  %v4621_v41 = vrot.slane %v4592_v37, %v4620_v12  ;;  %v4625_v47 = vrot.slane %v4592_v37, %v4624_v26  ;;  %v3775_v58 = vadd.f32 %v10935_v59, %v3580_v62  ;;  %4647 = vst [vmem:[#allocation4 + $0x20] sm:$0xff] %v4617_v1 }
 0x31b   : > { %v4390_v28 = vadd.f32 %v4389_v32, %v11008_v10  ;;  %v4354_v38 = vadd.f32 %v4317_v54, %v4160_v56  ;;  %v4379_v11 = vadd.f32 %v10958_v5, %v4356_v2  ;;  %v3969_v42 = vadd.f32 %v11676_v44, %v3774_v34  ;;  %v11677_v32 = vld [vmem:[#allocation15_spill] sm:$0xff]  ;;  %v11678_v56 = vld [vmem:[#allocation20_spill] sm:$0xff] }
 0x31c   : > { %v4136_v39 = vpop.f32.mrf.mxu1  ;;  %4646 = vst [vmem:[#allocation4 + $0x8] sm:$0xff] %v4613_v4  ;;  %4648 = vst [vmem:[#allocation4 + $0x28] sm:$0xff] %v4621_v41  ;;  %v3777_v9 = vadd.f32 %v10933_v3, %v3582_v57  ;;  %v3971_v23 = vadd.f32 %v11677_v32, %v3776_v8  ;;  %v3970_v54 = vadd.f32 %v11678_v56, %v3775_v58 }
 0x31d   : > { %v4391_v49 = vadd.f32 %v4390_v28, %v11015_v51  ;;  %v11020_v63 = vadd.f32 %v10958_v5, %v4354_v38  ;;  %4649 = vst [vmem:[#allocation4 + $0x38] sm:$0xff] %v4625_v47  ;;  %v4163_v13 = vadd.f32 %v4136_v39, %v3969_v42 }
 0x31e   : > { %v9074_v25 = vpop.f32.mrf.mxu1  ;;  %v4165_v31 = vadd.f32 %v9073_v40, %v3971_v23  ;;  %v3972_v34 = vadd.f32 %v11679_v27, %v3777_v9 }
 0x31f   : > { %v4392_v20 = vadd.f32 %v4391_v49, %v11020_v63 }
 0x320   : > { %v4139_v16 = vpop.f32.mrf.mxu1  ;;  %v4166_v28 = vadd.f32 %v9074_v25, %v3972_v34 }
 0x321   : > { %v4393_v60 = vadd.f32 %v4392_v20, %v4378_v50  ;;  %v4164_v24 = vadd.f32 %v4139_v16, %v3970_v54 }
 0x322   : > { %v9097_v15 = vpop.f32.mrf.mxu1 }
 0x323   : > { %v4394_v61 = vadd.f32 %v4393_v60, %v4379_v11  ;;  %v4359_v38 = vadd.f32 %v9097_v15, %v4165_v31 }
 0x324   : > { %v4330_v30 = vpop.f32.mrf.mxu1 }
 0x325   : > { %v4357_v59 = vadd.f32 %v4330_v30, %v4163_v13  ;;  %v4382_v52 = vadd.f32 %v10958_v5, %v4359_v38 }
 0x326   : > { %v9098_v37 = vpop.f32.mrf.mxu1 }
 0x327   : > { %v4380_v53 = vadd.f32 %v10958_v5, %v4357_v59  ;;  %v4360_v39 = vadd.f32 %v9098_v37, %v4166_v28 }
 0x328   : > { %v4333_v7 = vpop.f32.mrf.mxu1 }
 0x329   : > { %v4395_v55 = vadd.f32 %v4394_v61, %v4380_v53  ;;  %v4358_v3 = vadd.f32 %v4333_v7, %v4164_v24  ;;  %v4383_v49 = vadd.f32 %v10958_v5, %v4360_v39 }
 0x32b   : > { %v4381_v6 = vadd.f32 %v10958_v5, %v4358_v3 }
 0x32d   : > { %v4396_v35 = vadd.f32 %v4395_v55, %v4381_v6 }
 0x32f   : > { %v4397_v2 = vadd.f32 %v4396_v35, %v4382_v52 }
 0x331   : > { %v4398_v40 = vadd.f32 %v4397_v2, %v4383_v49 }
 0x333   : > { %v4399_v14 = vrot.slane %v4398_v40, 4 }
 0x335   : > { %v4400_v0 = vadd.f32 %v4399_v14, %v4398_v40 }
 0x337   : > { %v4401_v18 = vrot.slane %v4400_v0, 2 }
 0x339   : > { %v4402_v57 = vadd.f32 %v4401_v18, %v4400_v0 }
 0x33b   : > { %v4403_v36 = vrot.slane %v4402_v57, 1 }
 0x33d   : > { %v4404_v12 = vadd.f32 %v4403_v36, %v4402_v57 }
 0x33f   : > { %v4406_v25 = vmul.f32 0.0078125, %v4404_v12 }
 0x341   : > { %v4407_v26 = vsub.f32 %v10962_v33, %v4406_v25  ;;  %v4408_v29 = vsub.f32 %v10965_v46, %v4406_v25  ;;  %v4409_v62 = vsub.f32 %v10970_v45, %v4406_v25  ;;  %v4410_v20 = vsub.f32 %v10980_v21, %v4406_v25 }
 0x342   : > { %v4411_v4 = vsub.f32 %v10988_v48, %v4406_v25  ;;  %v4412_v5 = vsub.f32 %v10994_v19, %v4406_v25  ;;  %v4413_v22 = vsub.f32 %v11001_v43, %v4406_v25  ;;  %v4414_v17 = vsub.f32 %v11008_v10, %v4406_v25 }
 0x343   : > { %v4415_v8 = vsub.f32 %v11015_v51, %v4406_v25  ;;  %v4416_v16 = vsub.f32 %v11020_v63, %v4406_v25  ;;  %v4417_v1 = vsub.f32 %v4378_v50, %v4406_v25  ;;  %v4418_v33 = vsub.f32 %v4379_v11, %v4406_v25 }
 0x344   : > { %v4419_v41 = vsub.f32 %v4380_v53, %v4406_v25  ;;  %v4420_v46 = vsub.f32 %v4381_v6, %v4406_v25  ;;  %v4421_v47 = vsub.f32 %v4382_v52, %v4406_v25  ;;  %v4422_v45 = vsub.f32 %v4383_v49, %v4406_v25 }
 0x345   : > { %v4423_v58 = vmul.f32 %v4407_v26, %v4407_v26  ;;  %v4424_v21 = vmul.f32 %v4408_v29, %v4408_v29  ;;  %v4425_v44 = vmul.f32 %v4409_v62, %v4409_v62  ;;  %v4426_v42 = vmul.f32 %v4410_v20, %v4410_v20 }
 0x346   : > { %v4427_v60 = vmul.f32 %v4411_v4, %v4411_v4  ;;  %v4428_v15 = vmul.f32 %v4412_v5, %v4412_v5  ;;  %v4429_v9 = vmul.f32 %v4413_v22, %v4413_v22  ;;  %v4430_v13 = vmul.f32 %v4414_v17, %v4414_v17 }
 0x347   : > { %v4439_v48 = vadd.f32 %v4424_v21, %v4423_v58  ;;  %v4431_v50 = vmul.f32 %v4415_v8, %v4415_v8  ;;  %v4432_v61 = vmul.f32 %v4416_v16, %v4416_v16  ;;  %v4433_v32 = vmul.f32 %v4417_v1, %v4417_v1  ;;  %v7935_v58 = vld [vmem:[%s11641_s5] ss:$0 sm:$0xff] }
 0x348   : > { %v4434_v56 = vmul.f32 %v4418_v33, %v4418_v33  ;;  %v4435_v59 = vmul.f32 %v4419_v41, %v4419_v41  ;;  %v4436_v31 = vmul.f32 %v4420_v46, %v4420_v46  ;;  %v4437_v34 = vmul.f32 %v4421_v47, %v4421_v47 }
 0x349   : > { %v4440_v19 = vadd.f32 %v4439_v48, %v4425_v44  ;;  %v4438_v53 = vmul.f32 %v4422_v45, %v4422_v45 }
 0x34b   : > { %v4441_v43 = vadd.f32 %v4440_v19, %v4426_v42 }
 0x34d   : > { %v4442_v10 = vadd.f32 %v4441_v43, %v4427_v60 }
 0x34f   : > { %v4443_v51 = vadd.f32 %v4442_v10, %v4428_v15 }
 0x351   : > { %v4444_v63 = vadd.f32 %v4443_v51, %v4429_v9 }
 0x353   : > { %v4445_v11 = vadd.f32 %v4444_v63, %v4430_v13 }
 0x355   : > { %v4446_v30 = vadd.f32 %v4445_v11, %v4431_v50 }
 0x357   : > { %v4447_v23 = vadd.f32 %v4446_v30, %v4432_v61 }
 0x359   : > { %v4448_v54 = vadd.f32 %v4447_v23, %v4433_v32 }
 0x35b   : > { %v4449_v37 = vadd.f32 %v4448_v54, %v4434_v56 }
 0x35d   : > { %v4450_v27 = vadd.f32 %v4449_v37, %v4435_v59 }
 0x35f   : > { %v4451_v24 = vadd.f32 %v4450_v27, %v4436_v31 }
 0x361   : > { %v4452_v7 = vadd.f32 %v4451_v24, %v4437_v34 }
 0x363   : > { %v4453_v28 = vadd.f32 %v4452_v7, %v4438_v53 }
 0x365   : > { %v4454_v38 = vrot.slane %v4453_v28, 4 }
 0x367   : > { %v4455_v55 = vadd.f32 %v4454_v38, %v4453_v28 }
 0x369   : > { %v4456_v3 = vrot.slane %v4455_v55, 2 }
 0x36b   : > { %v4457_v39 = vadd.f32 %v4456_v3, %v4455_v55 }
 0x36d   : > { %v4458_v6 = vrot.slane %v4457_v39, 1 }
 0x36f   : > { %v4459_v52 = vadd.f32 %v4458_v6, %v4457_v39 }
 0x371   : > { %v4460_v35 = vmul.f32 0.0078125, %v4459_v52 }
 0x373   : > { %v4461_v49 = vadd.f32 1e-05, %v4460_v35 }
 0x375   : > { %9227 = vrsqrt.f32 %v4461_v49 }
 0x382   : > { %v9228_v2 = vpop.eup %9227 }
 0x383   : > { %v4463_v40 = vmul.f32 %v9228_v2, %v4407_v26  ;;  %v4464_v14 = vmul.f32 %v9228_v2, %v4408_v29  ;;  %v4465_v0 = vmul.f32 %v9228_v2, %v4409_v62  ;;  %v4466_v18 = vmul.f32 %v9228_v2, %v4410_v20 }
 0x384   : > { %v4467_v57 = vmul.f32 %v9228_v2, %v4411_v4  ;;  %v4468_v36 = vmul.f32 %v9228_v2, %v4412_v5  ;;  %v4469_v12 = vmul.f32 %v9228_v2, %v4413_v22  ;;  %v4470_v25 = vmul.f32 %v9228_v2, %v4414_v17  ;;  %v7936_v22 = vld [vmem:[%s11642_s6] ss:$0 sm:$0xff] }
 0x385   : > { %v4471_v21 = vmul.f32 %v9228_v2, %v4415_v8  ;;  %v4472_v44 = vmul.f32 %v9228_v2, %v4416_v16  ;;  %v4473_v48 = vmul.f32 %v9228_v2, %v4417_v1  ;;  %v4474_v42 = vmul.f32 %v9228_v2, %v4418_v33 }
 0x386   : > { %v4475_v19 = vmul.f32 %v9228_v2, %v4419_v41  ;;  %v4476_v60 = vmul.f32 %v9228_v2, %v4420_v46  ;;  %v4477_v43 = vmul.f32 %v9228_v2, %v4421_v47  ;;  %v4478_v15 = vmul.f32 %v9228_v2, %v4422_v45 }
 0x387   : > { %v4486_v26 = vmul.f32 %v7935_v58, %v4463_v40  ;;  %v4487_v29 = vmul.f32 %v7935_v58, %v4464_v14  ;;  %v4488_v62 = vmul.f32 %v7935_v58, %v4465_v0  ;;  %v4489_v20 = vmul.f32 %v7935_v58, %v4466_v18 }
 0x388   : > { %v4490_v4 = vmul.f32 %v7935_v58, %v4467_v57  ;;  %v4491_v5 = vmul.f32 %v7935_v58, %v4468_v36  ;;  %v4492_v17 = vmul.f32 %v7935_v58, %v4469_v12  ;;  %v4493_v10 = vmul.f32 %v7935_v58, %v4470_v25 }
 0x389   : > { %v4494_v8 = vmul.f32 %v7935_v58, %v4471_v21  ;;  %v4495_v16 = vmul.f32 %v7935_v58, %v4472_v44  ;;  %v4496_v1 = vmul.f32 %v7935_v58, %v4473_v48  ;;  %v4497_v33 = vmul.f32 %v7935_v58, %v4474_v42 }
 0x38a   : > { %v4498_v41 = vmul.f32 %v7935_v58, %v4475_v19  ;;  %v4499_v46 = vmul.f32 %v7935_v58, %v4476_v60  ;;  %v4500_v47 = vmul.f32 %v7935_v58, %v4477_v43  ;;  %v4509_v45 = vadd.f32 %v7936_v22, %v4486_v26 }
 0x38b   : > { %v4510_v9 = vadd.f32 %v7936_v22, %v4487_v29  ;;  %v4511_v51 = vadd.f32 %v7936_v22, %v4488_v62  ;;  %v4501_v13 = vmul.f32 %v7935_v58, %v4478_v15  ;;  %v4512_v63 = vadd.f32 %v7936_v22, %v4489_v20 }
 0x38c   : > { %v4513_v50 = vadd.f32 %v7936_v22, %v4490_v4  ;;  %v4514_v11 = vadd.f32 %v7936_v22, %v4491_v5  ;;  %v4515_v61 = vadd.f32 %v7936_v22, %v4492_v17  ;;  %v4516_v30 = vadd.f32 %v7936_v22, %v4493_v10 }
 0x38d   : > { %v4517_v32 = vadd.f32 %v7936_v22, %v4494_v8  ;;  %v4518_v23 = vadd.f32 %v7936_v22, %v4495_v16  ;;  %v4519_v56 = vadd.f32 %v7936_v22, %v4496_v1  ;;  %v4520_v54 = vadd.f32 %v7936_v22, %v4497_v33 }
 0x38e   : > { %v4521_v59 = vadd.f32 %v7936_v22, %v4498_v41  ;;  %v4522_v37 = vadd.f32 %v7936_v22, %v4499_v46  ;;  %v4523_v31 = vadd.f32 %v7936_v22, %v4500_v47  ;;  %v4525_v27 = vmul.f32 0.2, %v4509_v45 }
 0x38f   : > { %v4526_v34 = vmul.f32 0.2, %v4510_v9  ;;  %v4527_v24 = vmul.f32 0.2, %v4511_v51  ;;  %v4524_v53 = vadd.f32 %v7936_v22, %v4501_v13  ;;  %v4528_v7 = vmul.f32 0.2, %v4512_v63 }
 0x390   : > { %v4529_v28 = vmul.f32 0.2, %v4513_v50  ;;  %v4530_v38 = vmul.f32 0.2, %v4514_v11  ;;  %v4531_v55 = vmul.f32 0.2, %v4515_v61  ;;  %v4541_v6 = vmax.f32 %v4509_v45, %v4525_v27 }
 0x391   : > { %v4532_v3 = vmul.f32 0.2, %v4516_v30  ;;  %v4533_v39 = vmul.f32 0.2, %v4517_v32  ;;  %v4534_v52 = vmul.f32 0.2, %v4518_v23  ;;  %v4542_v2 = vmax.f32 %v4510_v9, %v4526_v34 }
 0x392   : > { %v4535_v35 = vmul.f32 0.2, %v4519_v56  ;;  %v4536_v49 = vmul.f32 0.2, %v4520_v54  ;;  %v4537_v40 = vmul.f32 0.2, %v4521_v59  ;;  %v4543_v18 = vmax.f32 %v4511_v51, %v4527_v24 }
 0x393   : > { %v4538_v14 = vmul.f32 0.2, %v4522_v37  ;;  %v4539_v0 = vmul.f32 0.2, %v4523_v31  ;;  %v4540_v57 = vmul.f32 0.2, %v4524_v53  ;;  %v4544_v36 = vmax.f32 %v4512_v63, %v4528_v7 }
 0x394   : > { %v4545_v12 = vmax.f32 %v4513_v50, %v4529_v28  ;;  %v4546_v25 = vmax.f32 %v4514_v11, %v4530_v38  ;;  %v4547_v58 = vmax.f32 %v4515_v61, %v4531_v55  ;;  %v4548_v21 = vmax.f32 %v4516_v30, %v4532_v3 }
 0x395   : > { %v4549_v44 = vmax.f32 %v4517_v32, %v4533_v39  ;;  %v4550_v48 = vmax.f32 %v4518_v23, %v4534_v52  ;;  %v4551_v42 = vmax.f32 %v4519_v56, %v4535_v35  ;;  %v4552_v19 = vmax.f32 %v4520_v54, %v4536_v49 }
 0x396   : > { %v4553_v60 = vmax.f32 %v4521_v59, %v4537_v40  ;;  %v4554_v43 = vmax.f32 %v4522_v37, %v4538_v14  ;;  %v4555_v15 = vmax.f32 %v4523_v31, %v4539_v0  ;;  %v4556_v26 = vmax.f32 %v4524_v53, %v4540_v57 }
 0x397   : > { %v8274_v29 = vpack.c.bf16 %v4542_v2, %v4541_v6  ;;  %v8279_v62 = vpack.c.bf16 %v4544_v36, %v4543_v18  ;;  %v8284_v20 = vpack.c.bf16 %v4546_v25, %v4545_v12  ;;  %v8289_v4 = vpack.c.bf16 %v4548_v21, %v4547_v58 }
 0x398   : > { %v8294_v5 = vpack.c.bf16 %v4550_v48, %v4549_v44  ;;  %v8299_v22 = vpack.c.bf16 %v4552_v19, %v4551_v42  ;;  %v8304_v17 = vpack.c.bf16 %v4554_v43, %v4553_v60  ;;  %v8309_v10 = vpack.c.bf16 %v4556_v26, %v4555_v15 }
 0x399   : > { %8275 = vst [vmem:[#allocation3] sm:$0xff] %v8274_v29   ;;  %8311 = vst [vmem:[#allocation3 + $0x8] sm:$0xff] %v8279_v62  }
 0x39a   : > { %8285 = vst [vmem:[#allocation3 + $0x10] sm:$0xff] %v8284_v20   ;;  %8312 = vst [vmem:[#allocation3 + $0x18] sm:$0xff] %v8289_v4  }
 0x39b   : > { %8295 = vst [vmem:[#allocation3 + $0x20] sm:$0xff] %v8294_v5   ;;  %8313 = vst [vmem:[#allocation3 + $0x28] sm:$0xff] %v8299_v22  }
 0x39c   : > { %8305 = vst [vmem:[#allocation3 + $0x30] sm:$0xff] %v8304_v17   ;;  %8314 = vst [vmem:[#allocation3 + $0x38] sm:$0xff] %v8309_v10  }
 0x39d PF: > { %v4719_v8 = vld [vmem:[%s9436_s14 + $0x1c0] sm:$0xff]  ;;  %s8270_s23 = sshll.u32 %s9427_s26, 4  ;;  %p8199_p5 = scmp.ne.s32.totalorder %s9427_s26, 3 }
 0x39e   : > { %v4723_v16 = vld [vmem:[%s9436_s14 + $0x1e0] sm:$0xff]  ;;  %s4660_s24 = scalar_lea.vmem [#allocation3], %s8270_s23 }
 0x39f   : > { %v4847_v1 = vld [vmem:[%s9436_s14 + $0x5c0] sm:$0xff]  ;;  %v8000_v33 = vcombine.high %v4719_v8, %v4723_v16  ;;  %v7999_v46 = vcombine.low %v4719_v8, %v4723_v16 }
 0x3a0   : > { %v4851_v41 = vld [vmem:[%s9436_s14 + $0x5e0] sm:$0xff] }
 0x3a1   : > { %v4711_v47 = vld [vmem:[%s9436_s14 + $0x180] sm:$0xff]  ;;  %v8128_v9 = vcombine.high %v4847_v1, %v4851_v41  ;;  %v8127_v51 = vcombine.low %v4847_v1, %v4851_v41  ;;  %6213 = vmatprep.subr.bf16.mxu0 %v8000_v33 }
 0x3a2   : > { %v4715_v45 = vld [vmem:[%s9436_s14 + $0x1a0] sm:$0xff]  ;;  %6214 = vmatpush1.bf16.msra.mxu0 %v7999_v46 }
 0x3a3   : > { %v7992_v13 = vcombine.high %v4711_v47, %v4715_v45  ;;  %v4839_v63 = vld [vmem:[%s9436_s14 + $0x580] sm:$0xff]  ;;  %6254 = vmatprep.subr.bf16.mxu1 %v8128_v9  ;;  %v7991_v56 = vcombine.low %v4711_v47, %v4715_v45  ;;  %v11087_v15 = vld [vmem:[%s4660_s24 + $0x8] sm:$0xff] }
 0x3a4   : > { %v4843_v50 = vld [vmem:[%s9436_s14 + $0x5a0] sm:$0xff]  ;;  %6255 = vmatpush1.bf16.msra.mxu1 %v8127_v51  ;;  %v11097_v4 = vcombine.high %v11087_v15, %v11087_v15 }
 0x3a5   : > { %v4703_v11 = vld [vmem:[%s9436_s14 + $0x140] sm:$0xff]  ;;  %v8120_v61 = vcombine.high %v4839_v63, %v4843_v50  ;;  %6215 = vmatprep.subr.bf16.mxu0 %v7992_v13  ;;  %v8119_v54 = vcombine.low %v4839_v63, %v4843_v50 }
 0x3a6   : > { %v4707_v30 = vld [vmem:[%s9436_s14 + $0x160] sm:$0xff]  ;;  %6216 = vmatpush1.bf16.msra.mxu0 %v7991_v56  ;;  %6286 = vmatprep.mubr.bf16.mxu1 %v11097_v4 }
 0x3a7   : > { %v4831_v32 = vld [vmem:[%s9436_s14 + $0x540] sm:$0xff]  ;;  %v7984_v59 = vcombine.high %v4703_v11, %v4707_v30  ;;  %6256 = vmatprep.subr.bf16.mxu1 %v8120_v61  ;;  %v7983_v53 = vcombine.low %v4703_v11, %v4707_v30 }
 0x3a8   : > { %v4835_v23 = vld [vmem:[%s9436_s14 + $0x560] sm:$0xff]  ;;  %6257 = vmatpush1.bf16.msra.mxu1 %v8119_v54 }
 0x3a9   : > { %v8112_v37 = vcombine.high %v4831_v32, %v4835_v23  ;;  %v4695_v31 = vld [vmem:[%s9436_s14 + $0x100] sm:$0xff]  ;;  %6217 = vmatprep.subr.bf16.mxu0 %v7984_v59  ;;  %v8111_v7 = vcombine.low %v4831_v32, %v4835_v23 }
 0x3aa   : > { %v4699_v27 = vld [vmem:[%s9436_s14 + $0x120] sm:$0xff]  ;;  %6218 = vmatpush1.bf16.msra.mxu0 %v7983_v53 }
 0x3ab   : > { %v4823_v34 = vld [vmem:[%s9436_s14 + $0x500] sm:$0xff]  ;;  %v7976_v28 = vcombine.high %v4695_v31, %v4699_v27  ;;  %6258 = vmatprep.subr.bf16.mxu1 %v8112_v37  ;;  %v7975_v52 = vcombine.low %v4695_v31, %v4699_v27 }
 0x3ac   : > { %v4827_v24 = vld [vmem:[%s9436_s14 + $0x520] sm:$0xff]  ;;  %6259 = vmatpush1.bf16.msra.mxu1 %v8111_v7 }
 0x3ad   : > { %v8104_v38 = vcombine.high %v4823_v34, %v4827_v24  ;;  %v4687_v55 = vld [vmem:[%s9436_s14 + $0xc0] sm:$0xff]  ;;  %6219 = vmatprep.subr.bf16.mxu0 %v7976_v28  ;;  %v8103_v35 = vcombine.low %v4823_v34, %v4827_v24 }
 0x3ae   : > { %v4691_v3 = vld [vmem:[%s9436_s14 + $0xe0] sm:$0xff]  ;;  %6220 = vmatpush1.bf16.msra.mxu0 %v7975_v52 }
 0x3af   : > { %v4815_v39 = vld [vmem:[%s9436_s14 + $0x4c0] sm:$0xff]  ;;  %v7968_v49 = vcombine.high %v4687_v55, %v4691_v3  ;;  %6260 = vmatprep.subr.bf16.mxu1 %v8104_v38  ;;  %v7967_v57 = vcombine.low %v4687_v55, %v4691_v3 }
 0x3b0   : > { %v4819_v6 = vld [vmem:[%s9436_s14 + $0x4e0] sm:$0xff]  ;;  %6261 = vmatpush1.bf16.msra.mxu1 %v8103_v35 }
 0x3b1   : > { %v8096_v2 = vcombine.high %v4815_v39, %v4819_v6  ;;  %v4679_v40 = vld [vmem:[%s9436_s14 + $0x80] sm:$0xff]  ;;  %6221 = vmatprep.subr.bf16.mxu0 %v7968_v49  ;;  %v8095_v36 = vcombine.low %v4815_v39, %v4819_v6 }
 0x3b2   : > { %v4683_v14 = vld [vmem:[%s9436_s14 + $0xa0] sm:$0xff]  ;;  %6222 = vmatpush1.bf16.msra.mxu0 %v7967_v57 }
 0x3b3   : > { %v4807_v0 = vld [vmem:[%s9436_s14 + $0x480] sm:$0xff]  ;;  %v7960_v12 = vcombine.high %v4679_v40, %v4683_v14  ;;  %6262 = vmatprep.subr.bf16.mxu1 %v8096_v2  ;;  %v7959_v42 = vcombine.low %v4679_v40, %v4683_v14 }
 0x3b4   : > { %v4811_v18 = vld [vmem:[%s9436_s14 + $0x4a0] sm:$0xff]  ;;  %6263 = vmatpush1.bf16.msra.mxu1 %v8095_v36 }
 0x3b5   : > { %v8088_v25 = vcombine.high %v4807_v0, %v4811_v18  ;;  %v4671_v58 = vld [vmem:[%s9436_s14 + $0x40] sm:$0xff]  ;;  %6223 = vmatprep.subr.bf16.mxu0 %v7960_v12  ;;  %v8087_v19 = vcombine.low %v4807_v0, %v4811_v18 }
 0x3b6   : > { %v4675_v21 = vld [vmem:[%s9436_s14 + $0x60] sm:$0xff]  ;;  %6224 = vmatpush1.bf16.msra.mxu0 %v7959_v42 }
 0x3b7   : > { %v4799_v44 = vld [vmem:[%s9436_s14 + $0x440] sm:$0xff]  ;;  %v7952_v60 = vcombine.high %v4671_v58, %v4675_v21  ;;  %6264 = vmatprep.subr.bf16.mxu1 %v8088_v25  ;;  %v7951_v17 = vcombine.low %v4671_v58, %v4675_v21 }
 0x3b8   : > { %v4803_v48 = vld [vmem:[%s9436_s14 + $0x460] sm:$0xff]  ;;  %6265 = vmatpush1.bf16.msra.mxu1 %v8087_v19 }
 0x3b9   : > { %v11085_v43 = vld [vmem:[%s4660_s24] sm:$0xff]  ;;  %v8080_v26 = vcombine.high %v4799_v44, %v4803_v48  ;;  %6225 = vmatprep.subr.bf16.mxu0 %v7952_v60  ;;  %v8079_v10 = vcombine.low %v4799_v44, %v4803_v48 }
 0x3ba   : > { %v4663_v29 = vld [vmem:[%s9436_s14] sm:$0xff]  ;;  %v11093_v20 = vcombine.high %v11085_v43, %v11085_v43  ;;  %6226 = vmatpush1.bf16.msra.mxu0 %v7951_v17 }
 0x3bb   : > { %v4667_v62 = vld [vmem:[%s9436_s14 + $0x20] sm:$0xff]  ;;  %6266 = vmatprep.subr.bf16.mxu1 %v8080_v26 }
 0x3bc   : > { %v4791_v5 = vld [vmem:[%s9436_s14 + $0x400] sm:$0xff]  ;;  %6245 = vmatprep.mubr.bf16.mxu0 %v11093_v20  ;;  %v7944_v8 = vcombine.high %v4663_v29, %v4667_v62  ;;  %v7943_v47 = vcombine.low %v4663_v29, %v4667_v62  ;;  %6267 = vmatpush1.bf16.msra.mxu1 %v8079_v10 }
 0x3bd   : > { %v4795_v22 = vld [vmem:[%s9436_s14 + $0x420] sm:$0xff] }
 0x3be   : > { %v8072_v16 = vcombine.high %v4791_v5, %v4795_v22  ;;  %v4783_v1 = vld [vmem:[%s9436_s14 + $0x3c0] sm:$0xff]  ;;  %6227 = vmatprep.subr.bf16.mxu0 %v7944_v8  ;;  %v8071_v45 = vcombine.low %v4791_v5, %v4795_v22 }
 0x3bf   : > { %v4787_v33 = vld [vmem:[%s9436_s14 + $0x3e0] sm:$0xff]  ;;  %6228 = vmatpush1.bf16.msra.mxu0 %v7943_v47  ;;  %v4720_v47 = vld [vmem:[%s9436_s14 + $0x1c8] sm:$0xff] }
 0x3c0   : > { %v4911_v41 = vld [vmem:[%s9436_s14 + $0x7c0] sm:$0xff]  ;;  %v8064_v9 = vcombine.high %v4783_v1, %v4787_v33  ;;  %6268 = vmatprep.subr.bf16.mxu1 %v8072_v16  ;;  %v8063_v61 = vcombine.low %v4783_v1, %v4787_v33 }
 0x3c1   : > { %v4915_v46 = vld [vmem:[%s9436_s14 + $0x7e0] sm:$0xff]  ;;  %6269 = vmatpush1.bf16.msra.mxu1 %v8071_v45  ;;  %v4724_v45 = vld [vmem:[%s9436_s14 + $0x1e8] sm:$0xff] }
 0x3c2   : > { %v8192_v51 = vcombine.high %v4911_v41, %v4915_v46  ;;  %v4775_v13 = vld [vmem:[%s9436_s14 + $0x380] sm:$0xff]  ;;  %6229 = vmatprep.subr.bf16.mxu0 %v8064_v9  ;;  %v8191_v30 = vcombine.low %v4911_v41, %v4915_v46  ;;  %v4848_v9 = vld [vmem:[%s9436_s14 + $0x5c8] sm:$0xff] }
 0x3c3   : > { %v4779_v63 = vld [vmem:[%s9436_s14 + $0x3a0] sm:$0xff]  ;;  %6230 = vmatpush2.bf16.msra.mxu0 %v8063_v61  ;;  %v4712_v61 = vld [vmem:[%s9436_s14 + $0x188] sm:$0xff] }
 0x3c4   : > { %v4903_v50 = vld [vmem:[%s9436_s14 + $0x780] sm:$0xff]  ;;  %v8056_v32 = vcombine.high %v4775_v13, %v4779_v63  ;;  %6270 = vmatprep.subr.bf16.mxu1 %v8192_v51  ;;  %v8055_v31 = vcombine.low %v4775_v13, %v4779_v63  ;;  %v4852_v51 = vld [vmem:[%s9436_s14 + $0x5e8] sm:$0xff] }
 0x3c5   : > { %v4907_v11 = vld [vmem:[%s9436_s14 + $0x7a0] sm:$0xff]  ;;  %6271 = vmatpush2.bf16.msra.mxu1 %v8191_v30  ;;  %v4716_v30 = vld [vmem:[%s9436_s14 + $0x1a8] sm:$0xff] }
 0x3c6   : > { %v8184_v23 = vcombine.high %v4903_v50, %v4907_v11  ;;  %v4767_v56 = vld [vmem:[%s9436_s14 + $0x340] sm:$0xff]  ;;  %6231 = vmatprep.subr.bf16.mxu0 %v8056_v32  ;;  %v8183_v27 = vcombine.low %v4903_v50, %v4907_v11  ;;  %v8002_v50 = vcombine.high %v4720_v47, %v4724_v45  ;;  %v8130_v11 = vcombine.high %v4848_v9, %v4852_v51 }
 0x3c7   : > { %v4771_v54 = vld [vmem:[%s9436_s14 + $0x360] sm:$0xff]  ;;  %6232 = vmatpush2.bf16.msra.mxu0 %v8055_v31  ;;  %v11143_v32 = vcombine.low %v11085_v43, %v11085_v43  ;;  %v7994_v31 = vcombine.high %v4712_v61, %v4716_v30  ;;  %v4708_v43 = vld [vmem:[%s9436_s14 + $0x168] sm:$0xff] }
 0x3c8   : > { %v4895_v59 = vld [vmem:[%s9436_s14 + $0x740] sm:$0xff]  ;;  %v8048_v34 = vcombine.high %v4767_v56, %v4771_v54  ;;  %6272 = vmatprep.subr.bf16.mxu1 %v8184_v23  ;;  %v8047_v55 = vcombine.low %v4767_v56, %v4771_v54  ;;  %v4840_v23 = vld [vmem:[%s9436_s14 + $0x588] sm:$0xff]  ;;  %v11149_v54 = vcombine.low %v11087_v15, %v11087_v15  ;;  %v7993_v15 = vcombine.low %v4712_v61, %v4716_v30 }
 0x3c9   : > { %v4899_v37 = vld [vmem:[%s9436_s14 + $0x760] sm:$0xff]  ;;  %6273 = vmatpush2.bf16.msra.mxu1 %v8183_v27  ;;  %v4844_v56 = vld [vmem:[%s9436_s14 + $0x5a8] sm:$0xff] }
 0x3ca   : > { %v8176_v24 = vcombine.high %v4895_v59, %v4899_v37  ;;  %v4759_v53 = vld [vmem:[%s9436_s14 + $0x300] sm:$0xff]  ;;  %6233 = vmatprep.subr.bf16.mxu0 %v8048_v34  ;;  %v8175_v3 = vcombine.low %v4895_v59, %v4899_v37  ;;  %v8001_v59 = vcombine.low %v4720_v47, %v4724_v45  ;;  %v8129_v37 = vcombine.low %v4848_v9, %v4852_v51  ;;  %v4704_v34 = vld [vmem:[%s9436_s14 + $0x148] sm:$0xff] }
 0x3cb   : > { %v4763_v7 = vld [vmem:[%s9436_s14 + $0x320] sm:$0xff]  ;;  %6234 = vmatpush2.bf16.msra.mxu0 %v8047_v55  ;;  %v8122_v27 = vcombine.high %v4840_v23, %v4844_v56  ;;  %v4696_v55 = vld [vmem:[%s9436_s14 + $0x108] sm:$0xff] }
 0x3cc   : > { %v4887_v28 = vld [vmem:[%s9436_s14 + $0x700] sm:$0xff]  ;;  %v8040_v39 = vcombine.high %v4759_v53, %v4763_v7  ;;  %6274 = vmatprep.subr.bf16.mxu1 %v8176_v24  ;;  %v8039_v40 = vcombine.low %v4759_v53, %v4763_v7  ;;  %v4832_v24 = vld [vmem:[%s9436_s14 + $0x548] sm:$0xff]  ;;  %v8121_v7 = vcombine.low %v4840_v23, %v4844_v56 }
 0x3cd   : > { %v4891_v38 = vld [vmem:[%s9436_s14 + $0x720] sm:$0xff]  ;;  %6275 = vmatpush2.bf16.msra.mxu1 %v8175_v3  ;;  %v4836_v53 = vld [vmem:[%s9436_s14 + $0x568] sm:$0xff] }
 0x3ce   : > { %v8168_v6 = vcombine.high %v4887_v28, %v4891_v38  ;;  %v4751_v52 = vld [vmem:[%s9436_s14 + $0x2c0] sm:$0xff]  ;;  %6235 = vmatprep.subr.bf16.mxu0 %v8040_v39  ;;  %v8167_v14 = vcombine.low %v4887_v28, %v4891_v38  ;;  %v7986_v28 = vcombine.high %v4704_v34, %v4708_v43  ;;  %v8114_v38 = vcombine.high %v4832_v24, %v4836_v53  ;;  %v4700_v3 = vld [vmem:[%s9436_s14 + $0x128] sm:$0xff] }
 0x3cf   : > { %v4755_v35 = vld [vmem:[%s9436_s14 + $0x2e0] sm:$0xff]  ;;  %6236 = vmatpush2.bf16.msra.mxu0 %v8039_v40  ;;  %v4824_v39 = vld [vmem:[%s9436_s14 + $0x508] sm:$0xff] }
 0x3d0   : > { %v4879_v49 = vld [vmem:[%s9436_s14 + $0x6c0] sm:$0xff]  ;;  %v8032_v0 = vcombine.high %v4751_v52, %v4755_v35  ;;  %6276 = vmatprep.subr.bf16.mxu1 %v8168_v6  ;;  %v8031_v58 = vcombine.low %v4751_v52, %v4755_v35  ;;  %v4828_v6 = vld [vmem:[%s9436_s14 + $0x528] sm:$0xff]  ;;  %v7985_v52 = vcombine.low %v4704_v34, %v4708_v43  ;;  %v8113_v35 = vcombine.low %v4832_v24, %v4836_v53 }
 0x3d1   : > { %v4883_v2 = vld [vmem:[%s9436_s14 + $0x6e0] sm:$0xff]  ;;  %6277 = vmatpush2.bf16.msra.mxu1 %v8167_v14  ;;  %v4688_v40 = vld [vmem:[%s9436_s14 + $0xc8] sm:$0xff] }
 0x3d2   : > { %v8160_v18 = vcombine.high %v4879_v49, %v4883_v2  ;;  %v4743_v57 = vld [vmem:[%s9436_s14 + $0x280] sm:$0xff]  ;;  %6237 = vmatprep.subr.bf16.mxu0 %v8032_v0  ;;  %v8159_v21 = vcombine.low %v4879_v49, %v4883_v2  ;;  %v7978_v49 = vcombine.high %v4696_v55, %v4700_v3  ;;  %v8106_v2 = vcombine.high %v4824_v39, %v4828_v6  ;;  %v4692_v14 = vld [vmem:[%s9436_s14 + $0xe8] sm:$0xff] }
 0x3d3   : > { %v4747_v36 = vld [vmem:[%s9436_s14 + $0x2a0] sm:$0xff]  ;;  %6238 = vmatpush2.bf16.msra.mxu0 %v8031_v58  ;;  %v4816_v0 = vld [vmem:[%s9436_s14 + $0x4c8] sm:$0xff] }
 0x3d4   : > { %v4871_v12 = vld [vmem:[%s9436_s14 + $0x680] sm:$0xff]  ;;  %v8024_v44 = vcombine.high %v4743_v57, %v4747_v36  ;;  %6278 = vmatprep.subr.bf16.mxu1 %v8160_v18  ;;  %v8023_v29 = vcombine.low %v4743_v57, %v4747_v36  ;;  %v4820_v18 = vld [vmem:[%s9436_s14 + $0x4e8] sm:$0xff]  ;;  %v7977_v57 = vcombine.low %v4696_v55, %v4700_v3  ;;  %v8105_v36 = vcombine.low %v4824_v39, %v4828_v6 }
 0x3d5   : > { %v4875_v25 = vld [vmem:[%s9436_s14 + $0x6a0] sm:$0xff]  ;;  %6279 = vmatpush2.bf16.msra.mxu1 %v8159_v21  ;;  %v4680_v58 = vld [vmem:[%s9436_s14 + $0x88] sm:$0xff] }
 0x3d6   : > { %v8152_v48 = vcombine.high %v4871_v12, %v4875_v25  ;;  %v4735_v42 = vld [vmem:[%s9436_s14 + $0x240] sm:$0xff]  ;;  %6239 = vmatprep.subr.bf16.mxu0 %v8024_v44  ;;  %v8151_v62 = vcombine.low %v4871_v12, %v4875_v25  ;;  %v7970_v12 = vcombine.high %v4688_v40, %v4692_v14  ;;  %v8098_v25 = vcombine.high %v4816_v0, %v4820_v18  ;;  %v4684_v21 = vld [vmem:[%s9436_s14 + $0xa8] sm:$0xff] }
 0x3d7   : > { %v4739_v19 = vld [vmem:[%s9436_s14 + $0x260] sm:$0xff]  ;;  %6240 = vmatpush2.bf16.msra.mxu0 %v8023_v29  ;;  %v4808_v44 = vld [vmem:[%s9436_s14 + $0x488] sm:$0xff] }
 0x3d8   : > { %v4863_v60 = vld [vmem:[%s9436_s14 + $0x640] sm:$0xff]  ;;  %v8016_v5 = vcombine.high %v4735_v42, %v4739_v19  ;;  %6280 = vmatprep.subr.bf16.mxu1 %v8152_v48  ;;  %v8015_v1 = vcombine.low %v4735_v42, %v4739_v19  ;;  %v4812_v48 = vld [vmem:[%s9436_s14 + $0x4a8] sm:$0xff]  ;;  %v7969_v42 = vcombine.low %v4688_v40, %v4692_v14  ;;  %v8097_v19 = vcombine.low %v4816_v0, %v4820_v18 }
 0x3d9   : > { %v4867_v26 = vld [vmem:[%s9436_s14 + $0x660] sm:$0xff]  ;;  %6281 = vmatpush2.bf16.msra.mxu1 %v8151_v62  ;;  %v4672_v29 = vld [vmem:[%s9436_s14 + $0x48] sm:$0xff] }
 0x3da   : > { %v8144_v22 = vcombine.high %v4863_v60, %v4867_v26  ;;  %v4727_v17 = vld [vmem:[%s9436_s14 + $0x200] sm:$0xff]  ;;  %6241 = vmatprep.subr.bf16.mxu0 %v8016_v5  ;;  %v8143_v33 = vcombine.low %v4863_v60, %v4867_v26  ;;  %v7962_v60 = vcombine.high %v4680_v58, %v4684_v21  ;;  %v8090_v26 = vcombine.high %v4808_v44, %v4812_v48  ;;  %v4676_v62 = vld [vmem:[%s9436_s14 + $0x68] sm:$0xff] }
 0x3db   : > { %v4731_v10 = vld [vmem:[%s9436_s14 + $0x220] sm:$0xff]  ;;  %6242 = vmatpush2.bf16.msra.mxu0 %v8015_v1  ;;  %v4800_v5 = vld [vmem:[%s9436_s14 + $0x448] sm:$0xff]  ;;  %v7953_v47 = vcombine.low %v4672_v29, %v4676_v62 }
 0x3dc   : > { %v4855_v8 = vld [vmem:[%s9436_s14 + $0x600] sm:$0xff]  ;;  %v8008_v41 = vcombine.high %v4727_v17, %v4731_v10  ;;  %6282 = vmatprep.subr.bf16.mxu1 %v8144_v22  ;;  %v8007_v13 = vcombine.low %v4727_v17, %v4731_v10  ;;  %v4804_v22 = vld [vmem:[%s9436_s14 + $0x468] sm:$0xff]  ;;  %v7961_v17 = vcombine.low %v4680_v58, %v4684_v21  ;;  %v8089_v10 = vcombine.low %v4808_v44, %v4812_v48 }
 0x3dd   : > { %v4859_v16 = vld [vmem:[%s9436_s14 + $0x620] sm:$0xff]  ;;  %6283 = vmatpush2.bf16.msra.mxu1 %v8143_v33  ;;  %v4664_v1 = vld [vmem:[%s9436_s14 + $0x8] sm:$0xff]  ;;  %v8081_v45 = vcombine.low %v4800_v5, %v4804_v22 }
 0x3de   : > { %v8136_v46 = vcombine.high %v4855_v8, %v4859_v16  ;;  %6243 = vmatprep.subr.bf16.mxu0 %v8008_v41  ;;  %v8135_v63 = vcombine.low %v4855_v8, %v4859_v16  ;;  %v7954_v8 = vcombine.high %v4672_v29, %v4676_v62  ;;  %v8082_v16 = vcombine.high %v4800_v5, %v4804_v22  ;;  %v4668_v33 = vld [vmem:[%s9436_s14 + $0x28] sm:$0xff] }
 0x3df   : > { %6244 = vmatpush2.bf16.msra.mxu0 %v8007_v13  ;;  %v4792_v41 = vld [vmem:[%s9436_s14 + $0x408] sm:$0xff]  ;;  %v7946_v9 = vcombine.high %v4664_v1, %v4668_v33  ;;  %v7945_v61 = vcombine.low %v4664_v1, %v4668_v33 }
 0x3e0   : > { %6284 = vmatprep.subr.bf16.mxu1 %v8136_v46  ;;  %6295 = vmatprep.subr.bf16.mxu0 %v8002_v50  ;;  %v4796_v46 = vld [vmem:[%s9436_s14 + $0x428] sm:$0xff] }
 0x3e1   : > { %6285 = vmatpush2.bf16.msra.mxu1 %v8135_v63  ;;  %v8074_v51 = vcombine.high %v4792_v41, %v4796_v46  ;;  %v4784_v13 = vld [vmem:[%s9436_s14 + $0x3c8] sm:$0xff]  ;;  %v8073_v30 = vcombine.low %v4792_v41, %v4796_v46 }
 0x3e2   : > { %6336 = vmatprep.subr.bf16.mxu1 %v8130_v11  ;;  %6246 = vmatmul.mubr.bf16.vlgmr.msra.gmra.mxu0 %v11143_v32  ;;  %v4788_v63 = vld [vmem:[%s9436_s14 + $0x3e8] sm:$0xff] }
 0x3e3   : > { %6296 = vmatpush1.bf16.msra.mxu0 %v8001_v59  ;;  %6327 = vmatprep.mubr.bf16.mxu0 %v11093_v20  ;;  %v4912_v50 = vld [vmem:[%s9436_s14 + $0x7c8] sm:$0xff]  ;;  %v8066_v23 = vcombine.high %v4784_v13, %v4788_v63  ;;  %v8065_v34 = vcombine.low %v4784_v13, %v4788_v63 }
 0x3e4   : > { %6287 = vmatmul.mubr.bf16.vlgmr.msra.gmra.mxu1 %v11149_v54  ;;  %6297 = vmatprep.subr.bf16.mxu0 %v7994_v31  ;;  %v4916_v11 = vld [vmem:[%s9436_s14 + $0x7e8] sm:$0xff] }
 0x3e5   : > { %6337 = vmatpush1.bf16.msra.mxu1 %v8129_v37  ;;  %6368 = vmatprep.mubr.bf16.mxu1 %v11097_v4  ;;  %v8194_v56 = vcombine.high %v4912_v50, %v4916_v11  ;;  %v4776_v59 = vld [vmem:[%s9436_s14 + $0x388] sm:$0xff]  ;;  %v8193_v43 = vcombine.low %v4912_v50, %v4916_v11 }
 0x3e6   : > { %6338 = vmatprep.subr.bf16.mxu1 %v8122_v27  ;;  %v4780_v37 = vld [vmem:[%s9436_s14 + $0x3a8] sm:$0xff] }
 0x3e7   : > { %6298 = vmatpush1.bf16.msra.mxu0 %v7993_v15  ;;  %v4904_v31 = vld [vmem:[%s9436_s14 + $0x788] sm:$0xff]  ;;  %v8058_v24 = vcombine.high %v4776_v59, %v4780_v37  ;;  %v8057_v55 = vcombine.low %v4776_v59, %v4780_v37 }
 0x3e8   : > { %6299 = vmatprep.subr.bf16.mxu0 %v7986_v28  ;;  %v4908_v27 = vld [vmem:[%s9436_s14 + $0x7a8] sm:$0xff] }
 0x3e9   : > { %6339 = vmatpush1.bf16.msra.mxu1 %v8121_v7  ;;  %v8186_v53 = vcombine.high %v4904_v31, %v4908_v27  ;;  %v4768_v15 = vld [vmem:[%s9436_s14 + $0x348] sm:$0xff]  ;;  %v8185_v3 = vcombine.low %v4904_v31, %v4908_v27 }
 0x3ea   : > { %6340 = vmatprep.subr.bf16.mxu1 %v8114_v38  ;;  %v4772_v7 = vld [vmem:[%s9436_s14 + $0x368] sm:$0xff] }
 0x3eb   : > { %6300 = vmatpush1.bf16.msra.mxu0 %v7985_v52  ;;  %v4896_v28 = vld [vmem:[%s9436_s14 + $0x748] sm:$0xff]  ;;  %v8050_v39 = vcombine.high %v4768_v15, %v4772_v7  ;;  %v8049_v40 = vcombine.low %v4768_v15, %v4772_v7 }
 0x3ec   : > { %6301 = vmatprep.subr.bf16.mxu0 %v7978_v49  ;;  %v4900_v38 = vld [vmem:[%s9436_s14 + $0x768] sm:$0xff] }
 0x3ed   : > { %6341 = vmatpush1.bf16.msra.mxu1 %v8113_v35  ;;  %v8178_v6 = vcombine.high %v4896_v28, %v4900_v38  ;;  %v4760_v52 = vld [vmem:[%s9436_s14 + $0x308] sm:$0xff]  ;;  %v8177_v14 = vcombine.low %v4896_v28, %v4900_v38 }
 0x3ee   : > { %6342 = vmatprep.subr.bf16.mxu1 %v8106_v2  ;;  %v4764_v35 = vld [vmem:[%s9436_s14 + $0x328] sm:$0xff] }
 0x3ef   : > { %6302 = vmatpush1.bf16.msra.mxu0 %v7977_v57  ;;  %v4888_v49 = vld [vmem:[%s9436_s14 + $0x708] sm:$0xff]  ;;  %v8042_v0 = vcombine.high %v4760_v52, %v4764_v35  ;;  %v8041_v58 = vcombine.low %v4760_v52, %v4764_v35 }
 0x3f0   : > { %6303 = vmatprep.subr.bf16.mxu0 %v7970_v12  ;;  %v4892_v2 = vld [vmem:[%s9436_s14 + $0x728] sm:$0xff] }
 0x3f1   : > { %6343 = vmatpush1.bf16.msra.mxu1 %v8105_v36  ;;  %v8170_v18 = vcombine.high %v4888_v49, %v4892_v2  ;;  %v4752_v57 = vld [vmem:[%s9436_s14 + $0x2c8] sm:$0xff]  ;;  %v8169_v21 = vcombine.low %v4888_v49, %v4892_v2 }
 0x3f2   : > { %6344 = vmatprep.subr.bf16.mxu1 %v8098_v25  ;;  %v4756_v36 = vld [vmem:[%s9436_s14 + $0x2e8] sm:$0xff] }
 0x3f3   : > { %6304 = vmatpush1.bf16.msra.mxu0 %v7969_v42  ;;  %v4880_v12 = vld [vmem:[%s9436_s14 + $0x6c8] sm:$0xff]  ;;  %v8034_v44 = vcombine.high %v4752_v57, %v4756_v36  ;;  %v8033_v29 = vcombine.low %v4752_v57, %v4756_v36 }
 0x3f4   : > { %6305 = vmatprep.subr.bf16.mxu0 %v7962_v60  ;;  %v4884_v25 = vld [vmem:[%s9436_s14 + $0x6e8] sm:$0xff] }
 0x3f5   : > { %6345 = vmatpush1.bf16.msra.mxu1 %v8097_v19  ;;  %v8162_v48 = vcombine.high %v4880_v12, %v4884_v25  ;;  %v4744_v42 = vld [vmem:[%s9436_s14 + $0x288] sm:$0xff]  ;;  %v8161_v62 = vcombine.low %v4880_v12, %v4884_v25 }
 0x3f6   : > { %6346 = vmatprep.subr.bf16.mxu1 %v8090_v26  ;;  %v4748_v19 = vld [vmem:[%s9436_s14 + $0x2a8] sm:$0xff] }
 0x3f7   : > { %6306 = vmatpush1.bf16.msra.mxu0 %v7961_v17  ;;  %v4872_v60 = vld [vmem:[%s9436_s14 + $0x688] sm:$0xff]  ;;  %v8026_v5 = vcombine.high %v4744_v42, %v4748_v19  ;;  %v8025_v1 = vcombine.low %v4744_v42, %v4748_v19 }
 0x3f8   : > { %6307 = vmatprep.subr.bf16.mxu0 %v7954_v8  ;;  %v4876_v26 = vld [vmem:[%s9436_s14 + $0x6a8] sm:$0xff] }
 0x3f9   : > { %6347 = vmatpush1.bf16.msra.mxu1 %v8089_v10  ;;  %v8154_v22 = vcombine.high %v4872_v60, %v4876_v26  ;;  %v4736_v17 = vld [vmem:[%s9436_s14 + $0x248] sm:$0xff]  ;;  %v8153_v33 = vcombine.low %v4872_v60, %v4876_v26 }
 0x3fa   : > { %6348 = vmatprep.subr.bf16.mxu1 %v8082_v16  ;;  %v4740_v10 = vld [vmem:[%s9436_s14 + $0x268] sm:$0xff] }
 0x3fb   : > { %6308 = vmatpush1.bf16.msra.mxu0 %v7953_v47  ;;  %v4864_v8 = vld [vmem:[%s9436_s14 + $0x648] sm:$0xff]  ;;  %v8018_v41 = vcombine.high %v4736_v17, %v4740_v10  ;;  %v8017_v13 = vcombine.low %v4736_v17, %v4740_v10 }
 0x3fc   : > { %6309 = vmatprep.subr.bf16.mxu0 %v7946_v9  ;;  %v4868_v16 = vld [vmem:[%s9436_s14 + $0x668] sm:$0xff] }
 0x3fd   : > { %6349 = vmatpush1.bf16.msra.mxu1 %v8081_v45  ;;  %v8146_v46 = vcombine.high %v4864_v8, %v4868_v16  ;;  %v4728_v47 = vld [vmem:[%s9436_s14 + $0x208] sm:$0xff]  ;;  %v8145_v63 = vcombine.low %v4864_v8, %v4868_v16 }
 0x3fe   : > { %6350 = vmatprep.subr.bf16.mxu1 %v8074_v51  ;;  %v4732_v45 = vld [vmem:[%s9436_s14 + $0x228] sm:$0xff] }
 0x3ff   : > { %6310 = vmatpush1.bf16.msra.mxu0 %v7945_v61  ;;  %v4856_v9 = vld [vmem:[%s9436_s14 + $0x608] sm:$0xff]  ;;  %v8010_v50 = vcombine.high %v4728_v47, %v4732_v45  ;;  %v4721_v61 = vld [vmem:[%s9436_s14 + $0x1d0] sm:$0xff]  ;;  %v8009_v59 = vcombine.low %v4728_v47, %v4732_v45 }
 0x400   : > { %6311 = vmatprep.subr.bf16.mxu0 %v8066_v23  ;;  %v4860_v51 = vld [vmem:[%s9436_s14 + $0x628] sm:$0xff]  ;;  %v4849_v23 = vld [vmem:[%s9436_s14 + $0x5d0] sm:$0xff] }
 0x401   : > { %6351 = vmatpush1.bf16.msra.mxu1 %v8073_v30  ;;  %v8138_v11 = vcombine.high %v4856_v9, %v4860_v51  ;;  %v4725_v30 = vld [vmem:[%s9436_s14 + $0x1f0] sm:$0xff]  ;;  %v8137_v37 = vcombine.low %v4856_v9, %v4860_v51 }
 0x402   : > { %6352 = vmatprep.subr.bf16.mxu1 %v8194_v56  ;;  %v4853_v56 = vld [vmem:[%s9436_s14 + $0x5f0] sm:$0xff]  ;;  %v8004_v31 = vcombine.high %v4721_v61, %v4725_v30  ;;  %v8003_v15 = vcombine.low %v4721_v61, %v4725_v30 }
 0x403   : > { %6312 = vmatpush2.bf16.msra.mxu0 %v8065_v34  ;;  %v8132_v27 = vcombine.high %v4849_v23, %v4853_v56  ;;  %v4713_v34 = vld [vmem:[%s9436_s14 + $0x190] sm:$0xff]  ;;  %v8131_v7 = vcombine.low %v4849_v23, %v4853_v56 }
 0x404   : > { %6313 = vmatprep.subr.bf16.mxu0 %v8058_v24  ;;  %v4841_v24 = vld [vmem:[%s9436_s14 + $0x590] sm:$0xff] }
 0x405   : > { %6353 = vmatpush2.bf16.msra.mxu1 %v8193_v43  ;;  %v4717_v43 = vld [vmem:[%s9436_s14 + $0x1b0] sm:$0xff] }
 0x406   : > { %6354 = vmatprep.subr.bf16.mxu1 %v8186_v53  ;;  %v4845_v53 = vld [vmem:[%s9436_s14 + $0x5b0] sm:$0xff]  ;;  %v7996_v28 = vcombine.high %v4713_v34, %v4717_v43  ;;  %v7995_v52 = vcombine.low %v4713_v34, %v4717_v43 }
 0x407   : > { %6314 = vmatpush2.bf16.msra.mxu0 %v8057_v55  ;;  %v8124_v38 = vcombine.high %v4841_v24, %v4845_v53  ;;  %v4705_v55 = vld [vmem:[%s9436_s14 + $0x150] sm:$0xff]  ;;  %v8123_v35 = vcombine.low %v4841_v24, %v4845_v53 }
 0x408   : > { %6315 = vmatprep.subr.bf16.mxu0 %v8050_v39  ;;  %v4833_v39 = vld [vmem:[%s9436_s14 + $0x550] sm:$0xff] }
 0x409   : > { %6355 = vmatpush2.bf16.msra.mxu1 %v8185_v3  ;;  %v4709_v3 = vld [vmem:[%s9436_s14 + $0x170] sm:$0xff] }
 0x40a   : > { %6356 = vmatprep.subr.bf16.mxu1 %v8178_v6  ;;  %v4837_v6 = vld [vmem:[%s9436_s14 + $0x570] sm:$0xff]  ;;  %v7988_v49 = vcombine.high %v4705_v55, %v4709_v3  ;;  %v7987_v57 = vcombine.low %v4705_v55, %v4709_v3 }
 0x40b   : > { %6316 = vmatpush2.bf16.msra.mxu0 %v8049_v40  ;;  %v8116_v2 = vcombine.high %v4833_v39, %v4837_v6  ;;  %v4697_v40 = vld [vmem:[%s9436_s14 + $0x110] sm:$0xff]  ;;  %v8115_v36 = vcombine.low %v4833_v39, %v4837_v6 }
 0x40c   : > { %6317 = vmatprep.subr.bf16.mxu0 %v8042_v0  ;;  %v4825_v0 = vld [vmem:[%s9436_s14 + $0x510] sm:$0xff] }
 0x40d   : > { %6357 = vmatpush2.bf16.msra.mxu1 %v8177_v14  ;;  %v4701_v14 = vld [vmem:[%s9436_s14 + $0x130] sm:$0xff] }
 0x40e   : > { %6358 = vmatprep.subr.bf16.mxu1 %v8170_v18  ;;  %v4829_v18 = vld [vmem:[%s9436_s14 + $0x530] sm:$0xff]  ;;  %v7980_v12 = vcombine.high %v4697_v40, %v4701_v14  ;;  %v7979_v42 = vcombine.low %v4697_v40, %v4701_v14 }
 0x40f   : > { %6318 = vmatpush2.bf16.msra.mxu0 %v8041_v58  ;;  %v8108_v25 = vcombine.high %v4825_v0, %v4829_v18  ;;  %v4689_v58 = vld [vmem:[%s9436_s14 + $0xd0] sm:$0xff]  ;;  %v8107_v19 = vcombine.low %v4825_v0, %v4829_v18 }
 0x410   : > { %6319 = vmatprep.subr.bf16.mxu0 %v8034_v44  ;;  %v4817_v44 = vld [vmem:[%s9436_s14 + $0x4d0] sm:$0xff] }
 0x411   : > { %6359 = vmatpush2.bf16.msra.mxu1 %v8169_v21  ;;  %v4693_v21 = vld [vmem:[%s9436_s14 + $0xf0] sm:$0xff] }
 0x412   : > { %6360 = vmatprep.subr.bf16.mxu1 %v8162_v48  ;;  %v4821_v48 = vld [vmem:[%s9436_s14 + $0x4f0] sm:$0xff]  ;;  %v7972_v60 = vcombine.high %v4689_v58, %v4693_v21  ;;  %v7971_v17 = vcombine.low %v4689_v58, %v4693_v21 }
 0x413   : > { %6320 = vmatpush2.bf16.msra.mxu0 %v8033_v29  ;;  %v8100_v26 = vcombine.high %v4817_v44, %v4821_v48  ;;  %v4681_v29 = vld [vmem:[%s9436_s14 + $0x90] sm:$0xff]  ;;  %v8099_v10 = vcombine.low %v4817_v44, %v4821_v48 }
 0x414   : > { %6321 = vmatprep.subr.bf16.mxu0 %v8026_v5  ;;  %v4809_v5 = vld [vmem:[%s9436_s14 + $0x490] sm:$0xff] }
 0x415   : > { %6361 = vmatpush2.bf16.msra.mxu1 %v8161_v62  ;;  %v4685_v62 = vld [vmem:[%s9436_s14 + $0xb0] sm:$0xff] }
 0x416   : > { %6362 = vmatprep.subr.bf16.mxu1 %v8154_v22  ;;  %v4813_v22 = vld [vmem:[%s9436_s14 + $0x4b0] sm:$0xff]  ;;  %v7964_v8 = vcombine.high %v4681_v29, %v4685_v62  ;;  %v7963_v47 = vcombine.low %v4681_v29, %v4685_v62 }
 0x417   : > { %6322 = vmatpush2.bf16.msra.mxu0 %v8025_v1  ;;  %v8092_v16 = vcombine.high %v4809_v5, %v4813_v22  ;;  %v4673_v1 = vld [vmem:[%s9436_s14 + $0x50] sm:$0xff]  ;;  %v8091_v45 = vcombine.low %v4809_v5, %v4813_v22 }
 0x418   : > { %6323 = vmatprep.subr.bf16.mxu0 %v8018_v41  ;;  %v4801_v41 = vld [vmem:[%s9436_s14 + $0x450] sm:$0xff] }
 0x419   : > { %6363 = vmatpush2.bf16.msra.mxu1 %v8153_v33  ;;  %v4677_v33 = vld [vmem:[%s9436_s14 + $0x70] sm:$0xff] }
 0x41a   : > { %6364 = vmatprep.subr.bf16.mxu1 %v8146_v46  ;;  %v4805_v46 = vld [vmem:[%s9436_s14 + $0x470] sm:$0xff]  ;;  %v7956_v9 = vcombine.high %v4673_v1, %v4677_v33  ;;  %v7955_v61 = vcombine.low %v4673_v1, %v4677_v33 }
 0x41b   : > { %6324 = vmatpush2.bf16.msra.mxu0 %v8017_v13  ;;  %v8084_v51 = vcombine.high %v4801_v41, %v4805_v46  ;;  %v4665_v13 = vld [vmem:[%s9436_s14 + $0x10] sm:$0xff]  ;;  %v8083_v30 = vcombine.low %v4801_v41, %v4805_v46 }
 0x41c   : > { %6325 = vmatprep.subr.bf16.mxu0 %v8010_v50  ;;  %v4793_v50 = vld [vmem:[%s9436_s14 + $0x410] sm:$0xff] }
 0x41d   : > { %6365 = vmatpush2.bf16.msra.mxu1 %v8145_v63  ;;  %v4669_v63 = vld [vmem:[%s9436_s14 + $0x30] sm:$0xff] }
 0x41e   : > { %6366 = vmatprep.subr.bf16.mxu1 %v8138_v11  ;;  %v4797_v11 = vld [vmem:[%s9436_s14 + $0x430] sm:$0xff]  ;;  %v7948_v23 = vcombine.high %v4665_v13, %v4669_v63  ;;  %v7947_v34 = vcombine.low %v4665_v13, %v4669_v63 }
 0x41f   : > { %6326 = vmatpush2.bf16.msra.mxu0 %v8009_v59  ;;  %v8076_v56 = vcombine.high %v4793_v50, %v4797_v11  ;;  %v4785_v59 = vld [vmem:[%s9436_s14 + $0x3d0] sm:$0xff]  ;;  %v8075_v43 = vcombine.low %v4793_v50, %v4797_v11 }
 0x420   : > { %6377 = vmatprep.subr.bf16.mxu0 %v8004_v31  ;;  %v4913_v31 = vld [vmem:[%s9436_s14 + $0x7d0] sm:$0xff] }
 0x421   : > { %6367 = vmatpush2.bf16.msra.mxu1 %v8137_v37  ;;  %v4789_v37 = vld [vmem:[%s9436_s14 + $0x3f0] sm:$0xff] }
 0x422   : > { %6418 = vmatprep.subr.bf16.mxu1 %v8132_v27  ;;  %6328 = vmatmul.mubr.bf16.vlgmr.msra.gmra.mxu0 %v11143_v32  ;;  %v4917_v27 = vld [vmem:[%s9436_s14 + $0x7f0] sm:$0xff]  ;;  %v8068_v24 = vcombine.high %v4785_v59, %v4789_v37  ;;  %v8067_v55 = vcombine.low %v4785_v59, %v4789_v37 }
 0x423   : > { %6378 = vmatpush1.bf16.msra.mxu0 %v8003_v15  ;;  %6409 = vmatprep.mubr.bf16.mxu0 %v11093_v20  ;;  %v8196_v53 = vcombine.high %v4913_v31, %v4917_v27  ;;  %v4777_v15 = vld [vmem:[%s9436_s14 + $0x390] sm:$0xff]  ;;  %v8195_v3 = vcombine.low %v4913_v31, %v4917_v27 }
 0x424   : > { %6369 = vmatmul.mubr.bf16.vlgmr.msra.gmra.mxu1 %v11149_v54  ;;  %6379 = vmatprep.subr.bf16.mxu0 %v7996_v28  ;;  %v4905_v28 = vld [vmem:[%s9436_s14 + $0x790] sm:$0xff] }
 0x425   : > { %6419 = vmatpush1.bf16.msra.mxu1 %v8131_v7  ;;  %6450 = vmatprep.mubr.bf16.mxu1 %v11097_v4  ;;  %v4781_v7 = vld [vmem:[%s9436_s14 + $0x3b0] sm:$0xff] }
 0x426   : > { %6420 = vmatprep.subr.bf16.mxu1 %v8124_v38  ;;  %v4909_v38 = vld [vmem:[%s9436_s14 + $0x7b0] sm:$0xff]  ;;  %v8060_v39 = vcombine.high %v4777_v15, %v4781_v7  ;;  %v8059_v40 = vcombine.low %v4777_v15, %v4781_v7 }
 0x427   : > { %6380 = vmatpush1.bf16.msra.mxu0 %v7995_v52  ;;  %v8188_v6 = vcombine.high %v4905_v28, %v4909_v38  ;;  %v4769_v52 = vld [vmem:[%s9436_s14 + $0x350] sm:$0xff]  ;;  %v8187_v14 = vcombine.low %v4905_v28, %v4909_v38 }
 0x428   : > { %6381 = vmatprep.subr.bf16.mxu0 %v7988_v49  ;;  %v4897_v49 = vld [vmem:[%s9436_s14 + $0x750] sm:$0xff] }
 0x429   : > { %6421 = vmatpush1.bf16.msra.mxu1 %v8123_v35  ;;  %v4773_v35 = vld [vmem:[%s9436_s14 + $0x370] sm:$0xff] }
 0x42a   : > { %6422 = vmatprep.subr.bf16.mxu1 %v8116_v2  ;;  %v4901_v2 = vld [vmem:[%s9436_s14 + $0x770] sm:$0xff]  ;;  %v8052_v0 = vcombine.high %v4769_v52, %v4773_v35  ;;  %v8051_v58 = vcombine.low %v4769_v52, %v4773_v35 }
 0x42b   : > { %6382 = vmatpush1.bf16.msra.mxu0 %v7987_v57  ;;  %v8180_v18 = vcombine.high %v4897_v49, %v4901_v2  ;;  %v4761_v57 = vld [vmem:[%s9436_s14 + $0x310] sm:$0xff]  ;;  %v8179_v21 = vcombine.low %v4897_v49, %v4901_v2 }
 0x42c   : > { %6383 = vmatprep.subr.bf16.mxu0 %v7980_v12  ;;  %v4889_v12 = vld [vmem:[%s9436_s14 + $0x710] sm:$0xff] }
 0x42d   : > { %6423 = vmatpush1.bf16.msra.mxu1 %v8115_v36  ;;  %v4765_v36 = vld [vmem:[%s9436_s14 + $0x330] sm:$0xff] }
 0x42e   : > { %6424 = vmatprep.subr.bf16.mxu1 %v8108_v25  ;;  %v4893_v25 = vld [vmem:[%s9436_s14 + $0x730] sm:$0xff]  ;;  %v8044_v44 = vcombine.high %v4761_v57, %v4765_v36  ;;  %v8043_v29 = vcombine.low %v4761_v57, %v4765_v36 }
 0x42f   : > { %6384 = vmatpush1.bf16.msra.mxu0 %v7979_v42  ;;  %v8172_v48 = vcombine.high %v4889_v12, %v4893_v25  ;;  %v4753_v42 = vld [vmem:[%s9436_s14 + $0x2d0] sm:$0xff]  ;;  %v8171_v62 = vcombine.low %v4889_v12, %v4893_v25 }
 0x430   : > { %6385 = vmatprep.subr.bf16.mxu0 %v7972_v60  ;;  %v4881_v60 = vld [vmem:[%s9436_s14 + $0x6d0] sm:$0xff] }
 0x431   : > { %6425 = vmatpush1.bf16.msra.mxu1 %v8107_v19  ;;  %v4757_v19 = vld [vmem:[%s9436_s14 + $0x2f0] sm:$0xff] }
 0x432   : > { %6426 = vmatprep.subr.bf16.mxu1 %v8100_v26  ;;  %v4885_v26 = vld [vmem:[%s9436_s14 + $0x6f0] sm:$0xff]  ;;  %v8036_v5 = vcombine.high %v4753_v42, %v4757_v19  ;;  %v8035_v1 = vcombine.low %v4753_v42, %v4757_v19 }
 0x433   : > { %6386 = vmatpush1.bf16.msra.mxu0 %v7971_v17  ;;  %v8164_v22 = vcombine.high %v4881_v60, %v4885_v26  ;;  %v4745_v17 = vld [vmem:[%s9436_s14 + $0x290] sm:$0xff]  ;;  %v8163_v33 = vcombine.low %v4881_v60, %v4885_v26 }
 0x434   : > { %6387 = vmatprep.subr.bf16.mxu0 %v7964_v8  ;;  %v4873_v8 = vld [vmem:[%s9436_s14 + $0x690] sm:$0xff] }
 0x435   : > { %6427 = vmatpush1.bf16.msra.mxu1 %v8099_v10  ;;  %v4749_v10 = vld [vmem:[%s9436_s14 + $0x2b0] sm:$0xff] }
 0x436   : > { %6428 = vmatprep.subr.bf16.mxu1 %v8092_v16  ;;  %v4877_v16 = vld [vmem:[%s9436_s14 + $0x6b0] sm:$0xff]  ;;  %v8028_v41 = vcombine.high %v4745_v17, %v4749_v10  ;;  %v8027_v13 = vcombine.low %v4745_v17, %v4749_v10 }
 0x437   : > { %6388 = vmatpush1.bf16.msra.mxu0 %v7963_v47  ;;  %v8156_v46 = vcombine.high %v4873_v8, %v4877_v16  ;;  %v4737_v47 = vld [vmem:[%s9436_s14 + $0x250] sm:$0xff]  ;;  %v8155_v63 = vcombine.low %v4873_v8, %v4877_v16  ;;  %v4682_v8 = vld [vmem:[%s9436_s14 + $0x98] sm:$0xff] }
 0x438   : > { %6389 = vmatprep.subr.bf16.mxu0 %v7956_v9  ;;  %v4865_v9 = vld [vmem:[%s9436_s14 + $0x650] sm:$0xff]  ;;  %v4686_v16 = vld [vmem:[%s9436_s14 + $0xb8] sm:$0xff] }
 0x439   : > { %6429 = vmatpush1.bf16.msra.mxu1 %v8091_v45  ;;  %v4741_v45 = vld [vmem:[%s9436_s14 + $0x270] sm:$0xff] }
 0x43a   : > { %6430 = vmatprep.subr.bf16.mxu1 %v8084_v51  ;;  %v4869_v51 = vld [vmem:[%s9436_s14 + $0x670] sm:$0xff]  ;;  %v8020_v50 = vcombine.high %v4737_v47, %v4741_v45  ;;  %v8019_v59 = vcombine.low %v4737_v47, %v4741_v45  ;;  %v7966_v47 = vcombine.high %v4682_v8, %v4686_v16 }
 0x43b   : > { %6390 = vmatpush1.bf16.msra.mxu0 %v7955_v61  ;;  %v8148_v11 = vcombine.high %v4865_v9, %v4869_v51  ;;  %v4729_v61 = vld [vmem:[%s9436_s14 + $0x210] sm:$0xff]  ;;  %v8147_v37 = vcombine.low %v4865_v9, %v4869_v51  ;;  %v4674_v9 = vld [vmem:[%s9436_s14 + $0x58] sm:$0xff] }
 0x43c   : > { %6391 = vmatprep.subr.bf16.mxu0 %v7948_v23  ;;  %v4857_v23 = vld [vmem:[%s9436_s14 + $0x610] sm:$0xff]  ;;  %v4678_v51 = vld [vmem:[%s9436_s14 + $0x78] sm:$0xff] }
 0x43d   : > { %6431 = vmatpush1.bf16.msra.mxu1 %v8083_v30  ;;  %v4733_v30 = vld [vmem:[%s9436_s14 + $0x230] sm:$0xff] }
 0x43e   : > { %6432 = vmatprep.subr.bf16.mxu1 %v8076_v56  ;;  %v4861_v56 = vld [vmem:[%s9436_s14 + $0x630] sm:$0xff]  ;;  %v8012_v31 = vcombine.high %v4729_v61, %v4733_v30  ;;  %v8011_v15 = vcombine.low %v4729_v61, %v4733_v30  ;;  %v7958_v61 = vcombine.high %v4674_v9, %v4678_v51 }
 0x43f   : > { %6392 = vmatpush1.bf16.msra.mxu0 %v7947_v34  ;;  %v8140_v27 = vcombine.high %v4857_v23, %v4861_v56  ;;  %v4722_v34 = vld [vmem:[%s9436_s14 + $0x1d8] sm:$0xff]  ;;  %v8139_v7 = vcombine.low %v4857_v23, %v4861_v56 }
 0x440   : > { %6393 = vmatprep.subr.bf16.mxu0 %v8068_v24  ;;  %v4850_v24 = vld [vmem:[%s9436_s14 + $0x5d8] sm:$0xff] }
 0x441   : > { %6433 = vmatpush1.bf16.msra.mxu1 %v8075_v43  ;;  %v4726_v43 = vld [vmem:[%s9436_s14 + $0x1f8] sm:$0xff] }
 0x442   : > { %6434 = vmatprep.subr.bf16.mxu1 %v8196_v53  ;;  %v4854_v53 = vld [vmem:[%s9436_s14 + $0x5f8] sm:$0xff]  ;;  %v8006_v28 = vcombine.high %v4722_v34, %v4726_v43  ;;  %v8005_v52 = vcombine.low %v4722_v34, %v4726_v43 }
 0x443   : > { %6394 = vmatpush2.bf16.msra.mxu0 %v8067_v55  ;;  %v8134_v38 = vcombine.high %v4850_v24, %v4854_v53  ;;  %v4714_v55 = vld [vmem:[%s9436_s14 + $0x198] sm:$0xff]  ;;  %v8133_v35 = vcombine.low %v4850_v24, %v4854_v53 }
 0x444   : > { %6395 = vmatprep.subr.bf16.mxu0 %v8060_v39  ;;  %v4842_v39 = vld [vmem:[%s9436_s14 + $0x598] sm:$0xff] }
 0x445   : > { %6435 = vmatpush2.bf16.msra.mxu1 %v8195_v3  ;;  %v4718_v3 = vld [vmem:[%s9436_s14 + $0x1b8] sm:$0xff] }
 0x446   : > { %6436 = vmatprep.subr.bf16.mxu1 %v8188_v6  ;;  %v4846_v6 = vld [vmem:[%s9436_s14 + $0x5b8] sm:$0xff]  ;;  %v7998_v49 = vcombine.high %v4714_v55, %v4718_v3  ;;  %v7997_v57 = vcombine.low %v4714_v55, %v4718_v3 }
 0x447   : > { %6396 = vmatpush2.bf16.msra.mxu0 %v8059_v40  ;;  %v8126_v2 = vcombine.high %v4842_v39, %v4846_v6  ;;  %v4706_v40 = vld [vmem:[%s9436_s14 + $0x158] sm:$0xff]  ;;  %v8125_v36 = vcombine.low %v4842_v39, %v4846_v6 }
 0x448   : > { %6397 = vmatprep.subr.bf16.mxu0 %v8052_v0  ;;  %v4834_v0 = vld [vmem:[%s9436_s14 + $0x558] sm:$0xff] }
 0x449   : > { %6437 = vmatpush2.bf16.msra.mxu1 %v8187_v14  ;;  %v4710_v14 = vld [vmem:[%s9436_s14 + $0x178] sm:$0xff] }
 0x44a   : > { %6438 = vmatprep.subr.bf16.mxu1 %v8180_v18  ;;  %v4838_v18 = vld [vmem:[%s9436_s14 + $0x578] sm:$0xff]  ;;  %v7990_v12 = vcombine.high %v4706_v40, %v4710_v14  ;;  %v7989_v42 = vcombine.low %v4706_v40, %v4710_v14 }
 0x44b   : > { %6398 = vmatpush2.bf16.msra.mxu0 %v8051_v58  ;;  %v8118_v25 = vcombine.high %v4834_v0, %v4838_v18  ;;  %v4698_v58 = vld [vmem:[%s9436_s14 + $0x118] sm:$0xff]  ;;  %v8117_v19 = vcombine.low %v4834_v0, %v4838_v18 }
 0x44c   : > { %6399 = vmatprep.subr.bf16.mxu0 %v8044_v44  ;;  %v4826_v44 = vld [vmem:[%s9436_s14 + $0x518] sm:$0xff] }
 0x44d   : > { %6439 = vmatpush2.bf16.msra.mxu1 %v8179_v21  ;;  %v4702_v21 = vld [vmem:[%s9436_s14 + $0x138] sm:$0xff] }
 0x44e   : > { %6440 = vmatprep.subr.bf16.mxu1 %v8172_v48  ;;  %v4830_v48 = vld [vmem:[%s9436_s14 + $0x538] sm:$0xff]  ;;  %v7982_v60 = vcombine.high %v4698_v58, %v4702_v21 }
 0x44f   : > { %6400 = vmatpush2.bf16.msra.mxu0 %v8043_v29  ;;  %v8110_v26 = vcombine.high %v4826_v44, %v4830_v48  ;;  %v4690_v29 = vld [vmem:[%s9436_s14 + $0xd8] sm:$0xff] }
 0x450   : > { %6401 = vmatprep.subr.bf16.mxu0 %v8036_v5  ;;  %v4818_v5 = vld [vmem:[%s9436_s14 + $0x4d8] sm:$0xff] }
 0x451   : > { %6441 = vmatpush2.bf16.msra.mxu1 %v8171_v62  ;;  %v4694_v62 = vld [vmem:[%s9436_s14 + $0xf8] sm:$0xff] }
 0x452   : > { %6442 = vmatprep.subr.bf16.mxu1 %v8164_v22  ;;  %v7981_v22 = vcombine.low %v4698_v58, %v4702_v21  ;;  %v7974_v17 = vcombine.high %v4690_v29, %v4694_v62  ;;  %v4666_v23 = vld [vmem:[%s9436_s14 + $0x18] sm:$0xff] }
 0x453   : > { %6402 = vmatpush2.bf16.msra.mxu0 %v8035_v1  ;;  %v4810_v1 = vld [vmem:[%s9436_s14 + $0x498] sm:$0xff] }
 0x454   : > { %6403 = vmatprep.subr.bf16.mxu0 %v8028_v41  ;;  %v7973_v41 = vcombine.low %v4690_v29, %v4694_v62  ;;  %v4670_v56 = vld [vmem:[%s9436_s14 + $0x38] sm:$0xff] }
 0x455   : > { %6443 = vmatpush2.bf16.msra.mxu1 %v8163_v33  ;;  %v4814_v33 = vld [vmem:[%s9436_s14 + $0x4b8] sm:$0xff]  ;;  %v7950_v34 = vcombine.high %v4666_v23, %v4670_v56 }
 0x456   : > { %6444 = vmatprep.subr.bf16.mxu1 %v8156_v46  ;;  %v8094_v45 = vcombine.high %v4810_v1, %v4814_v33  ;;  %v4786_v24 = vld [vmem:[%s9436_s14 + $0x3d8] sm:$0xff] }
 0x457   : > { %6404 = vmatpush2.bf16.msra.mxu0 %v8027_v13  ;;  %v4802_v13 = vld [vmem:[%s9436_s14 + $0x458] sm:$0xff] }
 0x458   : > { %6405 = vmatprep.subr.bf16.mxu0 %v8020_v50  ;;  %v7965_v50 = vcombine.low %v4682_v8, %v4686_v16  ;;  %v4790_v53 = vld [vmem:[%s9436_s14 + $0x3f8] sm:$0xff] }
 0x459   : > { %6445 = vmatpush2.bf16.msra.mxu1 %v8155_v63  ;;  %v4806_v63 = vld [vmem:[%s9436_s14 + $0x478] sm:$0xff]  ;;  %v8070_v55 = vcombine.high %v4786_v24, %v4790_v53 }
 0x45a   : > { %6446 = vmatprep.subr.bf16.mxu1 %v8148_v11  ;;  %v8093_v11 = vcombine.low %v4810_v1, %v4814_v33  ;;  %v8086_v30 = vcombine.high %v4802_v13, %v4806_v63  ;;  %v4778_v39 = vld [vmem:[%s9436_s14 + $0x398] sm:$0xff] }
 0x45b   : > { %6406 = vmatpush2.bf16.msra.mxu0 %v8019_v59  ;;  %v4794_v59 = vld [vmem:[%s9436_s14 + $0x418] sm:$0xff] }
 0x45c   : > { %6407 = vmatprep.subr.bf16.mxu0 %v8012_v31  ;;  %v7957_v31 = vcombine.low %v4674_v9, %v4678_v51  ;;  %v4782_v6 = vld [vmem:[%s9436_s14 + $0x3b8] sm:$0xff] }
 0x45d   : > { %6447 = vmatpush2.bf16.msra.mxu1 %v8147_v37  ;;  %v4798_v37 = vld [vmem:[%s9436_s14 + $0x438] sm:$0xff]  ;;  %v8062_v40 = vcombine.high %v4778_v39, %v4782_v6 }
 0x45e   : > { %6448 = vmatprep.subr.bf16.mxu1 %v8140_v27  ;;  %v8085_v27 = vcombine.low %v4802_v13, %v4806_v63  ;;  %v8078_v43 = vcombine.high %v4794_v59, %v4798_v37  ;;  %v4770_v0 = vld [vmem:[%s9436_s14 + $0x358] sm:$0xff] }
 0x45f   : > { %6408 = vmatpush2.bf16.msra.mxu0 %v8011_v15  ;;  %v4914_v15 = vld [vmem:[%s9436_s14 + $0x7d8] sm:$0xff] }
 0x460   : > { %6459 = vmatprep.subr.bf16.mxu0 %v8006_v28  ;;  %v7949_v28 = vcombine.low %v4666_v23, %v4670_v56  ;;  %v4774_v18 = vld [vmem:[%s9436_s14 + $0x378] sm:$0xff] }
 0x461   : > { %6449 = vmatpush2.bf16.msra.mxu1 %v8139_v7  ;;  %v4918_v7 = vld [vmem:[%s9436_s14 + $0x7f8] sm:$0xff]  ;;  %v8054_v58 = vcombine.high %v4770_v0, %v4774_v18 }
 0x462   : > { %6500 = vmatprep.subr.bf16.mxu1 %v8134_v38  ;;  %6410 = vmatmul.mubr.bf16.vlgmr.msra.gmra.mxu0 %v11143_v32  ;;  %v8077_v38 = vcombine.low %v4794_v59, %v4798_v37  ;;  %v8198_v3 = vcombine.high %v4914_v15, %v4918_v7  ;;  %v4746_v1 = vld [vmem:[%s9436_s14 + $0x298] sm:$0xff] }
 0x463   : > { %6460 = vmatpush1.bf16.msra.mxu0 %v8005_v52  ;;  %6491 = vmatprep.mubr.bf16.mxu0 %v11093_v20  ;;  %v4822_v20 = vld [vmem:[%s9436_s14 + $0x4f8] sm:$0xff] }
 0x464   : > { %6451 = vmatmul.mubr.bf16.vlgmr.msra.gmra.mxu1 %v11149_v54  ;;  %6461 = vmatprep.subr.bf16.mxu0 %v7998_v49  ;;  %v8102_v10 = vcombine.high %v4818_v5, %v4822_v20  ;;  %v8101_v46 = vcombine.low %v4818_v5, %v4822_v20  ;;  %v4906_v52 = vld [vmem:[%s9436_s14 + $0x798] sm:$0xff]  ;;  %v8069_v49 = vcombine.low %v4786_v24, %v4790_v53 }
 0x465   : > { %6501 = vmatpush1.bf16.msra.mxu1 %v8133_v35  ;;  %6532 = vmatprep.mubr.bf16.mxu1 %v11097_v4  ;;  %v8109_v4 = vcombine.low %v4826_v44, %v4830_v48  ;;  %v4910_v35 = vld [vmem:[%s9436_s14 + $0x7b8] sm:$0xff] }
 0x466   : > { %6502 = vmatprep.subr.bf16.mxu1 %v8126_v2  ;;  %v8197_v2 = vcombine.low %v4914_v15, %v4918_v7  ;;  %v8190_v14 = vcombine.high %v4906_v52, %v4910_v35  ;;  %v4762_v44 = vld [vmem:[%s9436_s14 + $0x318] sm:$0xff] }
 0x467   : > { %6462 = vmatpush1.bf16.msra.mxu0 %v7997_v57  ;;  %v4898_v57 = vld [vmem:[%s9436_s14 + $0x758] sm:$0xff] }
 0x468   : > { %6463 = vmatprep.subr.bf16.mxu0 %v7990_v12  ;;  %v8061_v12 = vcombine.low %v4778_v39, %v4782_v6  ;;  %v4766_v48 = vld [vmem:[%s9436_s14 + $0x338] sm:$0xff]  ;;  %v4651_v6 = vld [vmem:[#allocation4] sm:$0xff] }
 0x469   : > { %6503 = vmatpush1.bf16.msra.mxu1 %v8125_v36  ;;  %v4902_v36 = vld [vmem:[%s9436_s14 + $0x778] sm:$0xff]  ;;  %v8046_v29 = vcombine.high %v4762_v44, %v4766_v48 }
 0x46a   : > { %6504 = vmatprep.subr.bf16.mxu1 %v8118_v25  ;;  %v8189_v25 = vcombine.low %v4906_v52, %v4910_v35  ;;  %v8182_v21 = vcombine.high %v4898_v57, %v4902_v36  ;;  %v4754_v5 = vld [vmem:[%s9436_s14 + $0x2d8] sm:$0xff] }
 0x46b   : > { %6464 = vmatpush1.bf16.msra.mxu0 %v7989_v42  ;;  %v4890_v42 = vld [vmem:[%s9436_s14 + $0x718] sm:$0xff] }
 0x46c   : > { %6465 = vmatprep.subr.bf16.mxu0 %v7982_v60  ;;  %v8053_v60 = vcombine.low %v4770_v0, %v4774_v18  ;;  %v4758_v20 = vld [vmem:[%s9436_s14 + $0x2f8] sm:$0xff] }
 0x46d   : > { %6505 = vmatpush1.bf16.msra.mxu1 %v8117_v19  ;;  %v4894_v19 = vld [vmem:[%s9436_s14 + $0x738] sm:$0xff]  ;;  %v8038_v8 = vcombine.high %v4754_v5, %v4758_v20 }
 0x46e   : > { %6506 = vmatprep.subr.bf16.mxu1 %v8110_v26  ;;  %v8181_v26 = vcombine.low %v4898_v57, %v4902_v36  ;;  %v8174_v62 = vcombine.high %v4890_v42, %v4894_v19  ;;  %v4750_v33 = vld [vmem:[%s9436_s14 + $0x2b8] sm:$0xff] }
 0x46f   : > { %6466 = vmatpush1.bf16.msra.mxu0 %v7981_v22  ;;  %v4882_v22 = vld [vmem:[%s9436_s14 + $0x6d8] sm:$0xff]  ;;  %v8030_v9 = vcombine.high %v4746_v1, %v4750_v33 }
 0x470   : > { %6467 = vmatprep.subr.bf16.mxu0 %v7974_v17  ;;  %v8045_v17 = vcombine.low %v4762_v44, %v4766_v48  ;;  %v4738_v13 = vld [vmem:[%s9436_s14 + $0x258] sm:$0xff] }
 0x471   : > { %6507 = vmatpush1.bf16.msra.mxu1 %v8109_v4  ;;  %v4886_v4 = vld [vmem:[%s9436_s14 + $0x6f8] sm:$0xff] }
 0x472   : > { %6508 = vmatprep.subr.bf16.mxu1 %v8102_v10  ;;  %v8173_v10 = vcombine.low %v4890_v42, %v4894_v19  ;;  %v8166_v16 = vcombine.high %v4882_v22, %v4886_v4  ;;  %v4742_v63 = vld [vmem:[%s9436_s14 + $0x278] sm:$0xff] }
 0x473   : > { %6468 = vmatpush1.bf16.msra.mxu0 %v7973_v41  ;;  %v4874_v41 = vld [vmem:[%s9436_s14 + $0x698] sm:$0xff]  ;;  %v8022_v23 = vcombine.high %v4738_v13, %v4742_v63 }
 0x474   : > { %6469 = vmatprep.subr.bf16.mxu0 %v7966_v47  ;;  %v8037_v47 = vcombine.low %v4754_v5, %v4758_v20  ;;  %v4730_v59 = vld [vmem:[%s9436_s14 + $0x218] sm:$0xff] }
 0x475   : > { %6509 = vmatpush1.bf16.msra.mxu1 %v8101_v46  ;;  %v4878_v46 = vld [vmem:[%s9436_s14 + $0x6b8] sm:$0xff] }
 0x476   : > { %6510 = vmatprep.subr.bf16.mxu1 %v8094_v45  ;;  %v8165_v45 = vcombine.low %v4882_v22, %v4886_v4  ;;  %v8158_v51 = vcombine.high %v4874_v41, %v4878_v46  ;;  %v4734_v37 = vld [vmem:[%s9436_s14 + $0x238] sm:$0xff]  ;;  %v4655_v4 = vld [vmem:[#allocation4 + $0x20] sm:$0xff] }
 0x477   : > { %6470 = vmatpush1.bf16.msra.mxu0 %v7965_v50  ;;  %v4866_v50 = vld [vmem:[%s9436_s14 + $0x658] sm:$0xff]  ;;  %v8014_v24 = vcombine.high %v4730_v59, %v4734_v37  ;;  %v8013_v15 = vcombine.low %v4730_v59, %v4734_v37 }
 0x478   : > { %6471 = vmatprep.subr.bf16.mxu0 %v7958_v61  ;;  %v8029_v61 = vcombine.low %v4746_v1, %v4750_v33  ;;  %v4652_v36 = vld [vmem:[#allocation4 + $0x18] sm:$0xff] }
 0x479   : > { %6511 = vmatpush1.bf16.msra.mxu1 %v8093_v11  ;;  %v4870_v11 = vld [vmem:[%s9436_s14 + $0x678] sm:$0xff] }
 0x47a   : > { %6512 = vmatprep.subr.bf16.mxu1 %v8086_v30  ;;  %v8157_v30 = vcombine.low %v4874_v41, %v4878_v46  ;;  %v8150_v56 = vcombine.high %v4866_v50, %v4870_v11 }
 0x47b   : > { %6472 = vmatpush1.bf16.msra.mxu0 %v7957_v31  ;;  %v4858_v31 = vld [vmem:[%s9436_s14 + $0x618] sm:$0xff] }
 0x47c   : > { %6473 = vmatprep.subr.bf16.mxu0 %v7950_v34  ;;  %v8021_v34 = vcombine.low %v4738_v13, %v4742_v63  ;;  %v4657_v63 = vld [vmem:[#allocation4 + $0x38] sm:$0xff] }
 0x47d   : > { %6513 = vmatpush1.bf16.msra.mxu1 %v8085_v27  ;;  %v4862_v27 = vld [vmem:[%s9436_s14 + $0x638] sm:$0xff] }
 0x47e   : > { %6514 = vmatprep.subr.bf16.mxu1 %v8078_v43  ;;  %v8149_v43 = vcombine.low %v4866_v50, %v4870_v11  ;;  %v8142_v53 = vcombine.high %v4858_v31, %v4862_v27  ;;  %v8141_v7 = vcombine.low %v4858_v31, %v4862_v27 }
 0x47f   : > { %6474 = vmatpush1.bf16.msra.mxu0 %v7949_v28 }
 0x480   : > { %6475 = vmatprep.subr.bf16.mxu0 %v8070_v55 }
 0x481   : > { %6515 = vmatpush1.bf16.msra.mxu1 %v8077_v38  ;;  %v4650_v38 = vld [vmem:[#allocation4 + $0x30] sm:$0xff] }
 0x482   : > { %6516 = vmatprep.subr.bf16.mxu1 %v8198_v3 }
 0x483   : > { %6476 = vmatpush2.bf16.msra.mxu0 %v8069_v49 }
 0x484   : > { %6477 = vmatprep.subr.bf16.mxu0 %v8062_v40 }
 0x485   : > { %6517 = vmatpush2.bf16.msra.mxu1 %v8197_v2 }
 0x486   : > { %6518 = vmatprep.subr.bf16.mxu1 %v8190_v14 }
 0x487   : > { %6478 = vmatpush2.bf16.msra.mxu0 %v8061_v12 }
 0x488   : > { %6479 = vmatprep.subr.bf16.mxu0 %v8054_v58  ;;  %v4653_v58 = vld [vmem:[#allocation4 + $0x10] sm:$0xff] }
 0x489   : > { %6519 = vmatpush2.bf16.msra.mxu1 %v8189_v25 }
 0x48a   : > { %6520 = vmatprep.subr.bf16.mxu1 %v8182_v21 }
 0x48b   : > { %6480 = vmatpush2.bf16.msra.mxu0 %v8053_v60 }
 0x48c   : > { %6481 = vmatprep.subr.bf16.mxu0 %v8046_v29 }
 0x48d   : > { %6521 = vmatpush2.bf16.msra.mxu1 %v8181_v26 }
 0x48e   : > { %6522 = vmatprep.subr.bf16.mxu1 %v8174_v62  ;;  %v4654_v62 = vld [vmem:[#allocation4 + $0x8] sm:$0xff] }
 0x48f   : > { %6482 = vmatpush2.bf16.msra.mxu0 %v8045_v17 }
 0x490   : > { %6483 = vmatprep.subr.bf16.mxu0 %v8038_v8 }
 0x491   : > { %6523 = vmatpush2.bf16.msra.mxu1 %v8173_v10 }
 0x492   : > { %6524 = vmatprep.subr.bf16.mxu1 %v8166_v16 }
 0x493   : > { %6484 = vmatpush2.bf16.msra.mxu0 %v8037_v47 }
 0x494   : > { %6485 = vmatprep.subr.bf16.mxu0 %v8030_v9 }
 0x495   : > { %6525 = vmatpush2.bf16.msra.mxu1 %v8165_v45  ;;  %v4656_v45 = vld [vmem:[#allocation4 + $0x28] sm:$0xff] }
 0x496   : > { %6526 = vmatprep.subr.bf16.mxu1 %v8158_v51 }
 0x497   : > { %6486 = vmatpush2.bf16.msra.mxu0 %v8029_v61 }
 0x498   : > { %6487 = vmatprep.subr.bf16.mxu0 %v8022_v23 }
 0x499   : > { %6527 = vmatpush2.bf16.msra.mxu1 %v8157_v30 }
 0x49a   : > { %6528 = vmatprep.subr.bf16.mxu1 %v8150_v56 }
 0x49b   : > { %6488 = vmatpush2.bf16.msra.mxu0 %v8021_v34 }
 0x49c   : > { %6489 = vmatprep.subr.bf16.mxu0 %v8014_v24 }
 0x49d   : > { %6529 = vmatpush2.bf16.msra.mxu1 %v8149_v43 }
 0x49e   : > { %6530 = vmatprep.subr.bf16.mxu1 %v8142_v53 }
 0x49f   : > { %6490 = vmatpush2.bf16.msra.mxu0 %v8013_v15 }
 0x4a1   : > { %6531 = vmatpush2.bf16.msra.mxu1 %v8141_v7 }
 0x4a2   : > { %v6247_v28 = vpop.f32.mrf.mxu0  ;;  %6492 = vmatmul.mubr.bf16.vlgmr.msra.gmra.mxu0 %v11143_v32 }
 0x4a4   : > { %v6288_v55 = vpop.f32.mrf.mxu1  ;;  %6533 = vmatmul.mubr.bf16.vlgmr.msra.gmra.mxu1 %v11149_v54  ;;  %v6249_v39 = vpop.f32.mrf.mxu0 }
 0x4a5   : > { %v6289_v3 = vadd.f32 %v6288_v55, %v6247_v28 }
 0x4a6   : > { %v6290_v52 = vpop.f32.mrf.mxu1  ;;  %v6251_v2 = vpop.f32.mrf.mxu0 }
 0x4a7   : > { %v6541_v35 = vadd.f32 %v6289_v3, %v4650_v38  ;;  %v6291_v49 = vadd.f32 %v6290_v52, %v6249_v39 }
 0x4a8   : > { %v6292_v40 = vpop.f32.mrf.mxu1  ;;  %v6252_v0 = vpop.f32.mrf.mxu0 }
 0x4a9   : > { %6549 = vst [vmem:[#allocation4 + $0x30] sm:$0xff] %v6541_v35  ;;  %v6542_v14 = vadd.f32 %v6291_v49, %v4651_v6 }
 0x4aa   : > { %v6293_v18 = vpop.f32.mrf.mxu1 }
 0x4ab   : > { %6550 = vst [vmem:[#allocation4] sm:$0xff] %v6542_v14 }
 0x4e2   : > { %v6329_v57 = vpop.f32.mrf.mxu0 }
 0x4e4   : > { %v6370_v32 = vpop.f32.mrf.mxu1  ;;  %v6331_v25 = vpop.f32.mrf.mxu0 }
 0x4e5   : > { %v6371_v12 = vadd.f32 %v6370_v32, %v6329_v57 }
 0x4e6   : > { %v6372_v54 = vpop.f32.mrf.mxu1  ;;  %v6333_v48 = vpop.f32.mrf.mxu0 }
 0x4e7   : > { %v6543_v21 = vadd.f32 %v6371_v12, %v4652_v36  ;;  %v6373_v44 = vadd.f32 %v6372_v54, %v6331_v25 }
 0x4e8   : > { %v6374_v42 = vpop.f32.mrf.mxu1  ;;  %v6334_v60 = vpop.f32.mrf.mxu0 }
 0x4e9   : > { %6551 = vst [vmem:[#allocation4 + $0x18] sm:$0xff] %v6543_v21  ;;  %v6544_v19 = vadd.f32 %v6373_v44, %v4653_v58 }
 0x4ea   : > { %v6375_v26 = vpop.f32.mrf.mxu1 }
 0x4eb   : > { %6552 = vst [vmem:[#allocation4 + $0x10] sm:$0xff] %v6544_v19 }
 0x522   : > { %v6411_v29 = vpop.f32.mrf.mxu0 }
 0x524   : > { %v6452_v5 = vpop.f32.mrf.mxu1  ;;  %v6413_v22 = vpop.f32.mrf.mxu0 }
 0x525   : > { %v6453_v20 = vadd.f32 %v6452_v5, %v6411_v29 }
 0x526   : > { %v6454_v17 = vpop.f32.mrf.mxu1  ;;  %v6415_v16 = vpop.f32.mrf.mxu0 }
 0x527   : > { %v6545_v10 = vadd.f32 %v6453_v20, %v4654_v62  ;;  %v6455_v8 = vadd.f32 %v6454_v17, %v6413_v22 }
 0x528   : > { %v6456_v1 = vpop.f32.mrf.mxu1  ;;  %v6416_v41 = vpop.f32.mrf.mxu0 }
 0x529   : > { %6553 = vst [vmem:[#allocation4 + $0x8] sm:$0xff] %v6545_v10  ;;  %v6546_v33 = vadd.f32 %v6455_v8, %v4655_v4 }
 0x52a   : > { %v6457_v46 = vpop.f32.mrf.mxu1 }
 0x52b   : > { %6554 = vst [vmem:[#allocation4 + $0x20] sm:$0xff] %v6546_v33 }
 0x562   : > { %v6493_v47 = vpop.f32.mrf.mxu0 }
 0x564   : > { %v6534_v9 = vpop.f32.mrf.mxu1  ;;  %v6495_v13 = vpop.f32.mrf.mxu0 }
 0x565   : > { %v6535_v51 = vadd.f32 %v6534_v9, %v6493_v47 }
 0x566   : > { %v6536_v50 = vpop.f32.mrf.mxu1  ;;  %v6497_v30 = vpop.f32.mrf.mxu0 }
 0x567   : > { %v6547_v11 = vadd.f32 %v6535_v51, %v4656_v45  ;;  %v6537_v61 = vadd.f32 %v6536_v50, %v6495_v13  ;;  %6560 = sbr.rel (%p8199_p5) target bundleno = 1698 (0x6a2), region = 80 }
 0x568   : > { %v6538_v23 = vpop.f32.mrf.mxu1  ;;  %v6498_v59 = vpop.f32.mrf.mxu0 }
 0x569   : > { %6555 = vst [vmem:[#allocation4 + $0x28] sm:$0xff] %v6547_v11  ;;  %v6548_v56 = vadd.f32 %v6537_v61, %v4657_v63 }
 0x56a   : > { %v6539_v37 = vpop.f32.mrf.mxu1 }
 0x56b   : > { %6556 = vst [vmem:[#allocation4 + $0x38] sm:$0xff] %v6548_v56 }
 0x56c   : > { %v9233_v31 = vld [vmem:[%s11647_s11 + $0x78] sm:$0xff]   ;;  %v9237_v24 = vld [vmem:[%s11647_s11 + $0x70] sm:$0xff]   ;;  %v9241_v28 = vld [vmem:[%s11647_s11 + $0x68] sm:$0xff]  }
 0x56d   : > { %v9234_v27 = vld [vmem:[%s11647_s11 + $0xf8] sm:$0xff]   ;;  %8547 = vmatprep.subr.bf16.mxu0 %v9233_v31  ;;  %v9238_v53 = vld [vmem:[%s11647_s11 + $0xf0] sm:$0xff]   ;;  %v9242_v38 = vld [vmem:[%s11647_s11 + $0xe8] sm:$0xff]  }
 0x56e   : > { %v9235_v34 = vld [vmem:[%s11647_s11 + $0x38] sm:$0xff]   ;;  %8569 = vmatprep.subr.bf16.mxu1 %v9234_v27  ;;  %v9239_v15 = vld [vmem:[%s11647_s11 + $0x30] sm:$0xff]   ;;  %v9243_v55 = vld [vmem:[%s11647_s11 + $0x28] sm:$0xff]  }
 0x56f   : > { %v9236_v43 = vld [vmem:[%s11647_s11 + $0xb8] sm:$0xff]   ;;  %8548 = vmatpush3.bf16.msra.mxu0 %v9235_v34  ;;  %v9240_v7 = vld [vmem:[%s11647_s11 + $0xb0] sm:$0xff]   ;;  %v9244_v3 = vld [vmem:[%s11647_s11 + $0xa8] sm:$0xff]  }
 0x570   : > { %8570 = vmatpush3.bf16.msra.mxu1 %v9236_v43  ;;  %8549 = vmatprep.subr.bf16.mxu0 %v9237_v24  ;;  %v9245_v39 = vld [vmem:[%s11647_s11 + $0x60] sm:$0xff]   ;;  %v9249_v49 = vld [vmem:[%s11647_s11 + $0x58] sm:$0xff]   ;;  %v9253_v0 = vld [vmem:[%s11647_s11 + $0x50] sm:$0xff]  }
 0x571   : > { %8571 = vmatprep.subr.bf16.mxu1 %v9238_v53  ;;  %v9246_v6 = vld [vmem:[%s11647_s11 + $0xe0] sm:$0xff]   ;;  %v9250_v2 = vld [vmem:[%s11647_s11 + $0xd8] sm:$0xff]   ;;  %v9254_v18 = vld [vmem:[%s11647_s11 + $0xd0] sm:$0xff]  }
 0x572   : > { %v9247_v52 = vld [vmem:[%s11647_s11 + $0x20] sm:$0xff]   ;;  %v9251_v40 = vld [vmem:[%s11647_s11 + $0x18] sm:$0xff]   ;;  %v9255_v57 = vld [vmem:[%s11647_s11 + $0x10] sm:$0xff]  }
 0x573   : > { %8550 = vmatpush3.bf16.msra.mxu0 %v9239_v15  ;;  %v9248_v35 = vld [vmem:[%s11647_s11 + $0xa0] sm:$0xff]   ;;  %v9252_v14 = vld [vmem:[%s11647_s11 + $0x98] sm:$0xff]   ;;  %v9256_v36 = vld [vmem:[%s11647_s11 + $0x90] sm:$0xff]  }
 0x574   : > { %8572 = vmatpush3.bf16.msra.mxu1 %v9240_v7  ;;  %8551 = vmatprep.subr.bf16.mxu0 %v9241_v28  ;;  %v9257_v32 = vld [vmem:[%s11647_s11 + $0x48] sm:$0xff]   ;;  %v9261_v54 = vld [vmem:[%s11647_s11 + $0x40] sm:$0xff]   ;;  %v6564_v60 = vld [vmem:[#allocation4 + $0x10] sm:$0xff] }
 0x575   : > { %8573 = vmatprep.subr.bf16.mxu1 %v9242_v38  ;;  %v9258_v12 = vld [vmem:[%s11647_s11 + $0xc8] sm:$0xff]   ;;  %v9262_v21 = vld [vmem:[%s11647_s11 + $0xc0] sm:$0xff]   ;;  %v6587_v26 = vrot.slane %v6564_v60, 4  ;;  %v9265_v29 = vld [vmem:[%s11647_s11 + $0x178] sm:$0xff]  }
 0x576   : > { %v9259_v25 = vld [vmem:[%s11647_s11 + $0x8] sm:$0xff]   ;;  %v9263_v44 = vld [vmem:[%s11647_s11] sm:$0xff]   ;;  %v9266_v5 = vld [vmem:[%s11647_s11 + $0x1f8] sm:$0xff]  }
 0x577   : > { %8552 = vmatpush3.bf16.msra.mxu0 %v9243_v55  ;;  %v9260_v58 = vld [vmem:[%s11647_s11 + $0x88] sm:$0xff]   ;;  %v9264_v48 = vld [vmem:[%s11647_s11 + $0x80] sm:$0xff]   ;;  %v6561_v20 = vld [vmem:[#allocation4 + $0x30] sm:$0xff]  ;;  %v6588_v4 = vadd.f32 %v6587_v26, %v6564_v60 }
 0x578   : > { %8574 = vmatpush3.bf16.msra.mxu1 %v9244_v3  ;;  %8553 = vmatprep.subr.bf16.mxu0 %v9245_v39  ;;  %v6562_v42 = vld [vmem:[#allocation4] sm:$0xff]  ;;  %v6563_v22 = vld [vmem:[#allocation4 + $0x18] sm:$0xff]  ;;  %v6569_v17 = vrot.slane %v6561_v20, 4 }
 0x579   : > { %8575 = vmatprep.subr.bf16.mxu1 %v9246_v6  ;;  %v6575_v19 = vrot.slane %v6562_v42, 4  ;;  %v6581_v10 = vrot.slane %v6563_v22, 4  ;;  %v6589_v16 = vrot.slane %v6588_v4, 2 }
 0x57a   : > { %v6570_v1 = vadd.f32 %v6569_v17, %v6561_v20  ;;  %v6568_v17 = vld [vmem:[#allocation4 + $0x38] sm:$0xff] }
 0x57b   : > { %8554 = vmatpush3.bf16.msra.mxu0 %v9247_v52  ;;  %v6576_v62 = vadd.f32 %v6575_v19, %v6562_v42  ;;  %v6582_v33 = vadd.f32 %v6581_v10, %v6563_v22  ;;  %v6590_v46 = vadd.f32 %v6589_v16, %v6588_v4  ;;  %v6566_v4 = vld [vmem:[#allocation4 + $0x20] sm:$0xff] }
 0x57c   : > { %8576 = vmatpush3.bf16.msra.mxu1 %v9248_v35  ;;  %8555 = vmatprep.subr.bf16.mxu0 %v9249_v49  ;;  %v6571_v47 = vrot.slane %v6570_v1, 2  ;;  %v6599_v16 = vrot.slane %v6566_v4, 4 }
 0x57d   : > { %8577 = vmatprep.subr.bf16.mxu1 %v9250_v2  ;;  %v6577_v8 = vrot.slane %v6576_v62, 2  ;;  %v6583_v45 = vrot.slane %v6582_v33, 2  ;;  %v6591_v51 = vrot.slane %v6590_v46, 1 }
 0x57e   : > { %v6572_v13 = vadd.f32 %v6571_v47, %v6570_v1  ;;  %v6565_v1 = vld [vmem:[#allocation4 + $0x8] sm:$0xff] }
 0x57f   : > { %8556 = vmatpush3.bf16.msra.mxu0 %v9251_v40  ;;  %v6578_v41 = vadd.f32 %v6577_v8, %v6576_v62  ;;  %v6584_v63 = vadd.f32 %v6583_v45, %v6582_v33  ;;  %v6592_v11 = vadd.f32 %v6591_v51, %v6590_v46  ;;  %v6724_v62 = vlaneseq  ;;  %v6567_v46 = vld [vmem:[#allocation4 + $0x28] sm:$0xff] }
 0x580   : > { %8578 = vmatpush3.bf16.msra.mxu1 %v9252_v14  ;;  %8557 = vmatprep.subr.bf16.mxu0 %v9253_v0  ;;  %v6573_v61 = vrot.slane %v6572_v13, 1  ;;  %v6611_v33 = vrot.slane %v6568_v17, 4  ;;  %v6600_v45 = vadd.f32 %v6599_v16, %v6566_v4 }
 0x581   : > { %8579 = vmatprep.subr.bf16.mxu1 %v9254_v18  ;;  %v6579_v9 = vrot.slane %v6578_v41, 1  ;;  %v6585_v30 = vrot.slane %v6584_v63, 1  ;;  %v6621_v56 = vmul.f32 0.125, %v6592_v11  ;;  %v11468_v47 = vshrl.u32 %v6724_v62, 7 }
 0x582   : > { %v6574_v59 = vadd.f32 %v6573_v61, %v6572_v13  ;;  %v6612_v51 = vadd.f32 %v6611_v33, %v6568_v17 }
 0x583   : > { %8558 = vmatpush3.bf16.msra.mxu0 %v9255_v57  ;;  %v6580_v50 = vadd.f32 %v6579_v9, %v6578_v41  ;;  %v6586_v37 = vadd.f32 %v6585_v30, %v6584_v63  ;;  %v11454_v27 = vsub.f32 %v6564_v60, %v6621_v56  ;;  %v6593_v41 = vrot.slane %v6565_v1, 4 }
 0x584   : > { %8580 = vmatpush3.bf16.msra.mxu1 %v9256_v36  ;;  %8559 = vmatprep.subr.bf16.mxu0 %v9257_v32  ;;  %v6618_v34 = vmul.f32 0.125, %v6574_v59  ;;  %v6605_v9 = vrot.slane %v6567_v46, 4  ;;  %v6601_v63 = vrot.slane %v6600_v45, 2  ;;  %v6613_v11 = vrot.slane %v6612_v51, 2  ;;  %v11474_v59 = vld [vmem:[%s11645_s9] sm:$0xff] }
 0x585   : > { %8581 = vmatprep.subr.bf16.mxu1 %v9258_v12  ;;  %v6619_v23 = vmul.f32 0.125, %v6580_v50  ;;  %v6620_v43 = vmul.f32 0.125, %v6586_v37  ;;  %v6637_v53 = vmul.f32 %v11454_v27, %v11454_v27  ;;  %v6594_v13 = vadd.f32 %v6593_v41, %v6565_v1 }
 0x586   : > { %v11460_v15 = vsub.f32 %v6561_v20, %v6618_v34  ;;  %v6606_v50 = vadd.f32 %v6605_v9, %v6567_v46  ;;  %v6730_v30 = vsub.s32 1, %v11468_v47  ;;  %v6738_v37 = vsub.s32 3, %v11468_v47 }
 0x587   : > { %8560 = vmatpush3.bf16.msra.mxu0 %v9259_v25  ;;  %v11452_v31 = vsub.f32 %v6562_v42, %v6619_v23  ;;  %v11462_v7 = vsub.f32 %v6563_v22, %v6620_v43  ;;  %v6660_v38 = vrot.slane %v6637_v53, 4  ;;  %v6595_v61 = vrot.slane %v6594_v13, 2 }
 0x588   : > { %8582 = vmatpush3.bf16.msra.mxu1 %v9260_v58  ;;  %8561 = vmatprep.subr.bf16.mxu0 %v9261_v54  ;;  %v6634_v55 = vmul.f32 %v11460_v15, %v11460_v15  ;;  %v6602_v23 = vadd.f32 %v6601_v63, %v6600_v45  ;;  %v6607_v56 = vrot.slane %v6606_v50, 2  ;;  %v6614_v34 = vadd.f32 %v6613_v11, %v6612_v51 }
 0x589   : > { %8583 = vmatprep.subr.bf16.mxu1 %v9262_v21  ;;  %v6635_v24 = vmul.f32 %v11452_v31, %v11452_v31  ;;  %v6636_v3 = vmul.f32 %v11462_v7, %v11462_v7  ;;  %v6661_v6 = vadd.f32 %v6660_v38, %v6637_v53  ;;  %v6596_v43 = vadd.f32 %v6595_v61, %v6594_v13 }
 0x58a   : > { %v6642_v52 = vrot.slane %v6634_v55, 4  ;;  %v6726_v53 = vsub.s32 0, %v11468_v47  ;;  %v6608_v38 = vadd.f32 %v6607_v56, %v6606_v50 }
 0x58b   : > { %8562 = vmatpush3.bf16.msra.mxu0 %v9263_v44  ;;  %v6648_v28 = vrot.slane %v6635_v24, 4  ;;  %v6654_v35 = vrot.slane %v6636_v3, 4  ;;  %v6662_v2 = vrot.slane %v6661_v6, 2 }
 0x58c   : > { %8584 = vmatpush3.bf16.msra.mxu1 %v9264_v48  ;;  %8591 = vmatprep.subr.bf16.mxu0 %v9265_v29  ;;  %v6643_v40 = vadd.f32 %v6642_v52, %v6634_v55  ;;  %v6615_v55 = vrot.slane %v6614_v34, 1 }
 0x58d   : > { %8613 = vmatprep.subr.bf16.mxu1 %v9266_v5  ;;  %v6649_v39 = vadd.f32 %v6648_v28, %v6635_v24  ;;  %v6655_v14 = vadd.f32 %v6654_v35, %v6636_v3  ;;  %v6663_v18 = vadd.f32 %v6662_v2, %v6661_v6  ;;  %v11480_v24 = vld [vmem:[%s11646_s10] sm:$0xff]  ;;  %v6603_v28 = vrot.slane %v6602_v23, 1 }
 0x58e   : > { %v6644_v57 = vrot.slane %v6643_v40, 2  ;;  %v6597_v3 = vrot.slane %v6596_v43, 1  ;;  %v6734_v6 = vsub.s32 2, %v11468_v47  ;;  %v6609_v35 = vrot.slane %v6608_v38, 1 }
 0x58f   : > { %v6650_v49 = vrot.slane %v6649_v39, 2  ;;  %v6656_v36 = vrot.slane %v6655_v14, 2  ;;  %v6664_v12 = vrot.slane %v6663_v18, 1  ;;  %v6604_v52 = vadd.f32 %v6603_v28, %v6602_v23 }
 0x590   : > { %v6645_v25 = vadd.f32 %v6644_v57, %v6643_v40  ;;  %v6739_v2 = vrot.slane %v11474_v59, %v6738_v37  ;;  %v6616_v40 = vadd.f32 %v6615_v55, %v6614_v34  ;;  %v6727_v57 = vrot.slane %v11474_v59, %v6726_v53 }
 0x591   : > { %v6651_v0 = vadd.f32 %v6650_v49, %v6649_v39  ;;  %v6657_v58 = vadd.f32 %v6656_v36, %v6655_v14  ;;  %v6665_v21 = vadd.f32 %v6664_v12, %v6663_v18  ;;  %v6731_v39 = vrot.slane %v11474_v59, %v6730_v30 }
 0x592   : > { %v6646_v44 = vrot.slane %v6645_v25, 1  ;;  %v6781_v49 = vrot.slane %v11480_v24, %v6730_v30  ;;  %v6598_v14 = vadd.f32 %v6597_v3, %v6596_v43  ;;  %v6789_v18 = vrot.slane %v11480_v24, %v6738_v37 }
 0x593   : > { %v6652_v32 = vrot.slane %v6651_v0, 1  ;;  %v6658_v48 = vrot.slane %v6657_v58, 1  ;;  %v6693_v19 = vmul.f32 0.125, %v6665_v21  ;;  %v6623_v36 = vmul.f32 0.125, %v6604_v52 }
 0x594   : > { %v6647_v60 = vadd.f32 %v6646_v44, %v6645_v25  ;;  %v6622_v21 = vmul.f32 0.125, %v6598_v14 }
 0x595   : > { %v6653_v54 = vadd.f32 %v6652_v32, %v6651_v0  ;;  %v6659_v26 = vadd.f32 %v6658_v48, %v6657_v58  ;;  %v6701_v5 = vadd.f32 1e-05, %v6693_v19  ;;  %v6610_v32 = vadd.f32 %v6609_v35, %v6608_v38 }
 0x596   : > { %v6690_v20 = vmul.f32 0.125, %v6647_v60  ;;  %v6777_v58 = vrot.slane %v11480_v24, %v6726_v53  ;;  %v6735_v48 = vrot.slane %v11474_v59, %v6734_v6 }
 0x597   : > { %v6691_v42 = vmul.f32 0.125, %v6653_v54  ;;  %v6692_v22 = vmul.f32 0.125, %v6659_v26  ;;  %v6625_v54 = vmul.f32 0.125, %v6616_v40  ;;  %v6624_v19 = vmul.f32 0.125, %v6610_v32 }
 0x598   : > { %v6698_v10 = vadd.f32 1e-05, %v6690_v20 }
 0x599   : > { %v6699_v29 = vadd.f32 1e-05, %v6691_v42  ;;  %v6700_v8 = vadd.f32 1e-05, %v6692_v22  ;;  %v11493_v42 = vsub.f32 %v6566_v4, %v6623_v36  ;;  %v11496_v62 = vsub.f32 %v6568_v17, %v6625_v54 }
 0x59b   : > { %9297 = vrsqrt.f32 %v6699_v29  ;;  %v6785_v29 = vrot.slane %v11480_v24, %v6734_v6  ;;  %v6641_v16 = vmul.f32 %v11496_v62, %v11496_v62 }
 0x59c   : > { %9299 = vrsqrt.f32 %v6701_v5  ;;  %v11498_v5 = vsub.f32 %v6565_v1, %v6622_v21 }
 0x59d   : > { %9301 = vrsqrt.f32 %v6698_v10  ;;  %v11503_v10 = vsub.f32 %v6567_v46, %v6624_v19  ;;  %v6684_v51 = vrot.slane %v6641_v16, 4 }
 0x59e   : > { %9303 = vrsqrt.f32 %v6700_v8  ;;  %v6638_v17 = vmul.f32 %v11498_v5, %v11498_v5 }
 0x59f   : > { %v6685_v30 = vadd.f32 %v6684_v51, %v6641_v16  ;;  %v9275_v16 = vld [vmem:[%s11647_s11 + $0x128] sm:$0xff]   ;;  %v9280_v51 = vld [vmem:[%s11647_s11 + $0x1a0] sm:$0xff]  }
 0x5a0   : > { %v6666_v46 = vrot.slane %v6638_v17, 4 }
 0x5a1   : > { %v6686_v38 = vrot.slane %v6685_v30, 2 }
 0x5a2   : > { %v6667_v23 = vadd.f32 %v6666_v46, %v6638_v17  ;;  %v9281_v46 = vld [vmem:[%s11647_s11 + $0x158] sm:$0xff]  }
 0x5a4   : > { %v6668_v55 = vrot.slane %v6667_v23, 2 }
 0x5a6   : > { %v6669_v40 = vadd.f32 %v6668_v55, %v6667_v23  ;;  %v6742_v23 = vsub.s32 4, %v11468_v47 }
 0x5a8   : > { %v9298_v0 = vpop.eup %9297 }
 0x5a9   : > { %v9300_v12 = vpop.eup %9299  ;;  %v6715_v25 = vmul.f32 %v9298_v0, %v11452_v31  ;;  %v9268_v0 = vld [vmem:[%s11647_s11 + $0x1b8] sm:$0xff]  }
 0x5aa   : > { %v6717_v44 = vmul.f32 %v9300_v12, %v11454_v27  ;;  %v9302_v60 = vpop.eup %9301  ;;  %v6639_v27 = vmul.f32 %v11493_v42, %v11493_v42  ;;  %v9270_v12 = vld [vmem:[%s11647_s11 + $0x1f0] sm:$0xff]  }
 0x5ab   : > { %v6765_v26 = vmul.f32 %v6731_v39, %v6715_v25  ;;  %v9304_v31 = vpop.eup %9303  ;;  %v6714_v22 = vmul.f32 %v9302_v60, %v11460_v15  ;;  %v6640_v15 = vmul.f32 %v11503_v10, %v11503_v10  ;;  %v9272_v60 = vld [vmem:[%s11647_s11 + $0x1b0] sm:$0xff]  }
 0x5ac   : > { %v6767_v20 = vmul.f32 %v6739_v2, %v6717_v44  ;;  %v6716_v8 = vmul.f32 %v9304_v31, %v11462_v7  ;;  %v6672_v41 = vrot.slane %v6639_v27, 4  ;;  %v6687_v2 = vadd.f32 %v6686_v38, %v6685_v30  ;;  %v9271_v44 = vld [vmem:[%s11647_s11 + $0x130] sm:$0xff]   ;;  %v9290_v38 = vld [vmem:[%s11647_s11 + $0x1c8] sm:$0xff]  }
 0x5ad   : > { %v6815_v4 = vadd.f32 %v6781_v49, %v6765_v26  ;;  %v6764_v33 = vmul.f32 %v6727_v57, %v6714_v22  ;;  %v6678_v7 = vrot.slane %v6640_v15, 4  ;;  %v9267_v49 = vld [vmem:[%s11647_s11 + $0x138] sm:$0xff]   ;;  %v9273_v26 = vld [vmem:[%s11647_s11 + $0x168] sm:$0xff]   ;;  %v6754_v30 = vsub.s32 7, %v11468_v47 }
 0x5ae   : > { %v6817_v1 = vadd.f32 %v6789_v18, %v6767_v20  ;;  %v6766_v9 = vmul.f32 %v6735_v48, %v6716_v8  ;;  %v6673_v50 = vadd.f32 %v6672_v41, %v6639_v27  ;;  %v9269_v18 = vld [vmem:[%s11647_s11 + $0x170] sm:$0xff]   ;;  %v6688_v25 = vrot.slane %v6687_v2, 1  ;;  %v9274_v20 = vld [vmem:[%s11647_s11 + $0x1e8] sm:$0xff]   ;;  %v9277_v41 = vld [vmem:[%s11647_s11 + $0x160] sm:$0xff]  }
 0x5af   : > { %v6823_v45 = vmul.f32 0.2, %v6815_v4  ;;  %v6814_v63 = vadd.f32 %v6777_v58, %v6764_v33  ;;  %v6679_v43 = vadd.f32 %v6678_v7, %v6640_v15  ;;  %v6670_v58 = vrot.slane %v6669_v40, 1  ;;  %v9276_v33 = vld [vmem:[%s11647_s11 + $0x1a8] sm:$0xff]   ;;  %v9285_v7 = vld [vmem:[%s11647_s11 + $0x150] sm:$0xff]  }
 0x5b0   : > { %v6825_v13 = vmul.f32 0.2, %v6817_v1  ;;  %v6816_v61 = vadd.f32 %v6785_v29, %v6766_v9  ;;  %v6674_v34 = vrot.slane %v6673_v50, 2  ;;  %v6689_v48 = vadd.f32 %v6688_v25, %v6687_v2  ;;  %v9279_v9 = vld [vmem:[%s11647_s11 + $0x120] sm:$0xff]  }
 0x5b1   : > { %v6831_v11 = vmax.f32 %v6815_v4, %v6823_v45  ;;  %v6822_v37 = vmul.f32 0.2, %v6814_v63  ;;  %v6680_v52 = vrot.slane %v6679_v43, 2  ;;  %v6671_v19 = vadd.f32 %v6670_v58, %v6669_v40  ;;  %v9278_v45 = vld [vmem:[%s11647_s11 + $0x1e0] sm:$0xff]  }
 0x5b2   : > { %v6833_v56 = vmax.f32 %v6817_v1, %v6825_v13  ;;  %v6824_v28 = vmul.f32 0.2, %v6816_v61  ;;  %v6675_v6 = vadd.f32 %v6674_v34, %v6673_v50  ;;  %v6697_v22 = vmul.f32 0.125, %v6689_v48  ;;  %v9282_v13 = vld [vmem:[%s11647_s11 + $0x1d8] sm:$0xff]   ;;  %v9288_v34 = vld [vmem:[%s11647_s11 + $0x190] sm:$0xff]  }
 0x5b3   : > { %v6839_v53 = vpack.c.bf16 %v6831_v11, %v6831_v11  ;;  %v6830_v39 = vmax.f32 %v6814_v63, %v6822_v37  ;;  %v6681_v36 = vadd.f32 %v6680_v52, %v6679_v43  ;;  %v6694_v27 = vmul.f32 0.125, %v6671_v19  ;;  %v9283_v63 = vld [vmem:[%s11647_s11 + $0x118] sm:$0xff]   ;;  %v9289_v43 = vld [vmem:[%s11647_s11 + $0x148] sm:$0xff]  }
 0x5b4   : > { %v6841_v3 = vpack.c.bf16 %v6833_v56, %v6833_v56  ;;  %v6832_v35 = vmax.f32 %v6816_v61, %v6824_v28  ;;  %v6676_v57 = vrot.slane %v6675_v6, 1  ;;  %v6705_v17 = vadd.f32 1e-05, %v6697_v22  ;;  %v9284_v50 = vld [vmem:[%s11647_s11 + $0x198] sm:$0xff]   ;;  %v9286_v61 = vld [vmem:[%s11647_s11 + $0x1d0] sm:$0xff]  }
 0x5b5   : > { %7397 = vmatprep.mubr.bf16.mxu0 %v6839_v53  ;;  %v6838_v14 = vpack.c.bf16 %v6830_v39, %v6830_v39  ;;  %v6682_v21 = vrot.slane %v6681_v36, 1  ;;  %v6702_v1 = vadd.f32 1e-05, %v6694_v27  ;;  %v6746_v11 = vsub.s32 5, %v11468_v47  ;;  %v9287_v56 = vld [vmem:[%s11647_s11 + $0x110] sm:$0xff]  }
 0x5b6   : > { %7437 = vmatprep.mubr.bf16.mxu1 %v6841_v3  ;;  %v6840_v32 = vpack.c.bf16 %v6832_v35, %v6832_v35  ;;  %v6677_v54 = vadd.f32 %v6676_v57, %v6675_v6  ;;  %v6750_v37 = vsub.s32 6, %v11468_v47  ;;  %v6755_v47 = vrot.slane %v11474_v59, %v6754_v30  ;;  %v9291_v35 = vld [vmem:[%s11647_s11 + $0x108] sm:$0xff]  }
 0x5b7   : > { %7398 = vmatmul.mubr.bf16.vlgmr.msra.gmra.mxu0 %v6838_v14  ;;  %v6683_v31 = vadd.f32 %v6682_v21, %v6681_v36  ;;  %v6747_v53 = vrot.slane %v11474_v59, %v6746_v11  ;;  %v6797_v39 = vrot.slane %v11480_v24, %v6746_v11  ;;  %v6743_v6 = vrot.slane %v11474_v59, %v6742_v23 }
 0x5b8   : > { %7438 = vmatmul.mubr.bf16.vlgmr.msra.gmra.mxu1 %v6840_v32  ;;  %8592 = vmatpush3.bf16.msra.mxu0 %v9267_v49  ;;  %v6695_v29 = vmul.f32 0.125, %v6677_v54  ;;  %v6805_v2 = vrot.slane %v11480_v24, %v6754_v30  ;;  %v6751_v40 = vrot.slane %v11474_v59, %v6750_v37  ;;  %v9294_v59 = vld [vmem:[%s11647_s11 + $0x1c0] sm:$0xff]  }
 0x5b9   : > { %8614 = vmatpush3.bf16.msra.mxu1 %v9268_v0  ;;  %8593 = vmatprep.subr.bf16.mxu0 %v9269_v18  ;;  %v6696_v8 = vmul.f32 0.125, %v6683_v31  ;;  %v9293_v0 = vld [vmem:[%s11647_s11 + $0x140] sm:$0xff]  }
 0x5ba   : > { %8615 = vmatprep.subr.bf16.mxu1 %v9270_v12  ;;  %v6703_v4 = vadd.f32 1e-05, %v6695_v29  ;;  %v6801_v12 = vrot.slane %v11480_v24, %v6750_v37  ;;  %v9295_v54 = vld [vmem:[%s11647_s11 + $0x100] sm:$0xff]  }
 0x5bb   : > { %v6704_v15 = vadd.f32 1e-05, %v6696_v8 }
 0x5bc   : > { %8594 = vmatpush3.bf16.msra.mxu0 %v9271_v44  ;;  %9305 = vrsqrt.f32 %v6703_v4  ;;  %v9296_v44 = vld [vmem:[%s11647_s11 + $0x180] sm:$0xff]  }
 0x5bd   : > { %8616 = vmatpush3.bf16.msra.mxu1 %v9272_v60  ;;  %8595 = vmatprep.subr.bf16.mxu0 %v9273_v26  ;;  %9307 = vrsqrt.f32 %v6705_v17 }
 0x5be   : > { %8617 = vmatprep.subr.bf16.mxu1 %v9274_v20  ;;  %9309 = vrsqrt.f32 %v6702_v1 }
 0x5bf   : > { %9311 = vrsqrt.f32 %v6704_v15 }
 0x5c0   : > { %8596 = vmatpush3.bf16.msra.mxu0 %v9275_v16 }
 0x5c1   : > { %8618 = vmatpush3.bf16.msra.mxu1 %v9276_v33  ;;  %8597 = vmatprep.subr.bf16.mxu0 %v9277_v41 }
 0x5c2   : > { %8619 = vmatprep.subr.bf16.mxu1 %v9278_v45 }
 0x5c4   : > { %8598 = vmatpush3.bf16.msra.mxu0 %v9279_v9 }
 0x5c5   : > { %8620 = vmatpush3.bf16.msra.mxu1 %v9280_v51  ;;  %8599 = vmatprep.subr.bf16.mxu0 %v9281_v46 }
 0x5c6   : > { %8621 = vmatprep.subr.bf16.mxu1 %v9282_v13  ;;  %v8200_v13 = vld [vmem:[%s11648_s12] ss:$0 sm:$0xff] }
 0x5c8   : > { %8600 = vmatpush3.bf16.msra.mxu0 %v9283_v63 }
 0x5c9   : > { %8622 = vmatpush3.bf16.msra.mxu1 %v9284_v50  ;;  %8601 = vmatprep.subr.bf16.mxu0 %v9285_v7  ;;  %v9306_v28 = vpop.eup %9305 }
 0x5ca   : > { %8623 = vmatprep.subr.bf16.mxu1 %v9286_v61  ;;  %v9308_v55 = vpop.eup %9307  ;;  %v6719_v3 = vmul.f32 %v9306_v28, %v11493_v42  ;;  %v9292_v42 = vld [vmem:[%s11647_s11 + $0x188] sm:$0xff]  }
 0x5cb   : > { %v9310_v52 = vpop.eup %9309  ;;  %v6721_v49 = vmul.f32 %v9308_v55, %v11496_v62  ;;  %v6793_v62 = vrot.slane %v11480_v24, %v6742_v23 }
 0x5cc   : > { %8602 = vmatpush3.bf16.msra.mxu0 %v9287_v56  ;;  %v9312_v14 = vpop.eup %9311  ;;  %v6769_v18 = vmul.f32 %v6747_v53, %v6719_v3  ;;  %v6718_v57 = vmul.f32 %v9310_v52, %v11498_v5 }
 0x5cd   : > { %8624 = vmatpush3.bf16.msra.mxu1 %v9288_v34  ;;  %8603 = vmatprep.subr.bf16.mxu0 %v9289_v43  ;;  %v6771_v36 = vmul.f32 %v6755_v47, %v6721_v49  ;;  %v6720_v32 = vmul.f32 %v9312_v14, %v11503_v10 }
 0x5ce   : > { %8625 = vmatprep.subr.bf16.mxu1 %v9290_v38  ;;  %v6819_v25 = vadd.f32 %v6797_v39, %v6769_v18  ;;  %v6768_v58 = vmul.f32 %v6743_v6, %v6718_v57 }
 0x5cf   : > { %v6821_v5 = vadd.f32 %v6805_v2, %v6771_v36  ;;  %v6770_v21 = vmul.f32 %v6751_v40, %v6720_v32 }
 0x5d0   : > { %8604 = vmatpush3.bf16.msra.mxu0 %v9291_v35  ;;  %v6827_v48 = vmul.f32 0.2, %v6819_v25  ;;  %v6818_v19 = vadd.f32 %v6793_v62, %v6768_v58 }
 0x5d1   : > { %8626 = vmatpush3.bf16.msra.mxu1 %v9292_v42  ;;  %8605 = vmatprep.subr.bf16.mxu0 %v9293_v0  ;;  %v6829_v10 = vmul.f32 0.2, %v6821_v5  ;;  %v6820_v24 = vadd.f32 %v6801_v12, %v6770_v21 }
 0x5d2   : > { %8627 = vmatprep.subr.bf16.mxu1 %v9294_v59  ;;  %v6835_v60 = vmax.f32 %v6819_v25, %v6827_v48  ;;  %v6826_v26 = vmul.f32 0.2, %v6818_v19 }
 0x5d3   : > { %v6837_v29 = vmax.f32 %v6821_v5, %v6829_v10  ;;  %v6828_v31 = vmul.f32 0.2, %v6820_v24 }
 0x5d4   : > { %8606 = vmatpush3.bf16.msra.mxu0 %v9295_v54  ;;  %v6843_v20 = vpack.c.bf16 %v6835_v60, %v6835_v60  ;;  %v6834_v22 = vmax.f32 %v6818_v19, %v6826_v26 }
 0x5d5   : > { %8628 = vmatpush3.bf16.msra.mxu1 %v9296_v44  ;;  %v6845_v27 = vpack.c.bf16 %v6837_v29, %v6837_v29  ;;  %v6836_v4 = vmax.f32 %v6820_v24, %v6828_v31 }
 0x5d6   : > { %7477 = vmatprep.mubr.bf16.mxu0 %v6843_v20  ;;  %v6842_v8 = vpack.c.bf16 %v6834_v22, %v6834_v22 }
 0x5d7   : > { %7517 = vmatprep.mubr.bf16.mxu1 %v6845_v27  ;;  %v6844_v16 = vpack.c.bf16 %v6836_v4, %v6836_v4 }
 0x5d8   : > { %7478 = vmatmul.mubr.bf16.vlgmr.msra.gmra.mxu0 %v6842_v8 }
 0x5d9   : > { %7518 = vmatmul.mubr.bf16.vlgmr.msra.gmra.mxu1 %v6844_v16 }
 0x677   : > { %v8563_v17 = vpop.f32.mrf.mxu0 }
 0x678   : > { %v8585_v1 = vpop.f32.mrf.mxu1 }
 0x679   : > { %v8564_v33 = vpop.f32.mrf.mxu0 }
 0x67a   : > { %v8586_v41 = vpop.f32.mrf.mxu1  ;;  %v8565_v46 = vadd.f32 %v8564_v33, %v8563_v17 }
 0x67b   : > { %v8566_v15 = vpop.f32.mrf.mxu0  ;;  %v8587_v7 = vadd.f32 %v8586_v41, %v8585_v1 }
 0x67c   : > { %v8588_v45 = vpop.f32.mrf.mxu1  ;;  %v7400_v63 = vadd.f32 %v8565_v46, %v8200_v13 }
 0x67d   : > { %v8567_v9 = vpop.f32.mrf.mxu0 }
 0x67e   : > { %v8589_v51 = vpop.f32.mrf.mxu1  ;;  %v7440_v30 = vadd.f32 %v8587_v7, %v7400_v63 }
 0x698   : > { %v8607_v50 = vpop.f32.mrf.mxu0 }
 0x699   : > { %v8629_v11 = vpop.f32.mrf.mxu1 }
 0x69a   : > { %v8608_v61 = vpop.f32.mrf.mxu0 }
 0x69b   : > { %v8609_v23 = vadd.f32 %v8608_v61, %v8607_v50  ;;  %v8630_v56 = vpop.f32.mrf.mxu1 }
 0x69c   : > { %v8610_v37 = vpop.f32.mrf.mxu0  ;;  %v8631_v43 = vadd.f32 %v8630_v56, %v8629_v11 }
 0x69d   : > { %v7480_v34 = vadd.f32 %v8609_v23, %v7440_v30  ;;  %v8632_v53 = vpop.f32.mrf.mxu1 }
 0x69e   : > { %v8611_v28 = vpop.f32.mrf.mxu0 }
 0x69f   : > { %v7520_v38 = vadd.f32 %v8631_v43, %v7480_v34  ;;  %v8633_v47 = vpop.f32.mrf.mxu1 }
 0x6a1   : > { %7525 = vst [vmem:[#allocation5] sm:$0xff] %v7520_v38 }
 0x6a2 PF: > { %p9111_p6 = scmp.eq.s32.totalorder %s9427_s26, 3  ;;  %s9350_s24 = smov [#allocation5]  }
 0x6a3   : > { %s7533_s14 = sshll.u32 %s9350_s24, 4  ;;  %s7534_s14 = int_to_ptr.vmem [resolvable:$true] %s7533_s14 }
 0x6a4   : > { %s9313_s27 = scalar_lea.vmem %s7534_s14, 128  ;;  %p9320_p10 = scmp.lt.s32.totalorder %s7534_s14, %s7534_s14 }
 0x6a5   : > { %p9314_p7 = scmp.ne.s32.totalorder %s7534_s14, %s9313_s27  ;;  %p9321_p11 = scmp.lt.s32.totalorder %s9313_s27, %s9313_s27 }
 0x6a7   : > { %p9315_p8 = pnand %p9314_p7, %p9111_p6  ;;  %p9322_p12 = por %p9321_p11, %p9320_p10 }
 0x6a9   : > { %p9316_p9 = pneg %p9315_p8 }
 0x6ab   : > { %p9323_p13 = pnand %p9322_p12, %p9316_p9 }
 0x6ad   : > { %9326 = shalt.err (!%p9323_p13)
}
 0x6ae   : > { %9108 = dma.vmem_to_hbm [thread:$0]  (%p9111_p6), %s7534_s14, 128, %s11649_s13, [#allocation6]  }
 0x6af   : > { %9342 = dma.done.wait (%p9111_p6), [#allocation6], 128  }
 0x6b0   : > { %9344 = vsyncadd (%p9111_p6), [#allocation6], 4294967168 }
 0x6b1 PF: > { %s24_s25 = sadd.s32 1, %s9347_s25  }
 0x6b2   : > { %p21_p0 = scmp.ge.s32.totalorder %s24_s25, 6  }
 0x6b4   :  { %23 = sbr.rel (!%p21_p0) target bundleno = 1 (0x1), region = 135 }
 0x6b9   :  { %7546 = vsyncpa [#allocation6], 1 }
 0x6ba   :  { %7548 = vsyncpa [#allocation6 + $0x1], 1 }

</bundles_post_ra>
